<compile_context>
chip_gen: v7x
topology: tpu7x:2x2x1
jax: 0.10.0
libtpu: 0.0.40
codegen_flags: <defaults>
</compile_context>

<pallas_src>
import functools

import jax
import jax.numpy as jnp
import numpy as np
from jax.experimental import pallas as pl
from jax.experimental.pallas import tpu as pltpu


def _decoder_kernel(
    # inputs (all VMEM-resident; single grid step)
    wk_ref, battn_ref, vattn_ref, wihc_ref,
    wh_ref, bhh_ref, embp_ref, wout_ref, bout_ref, ann_ref,
    # outputs
    out_ref, att_ref, hid_ref,
    # scratch: loop-invariant projections kept in VMEM (not live SSA values)
    kproj_ref, annproj_ref,
    *, sos_token, unroll,
):
    max_len = out_ref.shape[0]
    B, nk, kd = ann_ref.shape
    H = hid_ref.shape[2]
    Vp = out_ref.shape[2]
    H3 = 3 * H

    # ---- loop-invariant projections: computed once, parked in VMEM scratch ----
    ann_flat = ann_ref[...].reshape(B * nk, kd)
    kproj_ref[...] = (
        jnp.dot(ann_flat, wk_ref[...], preferred_element_type=jnp.float32)
        .reshape(B, nk, H) + battn_ref[...])
    annproj_ref[...] = jnp.dot(
        ann_flat, wihc_ref[...], preferred_element_type=jnp.float32
    ).reshape(B, nk, H3)

    # Loop-invariant iota hoisted out of the decode step (JAX does not CSE
    # broadcast_in_dim); one i32 vreg row closed over by the body.
    col = jax.lax.broadcasted_iota(jnp.int32, (B, Vp), 1)

    # initHidden: zeros; first GRU input term: <sos> row of the folded
    # (embedding @ W_ih_emb + b_ih) table.
    h0 = jnp.zeros((B, H), jnp.float32)
    gi_emb0 = jnp.broadcast_to(embp_ref[sos_token:sos_token + 1, :], (B, H3))

    def step(t, carry):
        h_prev, gi_emb = carry              # (B,H), (B,3H); dropout = identity (eval)

        # Fused h_prev projection: [ attention-Wq | GRU-Whh ] in one matmul.
        hw = jnp.dot(h_prev, wh_ref[...], preferred_element_type=jnp.float32)
        q = hw[:, :H]                                      # (B, H)
        gh = hw[:, H:] + bhh_ref[...]                      # (B, 3H)

        # Additive (Bahdanau) attention; key projection read from VMEM scratch.
        e = jax.nn.relu(kproj_ref[...] + q[:, None, :])    # (B, nk, H)
        scores = jnp.sum(e * vattn_ref[...], axis=-1)      # VPU mul + lane reduce
        smax = jnp.max(scores, axis=1, keepdims=True)
        p = jnp.exp(scores - smax)
        a = p / jnp.sum(p, axis=1, keepdims=True)          # (B, nk) exact divide

        # Context folded through W_ih_ctx by linearity (no ctx tensor, no matmul).
        gi_ctx = jnp.sum(a[:, :, None] * annproj_ref[...], axis=1)   # (B, 3H)

        # GRU cell, torch gate order [r, z, n]; b_ih already folded into gi_emb.
        gi = gi_emb + gi_ctx
        r = jax.nn.sigmoid(gi[:, 0 * H:1 * H] + gh[:, 0 * H:1 * H])
        z = jax.nn.sigmoid(gi[:, 1 * H:2 * H] + gh[:, 1 * H:2 * H])
        n = jnp.tanh(gi[:, 2 * H:3 * H] + r * gh[:, 2 * H:3 * H])
        h_new = (1.0 - z) * n + z * h_prev                 # (B, H)

        # Output projection + log_softmax over the lane-dense padded vocab.
        # Padded columns carry bias -1e30 -> exp()==0, never the argmax winner.
        logits = (jnp.dot(h_new, wout_ref[...], preferred_element_type=jnp.float32)
                  + bout_ref[...])                         # (B, Vp)
        lmax = jnp.max(logits, axis=1, keepdims=True)
        shifted = logits - lmax
        logp = shifted - jnp.log(jnp.sum(jnp.exp(shifted), axis=1, keepdims=True))

        out_ref[t] = logp                                  # lane-dense vst
        att_ref[t] = a                                     # tiny (B, nk) store

        # Greedy feedback: argmax token -> folded-embedding row for next step.
        cand = jnp.where(logits >= lmax, col, Vp)          # ties -> smallest index
        idx = jnp.min(cand, axis=1)                        # (B,)
        onehot = (col == idx[:, None]).astype(jnp.float32)
        gi_emb_next = jnp.dot(onehot, embp_ref[...],
                              preferred_element_type=jnp.float32)   # (B, 3H)
        return h_new, gi_emb_next

    h_fin, _ = jax.lax.fori_loop(0, max_len, step, (h0, gi_emb0), unroll=unroll)
    hid_ref[0] = h_fin


def network_forward(params, features, *, max_len, sos_token):
    """Returns (outputs [max_len,B,out_dim], attentions [max_len,B,nk], hid [1,B,H])."""
    emb, wq, wk, battn, vattn, wih, bih, whh, bhh, wout, bout = params
    B0, nk, kd = features.shape
    V, E = emb.shape
    H = wq.shape[0]
    H3 = 3 * H

    # Pad batch to a multiple of 8 sublanes; padded rows are independent
    # garbage rows sliced off the results below.
    B = max(8, ((B0 + 7) // 8) * 8)
    if B != B0:
        features = jnp.pad(features, ((0, B - B0), (0, 0), (0, 0)))

    # Lane-dense vocab: pad out_dim to a multiple of 128 so the per-step logp
    # store is an unmasked vst; sliced back to V after the call.
    Vp = max(128, ((V + 127) // 128) * 128)

    # ---- one-time layout plumbing / weight folding (wrapper side, free) ----
    vattn_row = vattn.reshape(1, H)                                      # (H,1)->(1,H)
    wih_emb = jnp.transpose(wih[:, :E, :], (1, 0, 2)).reshape(E, H3)     # gate-major cols
    wih_ctx = jnp.transpose(wih[:, E:, :], (1, 0, 2)).reshape(kd, H3)
    bih_f = bih.reshape(1, H3)
    whh_f = jnp.transpose(whh, (1, 0, 2)).reshape(H, H3)
    bhh_f = bhh.reshape(1, H3)
    # Embedding folded through the GRU input projection (+ b_ih); the decode
    # loop only ever needs emb @ W_ih_emb + b_ih, never the raw embedding.
    emb_proj = jnp.pad(emb @ wih_emb + bih_f, ((0, Vp - V), (0, 0)))     # (Vp, 3H)
    # Fused h_prev projection [Wq | Whh] -> one per-step matmul on h_prev.
    w_h = jnp.concatenate([wq, whh_f], axis=1)                           # (H, 4H)
    wout_p = jnp.pad(wout, ((0, 0), (0, Vp - V)))                        # (H, Vp)
    bout_p = jnp.pad(bout, ((0, 0), (0, Vp - V)), constant_values=-1e30)  # (1, Vp)

    # Cap unrolling for long decodes (code size / vreg pressure); fully unroll
    # short ones for LLO scheduling visibility.
    if max_len <= 8:
        unroll = True
    else:
        unroll = next((u for u in (8, 7, 6, 5, 4, 3, 2) if max_len % u == 0), 1)

    # VMEM limit derived from the chip (3/4 of physical, headroom for scratch)
    # instead of a fixed 32 MiB: ~96 MiB on v5e/v6e, ~48 MiB on v7x.
    try:
        info = pltpu.get_tpu_info()
        vmem_cap = int(getattr(info, "vmem_capacity_bytes", 64 * 1024 * 1024))
    except Exception:
        vmem_cap = 64 * 1024 * 1024
    vmem_limit = max(32 * 1024 * 1024, (vmem_cap * 3) // 4)

    def full(shape):
        n = len(shape)
        return pl.BlockSpec(shape, lambda i, _n=n: (0,) * _n)

    kernel = functools.partial(_decoder_kernel, sos_token=sos_token, unroll=unroll)
    outputs, attentions, hidden = pl.pallas_call(
        kernel,
        out_shape=(
            jax.ShapeDtypeStruct((max_len, B, Vp), jnp.float32),
            jax.ShapeDtypeStruct((max_len, B, nk), jnp.float32),
            jax.ShapeDtypeStruct((1, B, H), jnp.float32),
        ),
        grid_spec=pltpu.PrefetchScalarGridSpec(
            num_scalar_prefetch=0,
            grid=(1,),            # single step: decode loop runs inside the kernel
            in_specs=[
                full(wk.shape), full(battn.shape), full(vattn_row.shape),
                full(wih_ctx.shape), full(w_h.shape), full(bhh_f.shape),
                full(emb_proj.shape), full(wout_p.shape), full(bout_p.shape),
                full(features.shape),
            ],
            out_specs=[
                pl.BlockSpec((max_len, B, Vp), lambda i: (0, 0, 0)),
                pl.BlockSpec((max_len, B, nk), lambda i: (0, 0, 0)),
                pl.BlockSpec((1, B, H), lambda i: (0, 0, 0)),
            ],
            scratch_shapes=[
                pltpu.VMEM((B, nk, H), jnp.float32),    # kproj
                pltpu.VMEM((B, nk, H3), jnp.float32),   # ann @ W_ih_ctx
            ],
        ),
        compiler_params=pltpu.CompilerParams(
            dimension_semantics=("arbitrary",),
            vmem_limit_bytes=vmem_limit,
        ),
    )(wk, battn, vattn_row, wih_ctx, w_h, bhh_f, emb_proj, wout_p, bout_p, features)

    return outputs[:, :B0, :V], attentions[:, :B0], hidden[:, :B0]


def reference_forward(params, features, *, max_len, sos_token):
    """Pure-JAX reference mirroring the PyTorch forward (eval mode, greedy)."""
    emb, wq, wk, battn, vattn, wih, bih, whh, bhh, wout, bout = params
    B = features.shape[0]
    H = wq.shape[0]
    h = jnp.zeros((B, H), jnp.float32)
    x_emb = jnp.broadcast_to(emb[sos_token], (B, emb.shape[1]))
    outs, atts = [], []
    for _ in range(max_len):
        kproj = jnp.einsum('bkd,dh->bkh', features, wk)
        e = jax.nn.relu(kproj + (h @ wq)[:, None, :] + battn)
        scores = jnp.einsum('bkh,h->bk', e, vattn[:, 0])
        a = jax.nn.softmax(scores, axis=1)
        ctx = jnp.einsum('bk,bkd->bd', a, features)
        x = jnp.concatenate([x_emb, ctx], axis=1)
        gi = jnp.einsum('bi,gih->gbh', x, wih) + bih[:, None, :]
        gh = jnp.einsum('bh,ghk->gbk', h, whh) + bhh[:, None, :]
        r = jax.nn.sigmoid(gi[0] + gh[0])
        z = jax.nn.sigmoid(gi[1] + gh[1])
        n = jnp.tanh(gi[2] + r * gh[2])
        h = (1.0 - z) * n + z * h
        logits = h @ wout + bout[0]
        logp = jax.nn.log_softmax(logits, axis=1)
        outs.append(logp)
        atts.append(a)
        idx = jnp.argmax(logits, axis=1)
        x_emb = emb[idx]
    return jnp.stack(outs), jnp.stack(atts), h[None]


if __name__ == "__main__":
    # Small, forward-consistent shapes.
    B = 4            # batch
    HID = 32         # hid_dim
    EMB = 16         # emb_dim
    ENC_DIM = 16     # enc_dim == key_dim == val_dim
    ENC_SEQ = 8      # enc_seq_len (n_keys)
    OUT = 32         # out_dim (vocab)
    MAX_LEN = 6
    SOS = 1

    key = jax.random.PRNGKey(0)
    ks = jax.random.split(key, 12)

    def nrm(k, shape, scale=0.1):
        return scale * jax.random.normal(k, shape, jnp.float32)

    params = (
        nrm(ks[0], (OUT, EMB)),               # embedding table
        nrm(ks[1], (HID, HID)),               # attention W_q
        nrm(ks[2], (ENC_DIM, HID)),           # attention W_k
        nrm(ks[3], (1, HID)),                 # attention bias
        nrm(ks[4], (HID, 1)),                 # attention score vector v
        nrm(ks[5], (3, EMB + ENC_DIM, HID)),  # GRU W_ih (pre-transposed, [r,z,n])
        nrm(ks[6], (3, HID)),                 # GRU b_ih
        nrm(ks[7], (3, HID, HID)),            # GRU W_hh (pre-transposed, [r,z,n])
        nrm(ks[8], (3, HID)),                 # GRU b_hh
        nrm(ks[9], (HID, OUT)),               # out linear (pre-transposed)
        nrm(ks[10], (1, OUT)),                # out bias
    )
    features = jax.random.normal(ks[11], (B, ENC_SEQ, ENC_DIM), jnp.float32)

    outputs, attentions, hidden = network_forward(
        params, features, max_len=MAX_LEN, sos_token=SOS)
    jax.block_until_ready((outputs, attentions, hidden))

    ref_out, ref_att, ref_hid = reference_forward(
        params, features, max_len=MAX_LEN, sos_token=SOS)
    np.testing.assert_allclose(np.asarray(outputs), np.asarray(ref_out),
                               rtol=1e-3, atol=1e-4)
    np.testing.assert_allclose(np.asarray(attentions), np.asarray(ref_att),
                               rtol=1e-3, atol=1e-4)
    np.testing.assert_allclose(np.asarray(hidden), np.asarray(ref_hid),
                               rtol=1e-3, atol=1e-4)

    print("KERNEL_OK")
</pallas_src>

<mosaic_0001>
module attributes {stable_mosaic.version = 11 : i64} {
  func.func @_decoder_kernel(%arg0: i32, %arg1: memref<16x32xf32, #tpu.memory_space<vmem>>, %arg2: memref<1x32xf32, #tpu.memory_space<vmem>>, %arg3: memref<1x32xf32, #tpu.memory_space<vmem>>, %arg4: memref<16x96xf32, #tpu.memory_space<vmem>>, %arg5: memref<32x128xf32, #tpu.memory_space<vmem>>, %arg6: memref<1x96xf32, #tpu.memory_space<vmem>>, %arg7: memref<128x96xf32, #tpu.memory_space<vmem>>, %arg8: memref<32x128xf32, #tpu.memory_space<vmem>>, %arg9: memref<1x128xf32, #tpu.memory_space<vmem>>, %arg10: memref<8x8x16xf32, #tpu.memory_space<vmem>>, %arg11: memref<6x8x128xf32, #tpu.memory_space<vmem>>, %arg12: memref<6x8x8xf32, #tpu.memory_space<vmem>>, %arg13: memref<1x8x32xf32, #tpu.memory_space<vmem>>, %arg14: memref<8x8x32xf32, #tpu.memory_space<vmem>>, %arg15: memref<8x8x96xf32, #tpu.memory_space<vmem>>) attributes {dimension_semantics = [#tpu.dimension_semantics<arbitrary>], iteration_bounds = array<i64: 1>, scalar_prefetch = 0 : i64, scratch_operands = 2 : i64, tpu.core_type = #tpu.core_type<tc>, window_params = [{pipeline_mode = #tpu.pipeline_mode<synchronous>, transform_indices = @transform_0, window_bounds = array<i64: 16, 32>}, {pipeline_mode = #tpu.pipeline_mode<synchronous>, transform_indices = @transform_1, window_bounds = array<i64: 1, 32>}, {pipeline_mode = #tpu.pipeline_mode<synchronous>, transform_indices = @transform_2, window_bounds = array<i64: 1, 32>}, {pipeline_mode = #tpu.pipeline_mode<synchronous>, transform_indices = @transform_3, window_bounds = array<i64: 16, 96>}, {pipeline_mode = #tpu.pipeline_mode<synchronous>, transform_indices = @transform_4, window_bounds = array<i64: 32, 128>}, {pipeline_mode = #tpu.pipeline_mode<synchronous>, transform_indices = @transform_5, window_bounds = array<i64: 1, 96>}, {pipeline_mode = #tpu.pipeline_mode<synchronous>, transform_indices = @transform_6, window_bounds = array<i64: 128, 96>}, {pipeline_mode = #tpu.pipeline_mode<synchronous>, transform_indices = @transform_7, window_bounds = array<i64: 32, 128>}, {pipeline_mode = #tpu.pipeline_mode<synchronous>, transform_indices = @transform_8, window_bounds = array<i64: 1, 128>}, {pipeline_mode = #tpu.pipeline_mode<synchronous>, transform_indices = @transform_9, window_bounds = array<i64: 8, 8, 16>}, {pipeline_mode = #tpu.pipeline_mode<synchronous>, transform_indices = @transform_10, window_bounds = array<i64: 6, 8, 128>}, {pipeline_mode = #tpu.pipeline_mode<synchronous>, transform_indices = @transform_11, window_bounds = array<i64: 6, 8, 8>}, {pipeline_mode = #tpu.pipeline_mode<synchronous>, transform_indices = @transform_12, window_bounds = array<i64: 1, 8, 32>}]} {
    %c0 = arith.constant 0 : index
    %c0_0 = arith.constant 0 : index
    %c0_1 = arith.constant 0 : index
    %0 = vector.load %arg10[%c0, %c0_0, %c0_1] : memref<8x8x16xf32, #tpu.memory_space<vmem>>, vector<8x8x16xf32>
    %1 = vector.shape_cast %0 : vector<8x8x16xf32> to vector<64x16xf32>
    %c0_2 = arith.constant 0 : index
    %c0_3 = arith.constant 0 : index
    %2 = vector.load %arg1[%c0_2, %c0_3] : memref<16x32xf32, #tpu.memory_space<vmem>>, vector<16x32xf32>
    %cst = arith.constant dense<0.000000e+00> : vector<64x32xf32>
    %3 = tpu.matmul %1, %2, %cst {dimension_numbers = #tpu.dot_dimension_numbers<[1], [0], [0], [1], [0, 0, 1, 1], [], []>} : vector<64x16xf32>, vector<16x32xf32>, vector<64x32xf32> -> vector<64x32xf32>
    %4 = vector.shape_cast %3 : vector<64x32xf32> to vector<8x8x32xf32>
    %c0_4 = arith.constant 0 : index
    %c0_5 = arith.constant 0 : index
    %5 = vector.load %arg2[%c0_4, %c0_5] : memref<1x32xf32, #tpu.memory_space<vmem>>, vector<1x32xf32>
    %6 = vector.shape_cast %5 : vector<1x32xf32> to vector<1x1x32xf32>
    %7 = vector.broadcast %6 : vector<1x1x32xf32> to vector<8x8x32xf32>
    %8 = arith.addf %4, %7 : vector<8x8x32xf32>
    %c0_6 = arith.constant 0 : index
    %c0_7 = arith.constant 0 : index
    %c0_8 = arith.constant 0 : index
    %9 = vector.load %arg14[%c0_6, %c0_7, %c0_8] : memref<8x8x32xf32, #tpu.memory_space<vmem>>, vector<8x8x32xf32>
    tpu.vector_store %arg14[%c0_6, %c0_7, %c0_8], %8 {strides = array<i32>} : memref<8x8x32xf32, #tpu.memory_space<vmem>>, vector<8x8x32xf32>,
    %c0_9 = arith.constant 0 : index
    %c0_10 = arith.constant 0 : index
    %10 = vector.load %arg4[%c0_9, %c0_10] : memref<16x96xf32, #tpu.memory_space<vmem>>, vector<16x96xf32>
    %cst_11 = arith.constant dense<0.000000e+00> : vector<64x96xf32>
    %11 = tpu.matmul %1, %10, %cst_11 {dimension_numbers = #tpu.dot_dimension_numbers<[1], [0], [0], [1], [0, 0, 1, 1], [], []>} : vector<64x16xf32>, vector<16x96xf32>, vector<64x96xf32> -> vector<64x96xf32>
    %12 = vector.shape_cast %11 : vector<64x96xf32> to vector<8x8x96xf32>
    %c0_12 = arith.constant 0 : index
    %c0_13 = arith.constant 0 : index
    %c0_14 = arith.constant 0 : index
    %13 = vector.load %arg15[%c0_12, %c0_13, %c0_14] : memref<8x8x96xf32, #tpu.memory_space<vmem>>, vector<8x8x96xf32>
    tpu.vector_store %arg15[%c0_12, %c0_13, %c0_14], %12 {strides = array<i32>} : memref<8x8x96xf32, #tpu.memory_space<vmem>>, vector<8x8x96xf32>,
    %14 = tpu.iota {dimensions = array<i32: 1>} : vector<8x128xi32>
    %cst_15 = arith.constant 0.000000e+00 : f32
    %15 = vector.broadcast %cst_15 : f32 to vector<8x32xf32>
    %c1 = arith.constant 1 : index
    %c0_16 = arith.constant 0 : index
    %16 = vector.load %arg7[%c1, %c0_16] : memref<128x96xf32, #tpu.memory_space<vmem>>, vector<1x96xf32>
    %17 = vector.shape_cast %16 : vector<1x96xf32> to vector<1x96xf32>
    %18 = vector.broadcast %17 : vector<1x96xf32> to vector<8x96xf32>
    %c0_i32 = arith.constant 0 : i32
    %c0_17 = arith.constant 0 : index
    %c0_18 = arith.constant 0 : index
    %19 = vector.load %arg5[%c0_17, %c0_18] : memref<32x128xf32, #tpu.memory_space<vmem>>, vector<32x128xf32>
    %cst_19 = arith.constant dense<0.000000e+00> : vector<8x128xf32>
    %20 = tpu.matmul %15, %19, %cst_19 {dimension_numbers = #tpu.dot_dimension_numbers<[1], [0], [0], [1], [0, 0, 1, 1], [], []>} : vector<8x32xf32>, vector<32x128xf32>, vector<8x128xf32> -> vector<8x128xf32>
    %21 = vector.extract_strided_slice %20 {offsets = [0, 0], sizes = [8, 32], strides = [1, 1]} : vector<8x128xf32> to vector<8x32xf32>
    %22 = vector.extract_strided_slice %20 {offsets = [0, 32], sizes = [8, 96], strides = [1, 1]} : vector<8x128xf32> to vector<8x96xf32>
    %c0_20 = arith.constant 0 : index
    %c0_21 = arith.constant 0 : index
    %23 = vector.load %arg6[%c0_20, %c0_21] : memref<1x96xf32, #tpu.memory_space<vmem>>, vector<1x96xf32>
    %24 = vector.broadcast %23 : vector<1x96xf32> to vector<8x96xf32>
    %25 = arith.addf %22, %24 : vector<8x96xf32>
    %c0_22 = arith.constant 0 : index
    %c0_23 = arith.constant 0 : index
    %c0_24 = arith.constant 0 : index
    %26 = vector.load %arg14[%c0_22, %c0_23, %c0_24] : memref<8x8x32xf32, #tpu.memory_space<vmem>>, vector<8x8x32xf32>
    %27 = vector.shape_cast %21 : vector<8x32xf32> to vector<8x1x32xf32>
    %28 = vector.broadcast %27 : vector<8x1x32xf32> to vector<8x8x32xf32>
    %29 = arith.addf %26, %28 : vector<8x8x32xf32>
    %cst_25 = arith.constant 0.000000e+00 : f32
    %30 = vector.broadcast %cst_25 : f32 to vector<8x8x32xf32>
    %31 = arith.maximumf %29, %30 : vector<8x8x32xf32>
    %c0_26 = arith.constant 0 : index
    %c0_27 = arith.constant 0 : index
    %32 = vector.load %arg3[%c0_26, %c0_27] : memref<1x32xf32, #tpu.memory_space<vmem>>, vector<1x32xf32>
    %33 = vector.shape_cast %32 : vector<1x32xf32> to vector<1x1x32xf32>
    %34 = vector.broadcast %33 : vector<1x1x32xf32> to vector<8x8x32xf32>
    %35 = arith.mulf %31, %34 : vector<8x8x32xf32>
    %cst_28 = arith.constant dense<0.000000e+00> : vector<8x8xf32>
    %36 = vector.multi_reduction <add>, %35, %cst_28 [2] : vector<8x8x32xf32> to vector<8x8xf32>
    %cst_29 = arith.constant dense<0xFF800000> : vector<8xf32>
    %37 = vector.multi_reduction <maximumf>, %36, %cst_29 [1] : vector<8x8xf32> to vector<8xf32>
    %38 = vector.shape_cast %37 : vector<8xf32> to vector<8x1xf32>
    %39 = vector.broadcast %38 : vector<8x1xf32> to vector<8x8xf32>
    %40 = arith.subf %36, %39 : vector<8x8xf32>
    %41 = math.exp %40 : vector<8x8xf32>
    %cst_30 = arith.constant dense<0.000000e+00> : vector<8xf32>
    %42 = vector.multi_reduction <add>, %41, %cst_30 [1] : vector<8x8xf32> to vector<8xf32>
    %43 = vector.shape_cast %42 : vector<8xf32> to vector<8x1xf32>
    %44 = vector.broadcast %43 : vector<8x1xf32> to vector<8x8xf32>
    %45 = arith.divf %41, %44 : vector<8x8xf32>
    %46 = vector.shape_cast %45 : vector<8x8xf32> to vector<8x8x1xf32>
    %c0_31 = arith.constant 0 : index
    %c0_32 = arith.constant 0 : index
    %c0_33 = arith.constant 0 : index
    %47 = vector.load %arg15[%c0_31, %c0_32, %c0_33] : memref<8x8x96xf32, #tpu.memory_space<vmem>>, vector<8x8x96xf32>
    %48 = vector.broadcast %46 : vector<8x8x1xf32> to vector<8x8x96xf32>
    %49 = arith.mulf %48, %47 : vector<8x8x96xf32>
    %cst_34 = arith.constant dense<0.000000e+00> : vector<8x96xf32>
    %50 = vector.multi_reduction <add>, %49, %cst_34 [1] : vector<8x8x96xf32> to vector<8x96xf32>
    %51 = arith.addf %18, %50 : vector<8x96xf32>
    %52 = vector.extract_strided_slice %51 {offsets = [0, 0], sizes = [8, 32], strides = [1, 1]} : vector<8x96xf32> to vector<8x32xf32>
    %53 = vector.extract_strided_slice %25 {offsets = [0, 0], sizes = [8, 32], strides = [1, 1]} : vector<8x96xf32> to vector<8x32xf32>
    %54 = arith.addf %52, %53 : vector<8x32xf32>
    %55 = arith.negf %54 : vector<8x32xf32>
    %56 = math.exp %55 : vector<8x32xf32>
    %cst_35 = arith.constant 1.000000e+00 : f32
    %57 = vector.broadcast %cst_35 : f32 to vector<8x32xf32>
    %58 = arith.addf %57, %56 : vector<8x32xf32>
    %59 = arith.divf %57, %58 : vector<8x32xf32>
    %60 = vector.extract_strided_slice %51 {offsets = [0, 32], sizes = [8, 32], strides = [1, 1]} : vector<8x96xf32> to vector<8x32xf32>
    %61 = vector.extract_strided_slice %25 {offsets = [0, 32], sizes = [8, 32], strides = [1, 1]} : vector<8x96xf32> to vector<8x32xf32>
    %62 = arith.addf %60, %61 : vector<8x32xf32>
    %63 = arith.negf %62 : vector<8x32xf32>
    %64 = math.exp %63 : vector<8x32xf32>
    %cst_36 = arith.constant 1.000000e+00 : f32
    %65 = vector.broadcast %cst_36 : f32 to vector<8x32xf32>
    %66 = arith.addf %65, %64 : vector<8x32xf32>
    %67 = arith.divf %65, %66 : vector<8x32xf32>
    %68 = vector.extract_strided_slice %51 {offsets = [0, 64], sizes = [8, 32], strides = [1, 1]} : vector<8x96xf32> to vector<8x32xf32>
    %69 = vector.extract_strided_slice %25 {offsets = [0, 64], sizes = [8, 32], strides = [1, 1]} : vector<8x96xf32> to vector<8x32xf32>
    %70 = arith.mulf %59, %69 : vector<8x32xf32>
    %71 = arith.addf %68, %70 : vector<8x32xf32>
    %72 = math.tanh %71 : vector<8x32xf32>
    %cst_37 = arith.constant 1.000000e+00 : f32
    %73 = vector.broadcast %cst_37 : f32 to vector<8x32xf32>
    %74 = arith.subf %73, %67 : vector<8x32xf32>
    %75 = arith.mulf %74, %72 : vector<8x32xf32>
    %76 = arith.mulf %67, %15 : vector<8x32xf32>
    %77 = arith.addf %75, %76 : vector<8x32xf32>
    %c0_38 = arith.constant 0 : index
    %c0_39 = arith.constant 0 : index
    %78 = vector.load %arg8[%c0_38, %c0_39] : memref<32x128xf32, #tpu.memory_space<vmem>>, vector<32x128xf32>
    %cst_40 = arith.constant dense<0.000000e+00> : vector<8x128xf32>
    %79 = tpu.matmul %77, %78, %cst_40 {dimension_numbers = #tpu.dot_dimension_numbers<[1], [0], [0], [1], [0, 0, 1, 1], [], []>} : vector<8x32xf32>, vector<32x128xf32>, vector<8x128xf32> -> vector<8x128xf32>
    %c0_41 = arith.constant 0 : index
    %c0_42 = arith.constant 0 : index
    %80 = vector.load %arg9[%c0_41, %c0_42] : memref<1x128xf32, #tpu.memory_space<vmem>>, vector<1x128xf32>
    %81 = vector.broadcast %80 : vector<1x128xf32> to vector<8x128xf32>
    %82 = arith.addf %79, %81 : vector<8x128xf32>
    %cst_43 = arith.constant dense<0xFF800000> : vector<8xf32>
    %83 = vector.multi_reduction <maximumf>, %82, %cst_43 [1] : vector<8x128xf32> to vector<8xf32>
    %84 = vector.shape_cast %83 : vector<8xf32> to vector<8x1xf32>
    %85 = vector.broadcast %84 : vector<8x1xf32> to vector<8x128xf32>
    %86 = arith.subf %82, %85 : vector<8x128xf32>
    %87 = math.exp %86 : vector<8x128xf32>
    %cst_44 = arith.constant dense<0.000000e+00> : vector<8xf32>
    %88 = vector.multi_reduction <add>, %87, %cst_44 [1] : vector<8x128xf32> to vector<8xf32>
    %89 = vector.shape_cast %88 : vector<8xf32> to vector<8x1xf32>
    %90 = math.log %89 : vector<8x1xf32>
    %91 = vector.broadcast %90 : vector<8x1xf32> to vector<8x128xf32>
    %92 = arith.subf %86, %91 : vector<8x128xf32>
    %93 = arith.index_cast %c0_i32 : i32 to index
    %c0_45 = arith.constant 0 : index
    %c0_46 = arith.constant 0 : index
    %94 = vector.load %arg11[%93, %c0_45, %c0_46] : memref<6x8x128xf32, #tpu.memory_space<vmem>>, vector<1x8x128xf32>
    %95 = vector.shape_cast %94 : vector<1x8x128xf32> to vector<8x128xf32>
    %96 = vector.shape_cast %92 : vector<8x128xf32> to vector<1x8x128xf32>
    tpu.vector_store %arg11[%93, %c0_45, %c0_46], %96 {strides = array<i32>} : memref<6x8x128xf32, #tpu.memory_space<vmem>>, vector<1x8x128xf32>,
    %97 = arith.index_cast %c0_i32 : i32 to index
    %c0_47 = arith.constant 0 : index
    %c0_48 = arith.constant 0 : index
    %98 = vector.load %arg12[%97, %c0_47, %c0_48] : memref<6x8x8xf32, #tpu.memory_space<vmem>>, vector<1x8x8xf32>
    %99 = vector.shape_cast %98 : vector<1x8x8xf32> to vector<8x8xf32>
    %100 = vector.shape_cast %45 : vector<8x8xf32> to vector<1x8x8xf32>
    tpu.vector_store %arg12[%97, %c0_47, %c0_48], %100 {strides = array<i32>} : memref<6x8x8xf32, #tpu.memory_space<vmem>>, vector<1x8x8xf32>,
    %101 = vector.broadcast %84 : vector<8x1xf32> to vector<8x128xf32>
    %102 = arith.cmpf oge, %82, %101 : vector<8x128xf32>
    %c128_i32 = arith.constant 128 : i32
    %103 = vector.broadcast %c128_i32 : i32 to vector<8x128xi32>
    %104 = arith.select %102, %14, %103 : vector<8x128xi1>, vector<8x128xi32>
    %cst_49 = arith.constant dense<2147483647> : vector<8xi32>
    %105 = vector.multi_reduction <minsi>, %104, %cst_49 [1] : vector<8x128xi32> to vector<8xi32>
    %106 = vector.shape_cast %105 : vector<8xi32> to vector<8x1xi32>
    %107 = vector.broadcast %106 : vector<8x1xi32> to vector<8x128xi32>
    %108 = arith.cmpi eq, %14, %107 : vector<8x128xi32>
    %109 = arith.extui %108 : vector<8x128xi1> to vector<8x128xi32>
    %110 = arith.sitofp %109 : vector<8x128xi32> to vector<8x128xf32>
    %c0_50 = arith.constant 0 : index
    %c0_51 = arith.constant 0 : index
    %111 = vector.load %arg7[%c0_50, %c0_51] : memref<128x96xf32, #tpu.memory_space<vmem>>, vector<128x96xf32>
    %cst_52 = arith.constant dense<0.000000e+00> : vector<8x96xf32>
    %112 = tpu.matmul %110, %111, %cst_52 {dimension_numbers = #tpu.dot_dimension_numbers<[1], [0], [0], [1], [0, 0, 1, 1], [], []>} : vector<8x128xf32>, vector<128x96xf32>, vector<8x96xf32> -> vector<8x96xf32>
    %c1_i32 = arith.constant 1 : i32
    %c0_53 = arith.constant 0 : index
    %c0_54 = arith.constant 0 : index
    %113 = vector.load %arg5[%c0_53, %c0_54] : memref<32x128xf32, #tpu.memory_space<vmem>>, vector<32x128xf32>
    %cst_55 = arith.constant dense<0.000000e+00> : vector<8x128xf32>
    %114 = tpu.matmul %77, %113, %cst_55 {dimension_numbers = #tpu.dot_dimension_numbers<[1], [0], [0], [1], [0, 0, 1, 1], [], []>} : vector<8x32xf32>, vector<32x128xf32>, vector<8x128xf32> -> vector<8x128xf32>
    %115 = vector.extract_strided_slice %114 {offsets = [0, 0], sizes = [8, 32], strides = [1, 1]} : vector<8x128xf32> to vector<8x32xf32>
    %116 = vector.extract_strided_slice %114 {offsets = [0, 32], sizes = [8, 96], strides = [1, 1]} : vector<8x128xf32> to vector<8x96xf32>
    %c0_56 = arith.constant 0 : index
    %c0_57 = arith.constant 0 : index
    %117 = vector.load %arg6[%c0_56, %c0_57] : memref<1x96xf32, #tpu.memory_space<vmem>>, vector<1x96xf32>
    %118 = vector.broadcast %117 : vector<1x96xf32> to vector<8x96xf32>
    %119 = arith.addf %116, %118 : vector<8x96xf32>
    %c0_58 = arith.constant 0 : index
    %c0_59 = arith.constant 0 : index
    %c0_60 = arith.constant 0 : index
    %120 = vector.load %arg14[%c0_58, %c0_59, %c0_60] : memref<8x8x32xf32, #tpu.memory_space<vmem>>, vector<8x8x32xf32>
    %121 = vector.shape_cast %115 : vector<8x32xf32> to vector<8x1x32xf32>
    %122 = vector.broadcast %121 : vector<8x1x32xf32> to vector<8x8x32xf32>
    %123 = arith.addf %120, %122 : vector<8x8x32xf32>
    %cst_61 = arith.constant 0.000000e+00 : f32
    %124 = vector.broadcast %cst_61 : f32 to vector<8x8x32xf32>
    %125 = arith.maximumf %123, %124 : vector<8x8x32xf32>
    %c0_62 = arith.constant 0 : index
    %c0_63 = arith.constant 0 : index
    %126 = vector.load %arg3[%c0_62, %c0_63] : memref<1x32xf32, #tpu.memory_space<vmem>>, vector<1x32xf32>
    %127 = vector.shape_cast %126 : vector<1x32xf32> to vector<1x1x32xf32>
    %128 = vector.broadcast %127 : vector<1x1x32xf32> to vector<8x8x32xf32>
    %129 = arith.mulf %125, %128 : vector<8x8x32xf32>
    %cst_64 = arith.constant dense<0.000000e+00> : vector<8x8xf32>
    %130 = vector.multi_reduction <add>, %129, %cst_64 [2] : vector<8x8x32xf32> to vector<8x8xf32>
    %cst_65 = arith.constant dense<0xFF800000> : vector<8xf32>
    %131 = vector.multi_reduction <maximumf>, %130, %cst_65 [1] : vector<8x8xf32> to vector<8xf32>
    %132 = vector.shape_cast %131 : vector<8xf32> to vector<8x1xf32>
    %133 = vector.broadcast %132 : vector<8x1xf32> to vector<8x8xf32>
    %134 = arith.subf %130, %133 : vector<8x8xf32>
    %135 = math.exp %134 : vector<8x8xf32>
    %cst_66 = arith.constant dense<0.000000e+00> : vector<8xf32>
    %136 = vector.multi_reduction <add>, %135, %cst_66 [1] : vector<8x8xf32> to vector<8xf32>
    %137 = vector.shape_cast %136 : vector<8xf32> to vector<8x1xf32>
    %138 = vector.broadcast %137 : vector<8x1xf32> to vector<8x8xf32>
    %139 = arith.divf %135, %138 : vector<8x8xf32>
    %140 = vector.shape_cast %139 : vector<8x8xf32> to vector<8x8x1xf32>
    %c0_67 = arith.constant 0 : index
    %c0_68 = arith.constant 0 : index
    %c0_69 = arith.constant 0 : index
    %141 = vector.load %arg15[%c0_67, %c0_68, %c0_69] : memref<8x8x96xf32, #tpu.memory_space<vmem>>, vector<8x8x96xf32>
    %142 = vector.broadcast %140 : vector<8x8x1xf32> to vector<8x8x96xf32>
    %143 = arith.mulf %142, %141 : vector<8x8x96xf32>
    %cst_70 = arith.constant dense<0.000000e+00> : vector<8x96xf32>
    %144 = vector.multi_reduction <add>, %143, %cst_70 [1] : vector<8x8x96xf32> to vector<8x96xf32>
    %145 = arith.addf %112, %144 : vector<8x96xf32>
    %146 = vector.extract_strided_slice %145 {offsets = [0, 0], sizes = [8, 32], strides = [1, 1]} : vector<8x96xf32> to vector<8x32xf32>
    %147 = vector.extract_strided_slice %119 {offsets = [0, 0], sizes = [8, 32], strides = [1, 1]} : vector<8x96xf32> to vector<8x32xf32>
    %148 = arith.addf %146, %147 : vector<8x32xf32>
    %149 = arith.negf %148 : vector<8x32xf32>
    %150 = math.exp %149 : vector<8x32xf32>
    %cst_71 = arith.constant 1.000000e+00 : f32
    %151 = vector.broadcast %cst_71 : f32 to vector<8x32xf32>
    %152 = arith.addf %151, %150 : vector<8x32xf32>
    %153 = arith.divf %151, %152 : vector<8x32xf32>
    %154 = vector.extract_strided_slice %145 {offsets = [0, 32], sizes = [8, 32], strides = [1, 1]} : vector<8x96xf32> to vector<8x32xf32>
    %155 = vector.extract_strided_slice %119 {offsets = [0, 32], sizes = [8, 32], strides = [1, 1]} : vector<8x96xf32> to vector<8x32xf32>
    %156 = arith.addf %154, %155 : vector<8x32xf32>
    %157 = arith.negf %156 : vector<8x32xf32>
    %158 = math.exp %157 : vector<8x32xf32>
    %cst_72 = arith.constant 1.000000e+00 : f32
    %159 = vector.broadcast %cst_72 : f32 to vector<8x32xf32>
    %160 = arith.addf %159, %158 : vector<8x32xf32>
    %161 = arith.divf %159, %160 : vector<8x32xf32>
    %162 = vector.extract_strided_slice %145 {offsets = [0, 64], sizes = [8, 32], strides = [1, 1]} : vector<8x96xf32> to vector<8x32xf32>
    %163 = vector.extract_strided_slice %119 {offsets = [0, 64], sizes = [8, 32], strides = [1, 1]} : vector<8x96xf32> to vector<8x32xf32>
    %164 = arith.mulf %153, %163 : vector<8x32xf32>
    %165 = arith.addf %162, %164 : vector<8x32xf32>
    %166 = math.tanh %165 : vector<8x32xf32>
    %cst_73 = arith.constant 1.000000e+00 : f32
    %167 = vector.broadcast %cst_73 : f32 to vector<8x32xf32>
    %168 = arith.subf %167, %161 : vector<8x32xf32>
    %169 = arith.mulf %168, %166 : vector<8x32xf32>
    %170 = arith.mulf %161, %77 : vector<8x32xf32>
    %171 = arith.addf %169, %170 : vector<8x32xf32>
    %c0_74 = arith.constant 0 : index
    %c0_75 = arith.constant 0 : index
    %172 = vector.load %arg8[%c0_74, %c0_75] : memref<32x128xf32, #tpu.memory_space<vmem>>, vector<32x128xf32>
    %cst_76 = arith.constant dense<0.000000e+00> : vector<8x128xf32>
    %173 = tpu.matmul %171, %172, %cst_76 {dimension_numbers = #tpu.dot_dimension_numbers<[1], [0], [0], [1], [0, 0, 1, 1], [], []>} : vector<8x32xf32>, vector<32x128xf32>, vector<8x128xf32> -> vector<8x128xf32>
    %c0_77 = arith.constant 0 : index
    %c0_78 = arith.constant 0 : index
    %174 = vector.load %arg9[%c0_77, %c0_78] : memref<1x128xf32, #tpu.memory_space<vmem>>, vector<1x128xf32>
    %175 = vector.broadcast %174 : vector<1x128xf32> to vector<8x128xf32>
    %176 = arith.addf %173, %175 : vector<8x128xf32>
    %cst_79 = arith.constant dense<0xFF800000> : vector<8xf32>
    %177 = vector.multi_reduction <maximumf>, %176, %cst_79 [1] : vector<8x128xf32> to vector<8xf32>
    %178 = vector.shape_cast %177 : vector<8xf32> to vector<8x1xf32>
    %179 = vector.broadcast %178 : vector<8x1xf32> to vector<8x128xf32>
    %180 = arith.subf %176, %179 : vector<8x128xf32>
    %181 = math.exp %180 : vector<8x128xf32>
    %cst_80 = arith.constant dense<0.000000e+00> : vector<8xf32>
    %182 = vector.multi_reduction <add>, %181, %cst_80 [1] : vector<8x128xf32> to vector<8xf32>
    %183 = vector.shape_cast %182 : vector<8xf32> to vector<8x1xf32>
    %184 = math.log %183 : vector<8x1xf32>
    %185 = vector.broadcast %184 : vector<8x1xf32> to vector<8x128xf32>
    %186 = arith.subf %180, %185 : vector<8x128xf32>
    %187 = arith.index_cast %c1_i32 : i32 to index
    %c0_81 = arith.constant 0 : index
    %c0_82 = arith.constant 0 : index
    %188 = vector.load %arg11[%187, %c0_81, %c0_82] : memref<6x8x128xf32, #tpu.memory_space<vmem>>, vector<1x8x128xf32>
    %189 = vector.shape_cast %188 : vector<1x8x128xf32> to vector<8x128xf32>
    %190 = vector.shape_cast %186 : vector<8x128xf32> to vector<1x8x128xf32>
    tpu.vector_store %arg11[%187, %c0_81, %c0_82], %190 {strides = array<i32>} : memref<6x8x128xf32, #tpu.memory_space<vmem>>, vector<1x8x128xf32>,
    %191 = arith.index_cast %c1_i32 : i32 to index
    %c0_83 = arith.constant 0 : index
    %c0_84 = arith.constant 0 : index
    %192 = vector.load %arg12[%191, %c0_83, %c0_84] : memref<6x8x8xf32, #tpu.memory_space<vmem>>, vector<1x8x8xf32>
    %193 = vector.shape_cast %192 : vector<1x8x8xf32> to vector<8x8xf32>
    %194 = vector.shape_cast %139 : vector<8x8xf32> to vector<1x8x8xf32>
    tpu.vector_store %arg12[%191, %c0_83, %c0_84], %194 {strides = array<i32>} : memref<6x8x8xf32, #tpu.memory_space<vmem>>, vector<1x8x8xf32>,
    %195 = vector.broadcast %178 : vector<8x1xf32> to vector<8x128xf32>
    %196 = arith.cmpf oge, %176, %195 : vector<8x128xf32>
    %c128_i32_85 = arith.constant 128 : i32
    %197 = vector.broadcast %c128_i32_85 : i32 to vector<8x128xi32>
    %198 = arith.select %196, %14, %197 : vector<8x128xi1>, vector<8x128xi32>
    %cst_86 = arith.constant dense<2147483647> : vector<8xi32>
    %199 = vector.multi_reduction <minsi>, %198, %cst_86 [1] : vector<8x128xi32> to vector<8xi32>
    %200 = vector.shape_cast %199 : vector<8xi32> to vector<8x1xi32>
    %201 = vector.broadcast %200 : vector<8x1xi32> to vector<8x128xi32>
    %202 = arith.cmpi eq, %14, %201 : vector<8x128xi32>
    %203 = arith.extui %202 : vector<8x128xi1> to vector<8x128xi32>
    %204 = arith.sitofp %203 : vector<8x128xi32> to vector<8x128xf32>
    %c0_87 = arith.constant 0 : index
    %c0_88 = arith.constant 0 : index
    %205 = vector.load %arg7[%c0_87, %c0_88] : memref<128x96xf32, #tpu.memory_space<vmem>>, vector<128x96xf32>
    %cst_89 = arith.constant dense<0.000000e+00> : vector<8x96xf32>
    %206 = tpu.matmul %204, %205, %cst_89 {dimension_numbers = #tpu.dot_dimension_numbers<[1], [0], [0], [1], [0, 0, 1, 1], [], []>} : vector<8x128xf32>, vector<128x96xf32>, vector<8x96xf32> -> vector<8x96xf32>
    %c2_i32 = arith.constant 2 : i32
    %c0_90 = arith.constant 0 : index
    %c0_91 = arith.constant 0 : index
    %207 = vector.load %arg5[%c0_90, %c0_91] : memref<32x128xf32, #tpu.memory_space<vmem>>, vector<32x128xf32>
    %cst_92 = arith.constant dense<0.000000e+00> : vector<8x128xf32>
    %208 = tpu.matmul %171, %207, %cst_92 {dimension_numbers = #tpu.dot_dimension_numbers<[1], [0], [0], [1], [0, 0, 1, 1], [], []>} : vector<8x32xf32>, vector<32x128xf32>, vector<8x128xf32> -> vector<8x128xf32>
    %209 = vector.extract_strided_slice %208 {offsets = [0, 0], sizes = [8, 32], strides = [1, 1]} : vector<8x128xf32> to vector<8x32xf32>
    %210 = vector.extract_strided_slice %208 {offsets = [0, 32], sizes = [8, 96], strides = [1, 1]} : vector<8x128xf32> to vector<8x96xf32>
    %c0_93 = arith.constant 0 : index
    %c0_94 = arith.constant 0 : index
    %211 = vector.load %arg6[%c0_93, %c0_94] : memref<1x96xf32, #tpu.memory_space<vmem>>, vector<1x96xf32>
    %212 = vector.broadcast %211 : vector<1x96xf32> to vector<8x96xf32>
    %213 = arith.addf %210, %212 : vector<8x96xf32>
    %c0_95 = arith.constant 0 : index
    %c0_96 = arith.constant 0 : index
    %c0_97 = arith.constant 0 : index
    %214 = vector.load %arg14[%c0_95, %c0_96, %c0_97] : memref<8x8x32xf32, #tpu.memory_space<vmem>>, vector<8x8x32xf32>
    %215 = vector.shape_cast %209 : vector<8x32xf32> to vector<8x1x32xf32>
    %216 = vector.broadcast %215 : vector<8x1x32xf32> to vector<8x8x32xf32>
    %217 = arith.addf %214, %216 : vector<8x8x32xf32>
    %cst_98 = arith.constant 0.000000e+00 : f32
    %218 = vector.broadcast %cst_98 : f32 to vector<8x8x32xf32>
    %219 = arith.maximumf %217, %218 : vector<8x8x32xf32>
    %c0_99 = arith.constant 0 : index
    %c0_100 = arith.constant 0 : index
    %220 = vector.load %arg3[%c0_99, %c0_100] : memref<1x32xf32, #tpu.memory_space<vmem>>, vector<1x32xf32>
    %221 = vector.shape_cast %220 : vector<1x32xf32> to vector<1x1x32xf32>
    %222 = vector.broadcast %221 : vector<1x1x32xf32> to vector<8x8x32xf32>
    %223 = arith.mulf %219, %222 : vector<8x8x32xf32>
    %cst_101 = arith.constant dense<0.000000e+00> : vector<8x8xf32>
    %224 = vector.multi_reduction <add>, %223, %cst_101 [2] : vector<8x8x32xf32> to vector<8x8xf32>
    %cst_102 = arith.constant dense<0xFF800000> : vector<8xf32>
    %225 = vector.multi_reduction <maximumf>, %224, %cst_102 [1] : vector<8x8xf32> to vector<8xf32>
    %226 = vector.shape_cast %225 : vector<8xf32> to vector<8x1xf32>
    %227 = vector.broadcast %226 : vector<8x1xf32> to vector<8x8xf32>
    %228 = arith.subf %224, %227 : vector<8x8xf32>
    %229 = math.exp %228 : vector<8x8xf32>
    %cst_103 = arith.constant dense<0.000000e+00> : vector<8xf32>
    %230 = vector.multi_reduction <add>, %229, %cst_103 [1] : vector<8x8xf32> to vector<8xf32>
    %231 = vector.shape_cast %230 : vector<8xf32> to vector<8x1xf32>
    %232 = vector.broadcast %231 : vector<8x1xf32> to vector<8x8xf32>
    %233 = arith.divf %229, %232 : vector<8x8xf32>
    %234 = vector.shape_cast %233 : vector<8x8xf32> to vector<8x8x1xf32>
    %c0_104 = arith.constant 0 : index
    %c0_105 = arith.constant 0 : index
    %c0_106 = arith.constant 0 : index
    %235 = vector.load %arg15[%c0_104, %c0_105, %c0_106] : memref<8x8x96xf32, #tpu.memory_space<vmem>>, vector<8x8x96xf32>
    %236 = vector.broadcast %234 : vector<8x8x1xf32> to vector<8x8x96xf32>
    %237 = arith.mulf %236, %235 : vector<8x8x96xf32>
    %cst_107 = arith.constant dense<0.000000e+00> : vector<8x96xf32>
    %238 = vector.multi_reduction <add>, %237, %cst_107 [1] : vector<8x8x96xf32> to vector<8x96xf32>
    %239 = arith.addf %206, %238 : vector<8x96xf32>
    %240 = vector.extract_strided_slice %239 {offsets = [0, 0], sizes = [8, 32], strides = [1, 1]} : vector<8x96xf32> to vector<8x32xf32>
    %241 = vector.extract_strided_slice %213 {offsets = [0, 0], sizes = [8, 32], strides = [1, 1]} : vector<8x96xf32> to vector<8x32xf32>
    %242 = arith.addf %240, %241 : vector<8x32xf32>
    %243 = arith.negf %242 : vector<8x32xf32>
    %244 = math.exp %243 : vector<8x32xf32>
    %cst_108 = arith.constant 1.000000e+00 : f32
    %245 = vector.broadcast %cst_108 : f32 to vector<8x32xf32>
    %246 = arith.addf %245, %244 : vector<8x32xf32>
    %247 = arith.divf %245, %246 : vector<8x32xf32>
    %248 = vector.extract_strided_slice %239 {offsets = [0, 32], sizes = [8, 32], strides = [1, 1]} : vector<8x96xf32> to vector<8x32xf32>
    %249 = vector.extract_strided_slice %213 {offsets = [0, 32], sizes = [8, 32], strides = [1, 1]} : vector<8x96xf32> to vector<8x32xf32>
    %250 = arith.addf %248, %249 : vector<8x32xf32>
    %251 = arith.negf %250 : vector<8x32xf32>
    %252 = math.exp %251 : vector<8x32xf32>
    %cst_109 = arith.constant 1.000000e+00 : f32
    %253 = vector.broadcast %cst_109 : f32 to vector<8x32xf32>
    %254 = arith.addf %253, %252 : vector<8x32xf32>
    %255 = arith.divf %253, %254 : vector<8x32xf32>
    %256 = vector.extract_strided_slice %239 {offsets = [0, 64], sizes = [8, 32], strides = [1, 1]} : vector<8x96xf32> to vector<8x32xf32>
    %257 = vector.extract_strided_slice %213 {offsets = [0, 64], sizes = [8, 32], strides = [1, 1]} : vector<8x96xf32> to vector<8x32xf32>
    %258 = arith.mulf %247, %257 : vector<8x32xf32>
    %259 = arith.addf %256, %258 : vector<8x32xf32>
    %260 = math.tanh %259 : vector<8x32xf32>
    %cst_110 = arith.constant 1.000000e+00 : f32
    %261 = vector.broadcast %cst_110 : f32 to vector<8x32xf32>
    %262 = arith.subf %261, %255 : vector<8x32xf32>
    %263 = arith.mulf %262, %260 : vector<8x32xf32>
    %264 = arith.mulf %255, %171 : vector<8x32xf32>
    %265 = arith.addf %263, %264 : vector<8x32xf32>
    %c0_111 = arith.constant 0 : index
    %c0_112 = arith.constant 0 : index
    %266 = vector.load %arg8[%c0_111, %c0_112] : memref<32x128xf32, #tpu.memory_space<vmem>>, vector<32x128xf32>
    %cst_113 = arith.constant dense<0.000000e+00> : vector<8x128xf32>
    %267 = tpu.matmul %265, %266, %cst_113 {dimension_numbers = #tpu.dot_dimension_numbers<[1], [0], [0], [1], [0, 0, 1, 1], [], []>} : vector<8x32xf32>, vector<32x128xf32>, vector<8x128xf32> -> vector<8x128xf32>
    %c0_114 = arith.constant 0 : index
    %c0_115 = arith.constant 0 : index
    %268 = vector.load %arg9[%c0_114, %c0_115] : memref<1x128xf32, #tpu.memory_space<vmem>>, vector<1x128xf32>
    %269 = vector.broadcast %268 : vector<1x128xf32> to vector<8x128xf32>
    %270 = arith.addf %267, %269 : vector<8x128xf32>
    %cst_116 = arith.constant dense<0xFF800000> : vector<8xf32>
    %271 = vector.multi_reduction <maximumf>, %270, %cst_116 [1] : vector<8x128xf32> to vector<8xf32>
    %272 = vector.shape_cast %271 : vector<8xf32> to vector<8x1xf32>
    %273 = vector.broadcast %272 : vector<8x1xf32> to vector<8x128xf32>
    %274 = arith.subf %270, %273 : vector<8x128xf32>
    %275 = math.exp %274 : vector<8x128xf32>
    %cst_117 = arith.constant dense<0.000000e+00> : vector<8xf32>
    %276 = vector.multi_reduction <add>, %275, %cst_117 [1] : vector<8x128xf32> to vector<8xf32>
    %277 = vector.shape_cast %276 : vector<8xf32> to vector<8x1xf32>
    %278 = math.log %277 : vector<8x1xf32>
    %279 = vector.broadcast %278 : vector<8x1xf32> to vector<8x128xf32>
    %280 = arith.subf %274, %279 : vector<8x128xf32>
    %281 = arith.index_cast %c2_i32 : i32 to index
    %c0_118 = arith.constant 0 : index
    %c0_119 = arith.constant 0 : index
    %282 = vector.load %arg11[%281, %c0_118, %c0_119] : memref<6x8x128xf32, #tpu.memory_space<vmem>>, vector<1x8x128xf32>
    %283 = vector.shape_cast %282 : vector<1x8x128xf32> to vector<8x128xf32>
    %284 = vector.shape_cast %280 : vector<8x128xf32> to vector<1x8x128xf32>
    tpu.vector_store %arg11[%281, %c0_118, %c0_119], %284 {strides = array<i32>} : memref<6x8x128xf32, #tpu.memory_space<vmem>>, vector<1x8x128xf32>,
    %285 = arith.index_cast %c2_i32 : i32 to index
    %c0_120 = arith.constant 0 : index
    %c0_121 = arith.constant 0 : index
    %286 = vector.load %arg12[%285, %c0_120, %c0_121] : memref<6x8x8xf32, #tpu.memory_space<vmem>>, vector<1x8x8xf32>
    %287 = vector.shape_cast %286 : vector<1x8x8xf32> to vector<8x8xf32>
    %288 = vector.shape_cast %233 : vector<8x8xf32> to vector<1x8x8xf32>
    tpu.vector_store %arg12[%285, %c0_120, %c0_121], %288 {strides = array<i32>} : memref<6x8x8xf32, #tpu.memory_space<vmem>>, vector<1x8x8xf32>,
    %289 = vector.broadcast %272 : vector<8x1xf32> to vector<8x128xf32>
    %290 = arith.cmpf oge, %270, %289 : vector<8x128xf32>
    %c128_i32_122 = arith.constant 128 : i32
    %291 = vector.broadcast %c128_i32_122 : i32 to vector<8x128xi32>
    %292 = arith.select %290, %14, %291 : vector<8x128xi1>, vector<8x128xi32>
    %cst_123 = arith.constant dense<2147483647> : vector<8xi32>
    %293 = vector.multi_reduction <minsi>, %292, %cst_123 [1] : vector<8x128xi32> to vector<8xi32>
    %294 = vector.shape_cast %293 : vector<8xi32> to vector<8x1xi32>
    %295 = vector.broadcast %294 : vector<8x1xi32> to vector<8x128xi32>
    %296 = arith.cmpi eq, %14, %295 : vector<8x128xi32>
    %297 = arith.extui %296 : vector<8x128xi1> to vector<8x128xi32>
    %298 = arith.sitofp %297 : vector<8x128xi32> to vector<8x128xf32>
    %c0_124 = arith.constant 0 : index
    %c0_125 = arith.constant 0 : index
    %299 = vector.load %arg7[%c0_124, %c0_125] : memref<128x96xf32, #tpu.memory_space<vmem>>, vector<128x96xf32>
    %cst_126 = arith.constant dense<0.000000e+00> : vector<8x96xf32>
    %300 = tpu.matmul %298, %299, %cst_126 {dimension_numbers = #tpu.dot_dimension_numbers<[1], [0], [0], [1], [0, 0, 1, 1], [], []>} : vector<8x128xf32>, vector<128x96xf32>, vector<8x96xf32> -> vector<8x96xf32>
    %c3_i32 = arith.constant 3 : i32
    %c0_127 = arith.constant 0 : index
    %c0_128 = arith.constant 0 : index
    %301 = vector.load %arg5[%c0_127, %c0_128] : memref<32x128xf32, #tpu.memory_space<vmem>>, vector<32x128xf32>
    %cst_129 = arith.constant dense<0.000000e+00> : vector<8x128xf32>
    %302 = tpu.matmul %265, %301, %cst_129 {dimension_numbers = #tpu.dot_dimension_numbers<[1], [0], [0], [1], [0, 0, 1, 1], [], []>} : vector<8x32xf32>, vector<32x128xf32>, vector<8x128xf32> -> vector<8x128xf32>
    %303 = vector.extract_strided_slice %302 {offsets = [0, 0], sizes = [8, 32], strides = [1, 1]} : vector<8x128xf32> to vector<8x32xf32>
    %304 = vector.extract_strided_slice %302 {offsets = [0, 32], sizes = [8, 96], strides = [1, 1]} : vector<8x128xf32> to vector<8x96xf32>
    %c0_130 = arith.constant 0 : index
    %c0_131 = arith.constant 0 : index
    %305 = vector.load %arg6[%c0_130, %c0_131] : memref<1x96xf32, #tpu.memory_space<vmem>>, vector<1x96xf32>
    %306 = vector.broadcast %305 : vector<1x96xf32> to vector<8x96xf32>
    %307 = arith.addf %304, %306 : vector<8x96xf32>
    %c0_132 = arith.constant 0 : index
    %c0_133 = arith.constant 0 : index
    %c0_134 = arith.constant 0 : index
    %308 = vector.load %arg14[%c0_132, %c0_133, %c0_134] : memref<8x8x32xf32, #tpu.memory_space<vmem>>, vector<8x8x32xf32>
    %309 = vector.shape_cast %303 : vector<8x32xf32> to vector<8x1x32xf32>
    %310 = vector.broadcast %309 : vector<8x1x32xf32> to vector<8x8x32xf32>
    %311 = arith.addf %308, %310 : vector<8x8x32xf32>
    %cst_135 = arith.constant 0.000000e+00 : f32
    %312 = vector.broadcast %cst_135 : f32 to vector<8x8x32xf32>
    %313 = arith.maximumf %311, %312 : vector<8x8x32xf32>
    %c0_136 = arith.constant 0 : index
    %c0_137 = arith.constant 0 : index
    %314 = vector.load %arg3[%c0_136, %c0_137] : memref<1x32xf32, #tpu.memory_space<vmem>>, vector<1x32xf32>
    %315 = vector.shape_cast %314 : vector<1x32xf32> to vector<1x1x32xf32>
    %316 = vector.broadcast %315 : vector<1x1x32xf32> to vector<8x8x32xf32>
    %317 = arith.mulf %313, %316 : vector<8x8x32xf32>
    %cst_138 = arith.constant dense<0.000000e+00> : vector<8x8xf32>
    %318 = vector.multi_reduction <add>, %317, %cst_138 [2] : vector<8x8x32xf32> to vector<8x8xf32>
    %cst_139 = arith.constant dense<0xFF800000> : vector<8xf32>
    %319 = vector.multi_reduction <maximumf>, %318, %cst_139 [1] : vector<8x8xf32> to vector<8xf32>
    %320 = vector.shape_cast %319 : vector<8xf32> to vector<8x1xf32>
    %321 = vector.broadcast %320 : vector<8x1xf32> to vector<8x8xf32>
    %322 = arith.subf %318, %321 : vector<8x8xf32>
    %323 = math.exp %322 : vector<8x8xf32>
    %cst_140 = arith.constant dense<0.000000e+00> : vector<8xf32>
    %324 = vector.multi_reduction <add>, %323, %cst_140 [1] : vector<8x8xf32> to vector<8xf32>
    %325 = vector.shape_cast %324 : vector<8xf32> to vector<8x1xf32>
    %326 = vector.broadcast %325 : vector<8x1xf32> to vector<8x8xf32>
    %327 = arith.divf %323, %326 : vector<8x8xf32>
    %328 = vector.shape_cast %327 : vector<8x8xf32> to vector<8x8x1xf32>
    %c0_141 = arith.constant 0 : index
    %c0_142 = arith.constant 0 : index
    %c0_143 = arith.constant 0 : index
    %329 = vector.load %arg15[%c0_141, %c0_142, %c0_143] : memref<8x8x96xf32, #tpu.memory_space<vmem>>, vector<8x8x96xf32>
    %330 = vector.broadcast %328 : vector<8x8x1xf32> to vector<8x8x96xf32>
    %331 = arith.mulf %330, %329 : vector<8x8x96xf32>
    %cst_144 = arith.constant dense<0.000000e+00> : vector<8x96xf32>
    %332 = vector.multi_reduction <add>, %331, %cst_144 [1] : vector<8x8x96xf32> to vector<8x96xf32>
    %333 = arith.addf %300, %332 : vector<8x96xf32>
    %334 = vector.extract_strided_slice %333 {offsets = [0, 0], sizes = [8, 32], strides = [1, 1]} : vector<8x96xf32> to vector<8x32xf32>
    %335 = vector.extract_strided_slice %307 {offsets = [0, 0], sizes = [8, 32], strides = [1, 1]} : vector<8x96xf32> to vector<8x32xf32>
    %336 = arith.addf %334, %335 : vector<8x32xf32>
    %337 = arith.negf %336 : vector<8x32xf32>
    %338 = math.exp %337 : vector<8x32xf32>
    %cst_145 = arith.constant 1.000000e+00 : f32
    %339 = vector.broadcast %cst_145 : f32 to vector<8x32xf32>
    %340 = arith.addf %339, %338 : vector<8x32xf32>
    %341 = arith.divf %339, %340 : vector<8x32xf32>
    %342 = vector.extract_strided_slice %333 {offsets = [0, 32], sizes = [8, 32], strides = [1, 1]} : vector<8x96xf32> to vector<8x32xf32>
    %343 = vector.extract_strided_slice %307 {offsets = [0, 32], sizes = [8, 32], strides = [1, 1]} : vector<8x96xf32> to vector<8x32xf32>
    %344 = arith.addf %342, %343 : vector<8x32xf32>
    %345 = arith.negf %344 : vector<8x32xf32>
    %346 = math.exp %345 : vector<8x32xf32>
    %cst_146 = arith.constant 1.000000e+00 : f32
    %347 = vector.broadcast %cst_146 : f32 to vector<8x32xf32>
    %348 = arith.addf %347, %346 : vector<8x32xf32>
    %349 = arith.divf %347, %348 : vector<8x32xf32>
    %350 = vector.extract_strided_slice %333 {offsets = [0, 64], sizes = [8, 32], strides = [1, 1]} : vector<8x96xf32> to vector<8x32xf32>
    %351 = vector.extract_strided_slice %307 {offsets = [0, 64], sizes = [8, 32], strides = [1, 1]} : vector<8x96xf32> to vector<8x32xf32>
    %352 = arith.mulf %341, %351 : vector<8x32xf32>
    %353 = arith.addf %350, %352 : vector<8x32xf32>
    %354 = math.tanh %353 : vector<8x32xf32>
    %cst_147 = arith.constant 1.000000e+00 : f32
    %355 = vector.broadcast %cst_147 : f32 to vector<8x32xf32>
    %356 = arith.subf %355, %349 : vector<8x32xf32>
    %357 = arith.mulf %356, %354 : vector<8x32xf32>
    %358 = arith.mulf %349, %265 : vector<8x32xf32>
    %359 = arith.addf %357, %358 : vector<8x32xf32>
    %c0_148 = arith.constant 0 : index
    %c0_149 = arith.constant 0 : index
    %360 = vector.load %arg8[%c0_148, %c0_149] : memref<32x128xf32, #tpu.memory_space<vmem>>, vector<32x128xf32>
    %cst_150 = arith.constant dense<0.000000e+00> : vector<8x128xf32>
    %361 = tpu.matmul %359, %360, %cst_150 {dimension_numbers = #tpu.dot_dimension_numbers<[1], [0], [0], [1], [0, 0, 1, 1], [], []>} : vector<8x32xf32>, vector<32x128xf32>, vector<8x128xf32> -> vector<8x128xf32>
    %c0_151 = arith.constant 0 : index
    %c0_152 = arith.constant 0 : index
    %362 = vector.load %arg9[%c0_151, %c0_152] : memref<1x128xf32, #tpu.memory_space<vmem>>, vector<1x128xf32>
    %363 = vector.broadcast %362 : vector<1x128xf32> to vector<8x128xf32>
    %364 = arith.addf %361, %363 : vector<8x128xf32>
    %cst_153 = arith.constant dense<0xFF800000> : vector<8xf32>
    %365 = vector.multi_reduction <maximumf>, %364, %cst_153 [1] : vector<8x128xf32> to vector<8xf32>
    %366 = vector.shape_cast %365 : vector<8xf32> to vector<8x1xf32>
    %367 = vector.broadcast %366 : vector<8x1xf32> to vector<8x128xf32>
    %368 = arith.subf %364, %367 : vector<8x128xf32>
    %369 = math.exp %368 : vector<8x128xf32>
    %cst_154 = arith.constant dense<0.000000e+00> : vector<8xf32>
    %370 = vector.multi_reduction <add>, %369, %cst_154 [1] : vector<8x128xf32> to vector<8xf32>
    %371 = vector.shape_cast %370 : vector<8xf32> to vector<8x1xf32>
    %372 = math.log %371 : vector<8x1xf32>
    %373 = vector.broadcast %372 : vector<8x1xf32> to vector<8x128xf32>
    %374 = arith.subf %368, %373 : vector<8x128xf32>
    %375 = arith.index_cast %c3_i32 : i32 to index
    %c0_155 = arith.constant 0 : index
    %c0_156 = arith.constant 0 : index
    %376 = vector.load %arg11[%375, %c0_155, %c0_156] : memref<6x8x128xf32, #tpu.memory_space<vmem>>, vector<1x8x128xf32>
    %377 = vector.shape_cast %376 : vector<1x8x128xf32> to vector<8x128xf32>
    %378 = vector.shape_cast %374 : vector<8x128xf32> to vector<1x8x128xf32>
    tpu.vector_store %arg11[%375, %c0_155, %c0_156], %378 {strides = array<i32>} : memref<6x8x128xf32, #tpu.memory_space<vmem>>, vector<1x8x128xf32>,
    %379 = arith.index_cast %c3_i32 : i32 to index
    %c0_157 = arith.constant 0 : index
    %c0_158 = arith.constant 0 : index
    %380 = vector.load %arg12[%379, %c0_157, %c0_158] : memref<6x8x8xf32, #tpu.memory_space<vmem>>, vector<1x8x8xf32>
    %381 = vector.shape_cast %380 : vector<1x8x8xf32> to vector<8x8xf32>
    %382 = vector.shape_cast %327 : vector<8x8xf32> to vector<1x8x8xf32>
    tpu.vector_store %arg12[%379, %c0_157, %c0_158], %382 {strides = array<i32>} : memref<6x8x8xf32, #tpu.memory_space<vmem>>, vector<1x8x8xf32>,
    %383 = vector.broadcast %366 : vector<8x1xf32> to vector<8x128xf32>
    %384 = arith.cmpf oge, %364, %383 : vector<8x128xf32>
    %c128_i32_159 = arith.constant 128 : i32
    %385 = vector.broadcast %c128_i32_159 : i32 to vector<8x128xi32>
    %386 = arith.select %384, %14, %385 : vector<8x128xi1>, vector<8x128xi32>
    %cst_160 = arith.constant dense<2147483647> : vector<8xi32>
    %387 = vector.multi_reduction <minsi>, %386, %cst_160 [1] : vector<8x128xi32> to vector<8xi32>
    %388 = vector.shape_cast %387 : vector<8xi32> to vector<8x1xi32>
    %389 = vector.broadcast %388 : vector<8x1xi32> to vector<8x128xi32>
    %390 = arith.cmpi eq, %14, %389 : vector<8x128xi32>
    %391 = arith.extui %390 : vector<8x128xi1> to vector<8x128xi32>
    %392 = arith.sitofp %391 : vector<8x128xi32> to vector<8x128xf32>
    %c0_161 = arith.constant 0 : index
    %c0_162 = arith.constant 0 : index
    %393 = vector.load %arg7[%c0_161, %c0_162] : memref<128x96xf32, #tpu.memory_space<vmem>>, vector<128x96xf32>
    %cst_163 = arith.constant dense<0.000000e+00> : vector<8x96xf32>
    %394 = tpu.matmul %392, %393, %cst_163 {dimension_numbers = #tpu.dot_dimension_numbers<[1], [0], [0], [1], [0, 0, 1, 1], [], []>} : vector<8x128xf32>, vector<128x96xf32>, vector<8x96xf32> -> vector<8x96xf32>
    %c4_i32 = arith.constant 4 : i32
    %c0_164 = arith.constant 0 : index
    %c0_165 = arith.constant 0 : index
    %395 = vector.load %arg5[%c0_164, %c0_165] : memref<32x128xf32, #tpu.memory_space<vmem>>, vector<32x128xf32>
    %cst_166 = arith.constant dense<0.000000e+00> : vector<8x128xf32>
    %396 = tpu.matmul %359, %395, %cst_166 {dimension_numbers = #tpu.dot_dimension_numbers<[1], [0], [0], [1], [0, 0, 1, 1], [], []>} : vector<8x32xf32>, vector<32x128xf32>, vector<8x128xf32> -> vector<8x128xf32>
    %397 = vector.extract_strided_slice %396 {offsets = [0, 0], sizes = [8, 32], strides = [1, 1]} : vector<8x128xf32> to vector<8x32xf32>
    %398 = vector.extract_strided_slice %396 {offsets = [0, 32], sizes = [8, 96], strides = [1, 1]} : vector<8x128xf32> to vector<8x96xf32>
    %c0_167 = arith.constant 0 : index
    %c0_168 = arith.constant 0 : index
    %399 = vector.load %arg6[%c0_167, %c0_168] : memref<1x96xf32, #tpu.memory_space<vmem>>, vector<1x96xf32>
    %400 = vector.broadcast %399 : vector<1x96xf32> to vector<8x96xf32>
    %401 = arith.addf %398, %400 : vector<8x96xf32>
    %c0_169 = arith.constant 0 : index
    %c0_170 = arith.constant 0 : index
    %c0_171 = arith.constant 0 : index
    %402 = vector.load %arg14[%c0_169, %c0_170, %c0_171] : memref<8x8x32xf32, #tpu.memory_space<vmem>>, vector<8x8x32xf32>
    %403 = vector.shape_cast %397 : vector<8x32xf32> to vector<8x1x32xf32>
    %404 = vector.broadcast %403 : vector<8x1x32xf32> to vector<8x8x32xf32>
    %405 = arith.addf %402, %404 : vector<8x8x32xf32>
    %cst_172 = arith.constant 0.000000e+00 : f32
    %406 = vector.broadcast %cst_172 : f32 to vector<8x8x32xf32>
    %407 = arith.maximumf %405, %406 : vector<8x8x32xf32>
    %c0_173 = arith.constant 0 : index
    %c0_174 = arith.constant 0 : index
    %408 = vector.load %arg3[%c0_173, %c0_174] : memref<1x32xf32, #tpu.memory_space<vmem>>, vector<1x32xf32>
    %409 = vector.shape_cast %408 : vector<1x32xf32> to vector<1x1x32xf32>
    %410 = vector.broadcast %409 : vector<1x1x32xf32> to vector<8x8x32xf32>
    %411 = arith.mulf %407, %410 : vector<8x8x32xf32>
    %cst_175 = arith.constant dense<0.000000e+00> : vector<8x8xf32>
    %412 = vector.multi_reduction <add>, %411, %cst_175 [2] : vector<8x8x32xf32> to vector<8x8xf32>
    %cst_176 = arith.constant dense<0xFF800000> : vector<8xf32>
    %413 = vector.multi_reduction <maximumf>, %412, %cst_176 [1] : vector<8x8xf32> to vector<8xf32>
    %414 = vector.shape_cast %413 : vector<8xf32> to vector<8x1xf32>
    %415 = vector.broadcast %414 : vector<8x1xf32> to vector<8x8xf32>
    %416 = arith.subf %412, %415 : vector<8x8xf32>
    %417 = math.exp %416 : vector<8x8xf32>
    %cst_177 = arith.constant dense<0.000000e+00> : vector<8xf32>
    %418 = vector.multi_reduction <add>, %417, %cst_177 [1] : vector<8x8xf32> to vector<8xf32>
    %419 = vector.shape_cast %418 : vector<8xf32> to vector<8x1xf32>
    %420 = vector.broadcast %419 : vector<8x1xf32> to vector<8x8xf32>
    %421 = arith.divf %417, %420 : vector<8x8xf32>
    %422 = vector.shape_cast %421 : vector<8x8xf32> to vector<8x8x1xf32>
    %c0_178 = arith.constant 0 : index
    %c0_179 = arith.constant 0 : index
    %c0_180 = arith.constant 0 : index
    %423 = vector.load %arg15[%c0_178, %c0_179, %c0_180] : memref<8x8x96xf32, #tpu.memory_space<vmem>>, vector<8x8x96xf32>
    %424 = vector.broadcast %422 : vector<8x8x1xf32> to vector<8x8x96xf32>
    %425 = arith.mulf %424, %423 : vector<8x8x96xf32>
    %cst_181 = arith.constant dense<0.000000e+00> : vector<8x96xf32>
    %426 = vector.multi_reduction <add>, %425, %cst_181 [1] : vector<8x8x96xf32> to vector<8x96xf32>
    %427 = arith.addf %394, %426 : vector<8x96xf32>
    %428 = vector.extract_strided_slice %427 {offsets = [0, 0], sizes = [8, 32], strides = [1, 1]} : vector<8x96xf32> to vector<8x32xf32>
    %429 = vector.extract_strided_slice %401 {offsets = [0, 0], sizes = [8, 32], strides = [1, 1]} : vector<8x96xf32> to vector<8x32xf32>
    %430 = arith.addf %428, %429 : vector<8x32xf32>
    %431 = arith.negf %430 : vector<8x32xf32>
    %432 = math.exp %431 : vector<8x32xf32>
    %cst_182 = arith.constant 1.000000e+00 : f32
    %433 = vector.broadcast %cst_182 : f32 to vector<8x32xf32>
    %434 = arith.addf %433, %432 : vector<8x32xf32>
    %435 = arith.divf %433, %434 : vector<8x32xf32>
    %436 = vector.extract_strided_slice %427 {offsets = [0, 32], sizes = [8, 32], strides = [1, 1]} : vector<8x96xf32> to vector<8x32xf32>
    %437 = vector.extract_strided_slice %401 {offsets = [0, 32], sizes = [8, 32], strides = [1, 1]} : vector<8x96xf32> to vector<8x32xf32>
    %438 = arith.addf %436, %437 : vector<8x32xf32>
    %439 = arith.negf %438 : vector<8x32xf32>
    %440 = math.exp %439 : vector<8x32xf32>
    %cst_183 = arith.constant 1.000000e+00 : f32
    %441 = vector.broadcast %cst_183 : f32 to vector<8x32xf32>
    %442 = arith.addf %441, %440 : vector<8x32xf32>
    %443 = arith.divf %441, %442 : vector<8x32xf32>
    %444 = vector.extract_strided_slice %427 {offsets = [0, 64], sizes = [8, 32], strides = [1, 1]} : vector<8x96xf32> to vector<8x32xf32>
    %445 = vector.extract_strided_slice %401 {offsets = [0, 64], sizes = [8, 32], strides = [1, 1]} : vector<8x96xf32> to vector<8x32xf32>
    %446 = arith.mulf %435, %445 : vector<8x32xf32>
    %447 = arith.addf %444, %446 : vector<8x32xf32>
    %448 = math.tanh %447 : vector<8x32xf32>
    %cst_184 = arith.constant 1.000000e+00 : f32
    %449 = vector.broadcast %cst_184 : f32 to vector<8x32xf32>
    %450 = arith.subf %449, %443 : vector<8x32xf32>
    %451 = arith.mulf %450, %448 : vector<8x32xf32>
    %452 = arith.mulf %443, %359 : vector<8x32xf32>
    %453 = arith.addf %451, %452 : vector<8x32xf32>
    %c0_185 = arith.constant 0 : index
    %c0_186 = arith.constant 0 : index
    %454 = vector.load %arg8[%c0_185, %c0_186] : memref<32x128xf32, #tpu.memory_space<vmem>>, vector<32x128xf32>
    %cst_187 = arith.constant dense<0.000000e+00> : vector<8x128xf32>
    %455 = tpu.matmul %453, %454, %cst_187 {dimension_numbers = #tpu.dot_dimension_numbers<[1], [0], [0], [1], [0, 0, 1, 1], [], []>} : vector<8x32xf32>, vector<32x128xf32>, vector<8x128xf32> -> vector<8x128xf32>
    %c0_188 = arith.constant 0 : index
    %c0_189 = arith.constant 0 : index
    %456 = vector.load %arg9[%c0_188, %c0_189] : memref<1x128xf32, #tpu.memory_space<vmem>>, vector<1x128xf32>
    %457 = vector.broadcast %456 : vector<1x128xf32> to vector<8x128xf32>
    %458 = arith.addf %455, %457 : vector<8x128xf32>
    %cst_190 = arith.constant dense<0xFF800000> : vector<8xf32>
    %459 = vector.multi_reduction <maximumf>, %458, %cst_190 [1] : vector<8x128xf32> to vector<8xf32>
    %460 = vector.shape_cast %459 : vector<8xf32> to vector<8x1xf32>
    %461 = vector.broadcast %460 : vector<8x1xf32> to vector<8x128xf32>
    %462 = arith.subf %458, %461 : vector<8x128xf32>
    %463 = math.exp %462 : vector<8x128xf32>
    %cst_191 = arith.constant dense<0.000000e+00> : vector<8xf32>
    %464 = vector.multi_reduction <add>, %463, %cst_191 [1] : vector<8x128xf32> to vector<8xf32>
    %465 = vector.shape_cast %464 : vector<8xf32> to vector<8x1xf32>
    %466 = math.log %465 : vector<8x1xf32>
    %467 = vector.broadcast %466 : vector<8x1xf32> to vector<8x128xf32>
    %468 = arith.subf %462, %467 : vector<8x128xf32>
    %469 = arith.index_cast %c4_i32 : i32 to index
    %c0_192 = arith.constant 0 : index
    %c0_193 = arith.constant 0 : index
    %470 = vector.load %arg11[%469, %c0_192, %c0_193] : memref<6x8x128xf32, #tpu.memory_space<vmem>>, vector<1x8x128xf32>
    %471 = vector.shape_cast %470 : vector<1x8x128xf32> to vector<8x128xf32>
    %472 = vector.shape_cast %468 : vector<8x128xf32> to vector<1x8x128xf32>
    tpu.vector_store %arg11[%469, %c0_192, %c0_193], %472 {strides = array<i32>} : memref<6x8x128xf32, #tpu.memory_space<vmem>>, vector<1x8x128xf32>,
    %473 = arith.index_cast %c4_i32 : i32 to index
    %c0_194 = arith.constant 0 : index
    %c0_195 = arith.constant 0 : index
    %474 = vector.load %arg12[%473, %c0_194, %c0_195] : memref<6x8x8xf32, #tpu.memory_space<vmem>>, vector<1x8x8xf32>
    %475 = vector.shape_cast %474 : vector<1x8x8xf32> to vector<8x8xf32>
    %476 = vector.shape_cast %421 : vector<8x8xf32> to vector<1x8x8xf32>
    tpu.vector_store %arg12[%473, %c0_194, %c0_195], %476 {strides = array<i32>} : memref<6x8x8xf32, #tpu.memory_space<vmem>>, vector<1x8x8xf32>,
    %477 = vector.broadcast %460 : vector<8x1xf32> to vector<8x128xf32>
    %478 = arith.cmpf oge, %458, %477 : vector<8x128xf32>
    %c128_i32_196 = arith.constant 128 : i32
    %479 = vector.broadcast %c128_i32_196 : i32 to vector<8x128xi32>
    %480 = arith.select %478, %14, %479 : vector<8x128xi1>, vector<8x128xi32>
    %cst_197 = arith.constant dense<2147483647> : vector<8xi32>
    %481 = vector.multi_reduction <minsi>, %480, %cst_197 [1] : vector<8x128xi32> to vector<8xi32>
    %482 = vector.shape_cast %481 : vector<8xi32> to vector<8x1xi32>
    %483 = vector.broadcast %482 : vector<8x1xi32> to vector<8x128xi32>
    %484 = arith.cmpi eq, %14, %483 : vector<8x128xi32>
    %485 = arith.extui %484 : vector<8x128xi1> to vector<8x128xi32>
    %486 = arith.sitofp %485 : vector<8x128xi32> to vector<8x128xf32>
    %c0_198 = arith.constant 0 : index
    %c0_199 = arith.constant 0 : index
    %487 = vector.load %arg7[%c0_198, %c0_199] : memref<128x96xf32, #tpu.memory_space<vmem>>, vector<128x96xf32>
    %cst_200 = arith.constant dense<0.000000e+00> : vector<8x96xf32>
    %488 = tpu.matmul %486, %487, %cst_200 {dimension_numbers = #tpu.dot_dimension_numbers<[1], [0], [0], [1], [0, 0, 1, 1], [], []>} : vector<8x128xf32>, vector<128x96xf32>, vector<8x96xf32> -> vector<8x96xf32>
    %c5_i32 = arith.constant 5 : i32
    %c0_201 = arith.constant 0 : index
    %c0_202 = arith.constant 0 : index
    %489 = vector.load %arg5[%c0_201, %c0_202] : memref<32x128xf32, #tpu.memory_space<vmem>>, vector<32x128xf32>
    %cst_203 = arith.constant dense<0.000000e+00> : vector<8x128xf32>
    %490 = tpu.matmul %453, %489, %cst_203 {dimension_numbers = #tpu.dot_dimension_numbers<[1], [0], [0], [1], [0, 0, 1, 1], [], []>} : vector<8x32xf32>, vector<32x128xf32>, vector<8x128xf32> -> vector<8x128xf32>
    %491 = vector.extract_strided_slice %490 {offsets = [0, 0], sizes = [8, 32], strides = [1, 1]} : vector<8x128xf32> to vector<8x32xf32>
    %492 = vector.extract_strided_slice %490 {offsets = [0, 32], sizes = [8, 96], strides = [1, 1]} : vector<8x128xf32> to vector<8x96xf32>
    %c0_204 = arith.constant 0 : index
    %c0_205 = arith.constant 0 : index
    %493 = vector.load %arg6[%c0_204, %c0_205] : memref<1x96xf32, #tpu.memory_space<vmem>>, vector<1x96xf32>
    %494 = vector.broadcast %493 : vector<1x96xf32> to vector<8x96xf32>
    %495 = arith.addf %492, %494 : vector<8x96xf32>
    %c0_206 = arith.constant 0 : index
    %c0_207 = arith.constant 0 : index
    %c0_208 = arith.constant 0 : index
    %496 = vector.load %arg14[%c0_206, %c0_207, %c0_208] : memref<8x8x32xf32, #tpu.memory_space<vmem>>, vector<8x8x32xf32>
    %497 = vector.shape_cast %491 : vector<8x32xf32> to vector<8x1x32xf32>
    %498 = vector.broadcast %497 : vector<8x1x32xf32> to vector<8x8x32xf32>
    %499 = arith.addf %496, %498 : vector<8x8x32xf32>
    %cst_209 = arith.constant 0.000000e+00 : f32
    %500 = vector.broadcast %cst_209 : f32 to vector<8x8x32xf32>
    %501 = arith.maximumf %499, %500 : vector<8x8x32xf32>
    %c0_210 = arith.constant 0 : index
    %c0_211 = arith.constant 0 : index
    %502 = vector.load %arg3[%c0_210, %c0_211] : memref<1x32xf32, #tpu.memory_space<vmem>>, vector<1x32xf32>
    %503 = vector.shape_cast %502 : vector<1x32xf32> to vector<1x1x32xf32>
    %504 = vector.broadcast %503 : vector<1x1x32xf32> to vector<8x8x32xf32>
    %505 = arith.mulf %501, %504 : vector<8x8x32xf32>
    %cst_212 = arith.constant dense<0.000000e+00> : vector<8x8xf32>
    %506 = vector.multi_reduction <add>, %505, %cst_212 [2] : vector<8x8x32xf32> to vector<8x8xf32>
    %cst_213 = arith.constant dense<0xFF800000> : vector<8xf32>
    %507 = vector.multi_reduction <maximumf>, %506, %cst_213 [1] : vector<8x8xf32> to vector<8xf32>
    %508 = vector.shape_cast %507 : vector<8xf32> to vector<8x1xf32>
    %509 = vector.broadcast %508 : vector<8x1xf32> to vector<8x8xf32>
    %510 = arith.subf %506, %509 : vector<8x8xf32>
    %511 = math.exp %510 : vector<8x8xf32>
    %cst_214 = arith.constant dense<0.000000e+00> : vector<8xf32>
    %512 = vector.multi_reduction <add>, %511, %cst_214 [1] : vector<8x8xf32> to vector<8xf32>
    %513 = vector.shape_cast %512 : vector<8xf32> to vector<8x1xf32>
    %514 = vector.broadcast %513 : vector<8x1xf32> to vector<8x8xf32>
    %515 = arith.divf %511, %514 : vector<8x8xf32>
    %516 = vector.shape_cast %515 : vector<8x8xf32> to vector<8x8x1xf32>
    %c0_215 = arith.constant 0 : index
    %c0_216 = arith.constant 0 : index
    %c0_217 = arith.constant 0 : index
    %517 = vector.load %arg15[%c0_215, %c0_216, %c0_217] : memref<8x8x96xf32, #tpu.memory_space<vmem>>, vector<8x8x96xf32>
    %518 = vector.broadcast %516 : vector<8x8x1xf32> to vector<8x8x96xf32>
    %519 = arith.mulf %518, %517 : vector<8x8x96xf32>
    %cst_218 = arith.constant dense<0.000000e+00> : vector<8x96xf32>
    %520 = vector.multi_reduction <add>, %519, %cst_218 [1] : vector<8x8x96xf32> to vector<8x96xf32>
    %521 = arith.addf %488, %520 : vector<8x96xf32>
    %522 = vector.extract_strided_slice %521 {offsets = [0, 0], sizes = [8, 32], strides = [1, 1]} : vector<8x96xf32> to vector<8x32xf32>
    %523 = vector.extract_strided_slice %495 {offsets = [0, 0], sizes = [8, 32], strides = [1, 1]} : vector<8x96xf32> to vector<8x32xf32>
    %524 = arith.addf %522, %523 : vector<8x32xf32>
    %525 = arith.negf %524 : vector<8x32xf32>
    %526 = math.exp %525 : vector<8x32xf32>
    %cst_219 = arith.constant 1.000000e+00 : f32
    %527 = vector.broadcast %cst_219 : f32 to vector<8x32xf32>
    %528 = arith.addf %527, %526 : vector<8x32xf32>
    %529 = arith.divf %527, %528 : vector<8x32xf32>
    %530 = vector.extract_strided_slice %521 {offsets = [0, 32], sizes = [8, 32], strides = [1, 1]} : vector<8x96xf32> to vector<8x32xf32>
    %531 = vector.extract_strided_slice %495 {offsets = [0, 32], sizes = [8, 32], strides = [1, 1]} : vector<8x96xf32> to vector<8x32xf32>
    %532 = arith.addf %530, %531 : vector<8x32xf32>
    %533 = arith.negf %532 : vector<8x32xf32>
    %534 = math.exp %533 : vector<8x32xf32>
    %cst_220 = arith.constant 1.000000e+00 : f32
    %535 = vector.broadcast %cst_220 : f32 to vector<8x32xf32>
    %536 = arith.addf %535, %534 : vector<8x32xf32>
    %537 = arith.divf %535, %536 : vector<8x32xf32>
    %538 = vector.extract_strided_slice %521 {offsets = [0, 64], sizes = [8, 32], strides = [1, 1]} : vector<8x96xf32> to vector<8x32xf32>
    %539 = vector.extract_strided_slice %495 {offsets = [0, 64], sizes = [8, 32], strides = [1, 1]} : vector<8x96xf32> to vector<8x32xf32>
    %540 = arith.mulf %529, %539 : vector<8x32xf32>
    %541 = arith.addf %538, %540 : vector<8x32xf32>
    %542 = math.tanh %541 : vector<8x32xf32>
    %cst_221 = arith.constant 1.000000e+00 : f32
    %543 = vector.broadcast %cst_221 : f32 to vector<8x32xf32>
    %544 = arith.subf %543, %537 : vector<8x32xf32>
    %545 = arith.mulf %544, %542 : vector<8x32xf32>
    %546 = arith.mulf %537, %453 : vector<8x32xf32>
    %547 = arith.addf %545, %546 : vector<8x32xf32>
    %c0_222 = arith.constant 0 : index
    %c0_223 = arith.constant 0 : index
    %548 = vector.load %arg8[%c0_222, %c0_223] : memref<32x128xf32, #tpu.memory_space<vmem>>, vector<32x128xf32>
    %cst_224 = arith.constant dense<0.000000e+00> : vector<8x128xf32>
    %549 = tpu.matmul %547, %548, %cst_224 {dimension_numbers = #tpu.dot_dimension_numbers<[1], [0], [0], [1], [0, 0, 1, 1], [], []>} : vector<8x32xf32>, vector<32x128xf32>, vector<8x128xf32> -> vector<8x128xf32>
    %c0_225 = arith.constant 0 : index
    %c0_226 = arith.constant 0 : index
    %550 = vector.load %arg9[%c0_225, %c0_226] : memref<1x128xf32, #tpu.memory_space<vmem>>, vector<1x128xf32>
    %551 = vector.broadcast %550 : vector<1x128xf32> to vector<8x128xf32>
    %552 = arith.addf %549, %551 : vector<8x128xf32>
    %cst_227 = arith.constant dense<0xFF800000> : vector<8xf32>
    %553 = vector.multi_reduction <maximumf>, %552, %cst_227 [1] : vector<8x128xf32> to vector<8xf32>
    %554 = vector.shape_cast %553 : vector<8xf32> to vector<8x1xf32>
    %555 = vector.broadcast %554 : vector<8x1xf32> to vector<8x128xf32>
    %556 = arith.subf %552, %555 : vector<8x128xf32>
    %557 = math.exp %556 : vector<8x128xf32>
    %cst_228 = arith.constant dense<0.000000e+00> : vector<8xf32>
    %558 = vector.multi_reduction <add>, %557, %cst_228 [1] : vector<8x128xf32> to vector<8xf32>
    %559 = vector.shape_cast %558 : vector<8xf32> to vector<8x1xf32>
    %560 = math.log %559 : vector<8x1xf32>
    %561 = vector.broadcast %560 : vector<8x1xf32> to vector<8x128xf32>
    %562 = arith.subf %556, %561 : vector<8x128xf32>
    %563 = arith.index_cast %c5_i32 : i32 to index
    %c0_229 = arith.constant 0 : index
    %c0_230 = arith.constant 0 : index
    %564 = vector.load %arg11[%563, %c0_229, %c0_230] : memref<6x8x128xf32, #tpu.memory_space<vmem>>, vector<1x8x128xf32>
    %565 = vector.shape_cast %564 : vector<1x8x128xf32> to vector<8x128xf32>
    %566 = vector.shape_cast %562 : vector<8x128xf32> to vector<1x8x128xf32>
    tpu.vector_store %arg11[%563, %c0_229, %c0_230], %566 {strides = array<i32>} : memref<6x8x128xf32, #tpu.memory_space<vmem>>, vector<1x8x128xf32>,
    %567 = arith.index_cast %c5_i32 : i32 to index
    %c0_231 = arith.constant 0 : index
    %c0_232 = arith.constant 0 : index
    %568 = vector.load %arg12[%567, %c0_231, %c0_232] : memref<6x8x8xf32, #tpu.memory_space<vmem>>, vector<1x8x8xf32>
    %569 = vector.shape_cast %568 : vector<1x8x8xf32> to vector<8x8xf32>
    %570 = vector.shape_cast %515 : vector<8x8xf32> to vector<1x8x8xf32>
    tpu.vector_store %arg12[%567, %c0_231, %c0_232], %570 {strides = array<i32>} : memref<6x8x8xf32, #tpu.memory_space<vmem>>, vector<1x8x8xf32>,
    %571 = vector.broadcast %554 : vector<8x1xf32> to vector<8x128xf32>
    %572 = arith.cmpf oge, %552, %571 : vector<8x128xf32>
    %c128_i32_233 = arith.constant 128 : i32
    %573 = vector.broadcast %c128_i32_233 : i32 to vector<8x128xi32>
    %574 = arith.select %572, %14, %573 : vector<8x128xi1>, vector<8x128xi32>
    %cst_234 = arith.constant dense<2147483647> : vector<8xi32>
    %575 = vector.multi_reduction <minsi>, %574, %cst_234 [1] : vector<8x128xi32> to vector<8xi32>
    %576 = vector.shape_cast %575 : vector<8xi32> to vector<8x1xi32>
    %577 = vector.broadcast %576 : vector<8x1xi32> to vector<8x128xi32>
    %578 = arith.cmpi eq, %14, %577 : vector<8x128xi32>
    %579 = arith.extui %578 : vector<8x128xi1> to vector<8x128xi32>
    %580 = arith.sitofp %579 : vector<8x128xi32> to vector<8x128xf32>
    %c0_235 = arith.constant 0 : index
    %c0_236 = arith.constant 0 : index
    %581 = vector.load %arg7[%c0_235, %c0_236] : memref<128x96xf32, #tpu.memory_space<vmem>>, vector<128x96xf32>
    %cst_237 = arith.constant dense<0.000000e+00> : vector<8x96xf32>
    %582 = tpu.matmul %580, %581, %cst_237 {dimension_numbers = #tpu.dot_dimension_numbers<[1], [0], [0], [1], [0, 0, 1, 1], [], []>} : vector<8x128xf32>, vector<128x96xf32>, vector<8x96xf32> -> vector<8x96xf32>
    %c6_i32 = arith.constant 6 : i32
    %c0_238 = arith.constant 0 : index
    %c0_239 = arith.constant 0 : index
    %c0_240 = arith.constant 0 : index
    %583 = vector.load %arg13[%c0_238, %c0_239, %c0_240] : memref<1x8x32xf32, #tpu.memory_space<vmem>>, vector<1x8x32xf32>
    %584 = vector.shape_cast %583 : vector<1x8x32xf32> to vector<8x32xf32>
    %585 = vector.shape_cast %547 : vector<8x32xf32> to vector<1x8x32xf32>
    tpu.vector_store %arg13[%c0_238, %c0_239, %c0_240], %585 {strides = array<i32>} : memref<1x8x32xf32, #tpu.memory_space<vmem>>, vector<1x8x32xf32>,
    return
  }
  func.func @transform_0(%arg0: i32) -> (i32, i32) {
    %c0_i32 = arith.constant 0 : i32
    %c0_i32_0 = arith.constant 0 : i32
    %c0_i32_1 = arith.constant 0 : i32
    return %c0_i32, %c0_i32_0 : i32, i32
  }
  func.func @transform_1(%arg0: i32) -> (i32, i32) {
    %c0_i32 = arith.constant 0 : i32
    %c0_i32_0 = arith.constant 0 : i32
    %c0_i32_1 = arith.constant 0 : i32
    return %c0_i32, %c0_i32_0 : i32, i32
  }
  func.func @transform_2(%arg0: i32) -> (i32, i32) {
    %c0_i32 = arith.constant 0 : i32
    %c0_i32_0 = arith.constant 0 : i32
    %c0_i32_1 = arith.constant 0 : i32
    return %c0_i32, %c0_i32_0 : i32, i32
  }
  func.func @transform_3(%arg0: i32) -> (i32, i32) {
    %c0_i32 = arith.constant 0 : i32
    %c0_i32_0 = arith.constant 0 : i32
    %c0_i32_1 = arith.constant 0 : i32
    return %c0_i32, %c0_i32_0 : i32, i32
  }
  func.func @transform_4(%arg0: i32) -> (i32, i32) {
    %c0_i32 = arith.constant 0 : i32
    %c0_i32_0 = arith.constant 0 : i32
    %c0_i32_1 = arith.constant 0 : i32
    return %c0_i32, %c0_i32_0 : i32, i32
  }
  func.func @transform_5(%arg0: i32) -> (i32, i32) {
    %c0_i32 = arith.constant 0 : i32
    %c0_i32_0 = arith.constant 0 : i32
    %c0_i32_1 = arith.constant 0 : i32
    return %c0_i32, %c0_i32_0 : i32, i32
  }
  func.func @transform_6(%arg0: i32) -> (i32, i32) {
    %c0_i32 = arith.constant 0 : i32
    %c0_i32_0 = arith.constant 0 : i32
    %c0_i32_1 = arith.constant 0 : i32
    return %c0_i32, %c0_i32_0 : i32, i32
  }
  func.func @transform_7(%arg0: i32) -> (i32, i32) {
    %c0_i32 = arith.constant 0 : i32
    %c0_i32_0 = arith.constant 0 : i32
    %c0_i32_1 = arith.constant 0 : i32
    return %c0_i32, %c0_i32_0 : i32, i32
  }
  func.func @transform_8(%arg0: i32) -> (i32, i32) {
    %c0_i32 = arith.constant 0 : i32
    %c0_i32_0 = arith.constant 0 : i32
    %c0_i32_1 = arith.constant 0 : i32
    return %c0_i32, %c0_i32_0 : i32, i32
  }
  func.func @transform_9(%arg0: i32) -> (i32, i32, i32) {
    %c0_i32 = arith.constant 0 : i32
    %c0_i32_0 = arith.constant 0 : i32
    %c0_i32_1 = arith.constant 0 : i32
    %c0_i32_2 = arith.constant 0 : i32
    return %c0_i32, %c0_i32_0, %c0_i32_1 : i32, i32, i32
  }
  func.func @transform_10(%arg0: i32) -> (i32, i32, i32) {
    %c0_i32 = arith.constant 0 : i32
    %c0_i32_0 = arith.constant 0 : i32
    %c0_i32_1 = arith.constant 0 : i32
    %c0_i32_2 = arith.constant 0 : i32
    return %c0_i32, %c0_i32_0, %c0_i32_1 : i32, i32, i32
  }
  func.func @transform_11(%arg0: i32) -> (i32, i32, i32) {
    %c0_i32 = arith.constant 0 : i32
    %c0_i32_0 = arith.constant 0 : i32
    %c0_i32_1 = arith.constant 0 : i32
    %c0_i32_2 = arith.constant 0 : i32
    return %c0_i32, %c0_i32_0, %c0_i32_1 : i32, i32, i32
  }
  func.func @transform_12(%arg0: i32) -> (i32, i32, i32) {
    %c0_i32 = arith.constant 0 : i32
    %c0_i32_0 = arith.constant 0 : i32
    %c0_i32_1 = arith.constant 0 : i32
    %c0_i32_2 = arith.constant 0 : i32
    return %c0_i32, %c0_i32_0, %c0_i32_1 : i32, i32, i32
  }
}

</mosaic_0001>

<bundles_post_ra>
// kernel: tpu_custom_call.1
= control target key start
LH: loop header
LB: loop body
LE: loop exit
PB: predicated region body
PF: predicated region fallthrough
CT: control target
= control target key end

     0   :  { %18 = vsyncpa [#allocation5], 0  ;;  %vm50_vm0 = vcmask 130048   ;;  %s8741_s0 = inlined_call_operand.vmem [shape: f32[16,32], index: 0, kind: input, shape index: {}]   ;;  %s8742_s1 = inlined_call_operand.vmem [shape: f32[1,32], index: 1, kind: input, shape index: {}]   ;;  %s8743_s2 = inlined_call_operand.vmem [shape: f32[1,32], index: 2, kind: input, shape index: {}]   ;;  %s8744_s3 = inlined_call_operand.vmem [shape: f32[16,96], index: 3, kind: input, shape index: {}]   ;;  %s8745_s4 = inlined_call_operand.vmem [shape: f32[32,128], index: 4, kind: input, shape index: {}]   ;;  %s8746_s5 = inlined_call_operand.vmem [shape: f32[1,96], index: 5, kind: input, shape index: {}]   ;;  %s8747_s6 = inlined_call_operand.vmem [shape: f32[128,96], index: 6, kind: input, shape index: {}]   ;;  %s8748_s7 = inlined_call_operand.vmem [shape: f32[32,128], index: 7, kind: input, shape index: {}]   ;;  %s8749_s8 = inlined_call_operand.vmem [shape: f32[1,128], index: 8, kind: input, shape index: {}]   ;;  %s8750_s9 = inlined_call_operand.vmem [shape: f32[8,8,16], index: 9, kind: input, shape index: {}]   ;;  %s8751_s10 = inlined_call_operand.hbm [shape: f32[6,8,128], index: 10, kind: output, shape index: {0}]   ;;  %s8752_s11 = inlined_call_operand.hbm [shape: f32[6,8,8], index: 11, kind: output, shape index: {1}]   ;;  %s8753_s12 = inlined_call_operand.hbm [shape: f32[1,8,32], index: 12, kind: output, shape index: {2}]  }
   0x1   :  { %v48_v0 = vld [vmem:[%s8741_s0] sm:$0xff]  ;;  %v49_v1 = vld [vmem:[%s8741_s0 + $0x8] sm:$0xff]  ;;  %v42_v9 = vld [vmem:[%s8750_s9 + $0x10] sm:$0xff] }
   0x2   :  { %v40_v2 = vld [vmem:[%s8750_s9] sm:$0xff]  ;;  %v6168_v3 = vpack.c.bf16 %v49_v1, %v48_v0  ;;  %v205_v5 = vld [vmem:[%s8744_s3 + $0x8] sm:$0xff] }
   0x3   :  { %5833 = vmatprep.mubr.msk.f32.mxu0 %vm50_vm0, %v40_v2  ;;  %v204_v4 = vld [vmem:[%s8744_s3] sm:$0xff]  ;;  %v41_v8 = vld [vmem:[%s8750_s9 + $0x8] sm:$0xff] }
   0x4   :  { %v6172_v6 = vpack.c.bf16 %v205_v5, %v204_v4  ;;  %v44_v7 = vld [vmem:[%s8750_s9 + $0x20] sm:$0xff]  ;;  %6169 = vmatprep.subr.bf16.mxu0 %v6168_v3 }
   0x5   :  { %5855 = vmatprep.mubr.msk.f32.mxu1 %vm50_vm0, %v44_v7  ;;  %6171 = vmatpush3.bf16.msra.mxu0 %v6168_v3 }
   0x6   :  { %6368 = vmatprep.subr.bf16.mxu1 %v6172_v6  ;;  %6173 = vmatprep.subr.bf16.mxu0 %v6172_v6 }
   0x7   :  { %6369 = vmatpush3.bf16.msra.mxu1 %v6172_v6 }
   0x8   :  { %19 = vsyncpa [#allocation7], 0  ;;  %v8758_v10 = vmov 0.0|0.0   ;;  %5834 = vmatmul.mubr.msk.f32.vlgmr.msra.gmra.mrb[0].mxu0 %vm50_vm0, %v41_v8  ;;  %v43_v11 = vld [vmem:[%s8750_s9 + $0x18] sm:$0xff]  ;;  %v45_v12 = vld [vmem:[%s8750_s9 + $0x28] sm:$0xff]  ;;  %vm6709_vm1 = vmmov 0   ;;  %v320_v38 = vlaneseq }
   0x9   :  { %6182 = vmatprep.subr.bf16.mxu1 %v8758_v10  ;;  %6175 = vmatpush3.bf16.msra.mxu0 %v6172_v6  ;;  %v46_v13 = vld [vmem:[%s8750_s9 + $0x30] sm:$0xff]  ;;  %v47_v14 = vld [vmem:[%s8750_s9 + $0x38] sm:$0xff]  ;;  %v8756_v15 = vmov 0.0   ;;  %v327_v16 = vld [vmem:[%s8745_s4] sm:$0xff]  ;;  %vm195_vm2 = vcmask 261120   ;;  %vm311_vm3 = vcmask 785408  }
   0xa   :  { %5836 = vmatprep.mubr.msk.f32.mxu0 %vm50_vm0, %v42_v9  ;;  %6176 = vmatprep.subr.bf16.mxu0 %v8758_v10  ;;  %v328_v17 = vld [vmem:[%s8745_s4 + $0x8] sm:$0xff]  ;;  %v329_v19 = vld [vmem:[%s8745_s4 + $0x10] sm:$0xff]  ;;  %v330_v20 = vld [vmem:[%s8745_s4 + $0x18] sm:$0xff]  ;;  %v6711_v39 = vmov 1966171168   ;;  %v6877_v45 = vshrl.u32 %v320_v38, 7 }
   0xb   :  { %5856 = vmatmul.mubr.msk.f32.vlgmr.msra.gmra.mrb[0].mxu1 %vm50_vm0, %v45_v12  ;;  %v6177_v18 = vpack.c.bf16 %v328_v17, %v327_v16  ;;  %v6180_v21 = vpack.c.bf16 %v330_v20, %v329_v19  ;;  %v5609_v22 = vld [vmem:[%s8742_s1] ss:$0 sm:$0xff]  ;;  %v425_v40 = vunpack.c.l.s4 %v6711_v39  ;;  %vm607_vm4 = vcmask 1041409   ;;  %s6713_s3 = smov 32   ;;  %s6714_s18 = smov 96  }
   0xc   :  { %5858 = vmatprep.mubr.msk.f32.mxu1 %vm50_vm0, %v46_v13  ;;  %5837 = vmatmul.mubr.msk.f32.gmra.mrb[2].mxu0 %vm50_vm0, %v43_v11  ;;  %v6892_v53 = vsub.s32 0, %v6877_v45  ;;  %vm609_vm5 = vcmask 1042434   ;;  %vm611_vm6 = vcmask 1043459   ;;  %vm613_vm7 = vcmask 1044484   ;;  %s6715_s21 = smov 64  }
   0xd   :  { %5839 = vmatprep.mubr.msk.f32.mxu0 %vm50_vm0, %v44_v7  ;;  %v426_v44 = vunpack.c.0.s8 %v425_v40  ;;  %vm615_vm8 = vcmask 1045509   ;;  %vm617_vm9 = vcmask 1046534   ;;  %vm619_vm10 = vcmask 1047559  }
   0xe   :  { %vm622_vm11 = vcmask 64512  }
   0xf   :  { %5859 = vmatmul.mubr.msk.f32.gmra.mrb[2].mxu1 %vm50_vm0, %v47_v14  ;;  %v6882_v48 = vsub.s32 %v426_v44, %v6877_v45 }
  0x10   :  { %5880 = vmatprep.mubr.msk.f32.mxu1 %vm6709_vm1, %v8756_v15  ;;  %5840 = vmatmul.mubr.msk.f32.gmra.mrb[4].mxu0 %vm50_vm0, %v45_v12 }
  0x11   :  { %5842 = vmatprep.mubr.msk.f32.mxu0 %vm50_vm0, %v46_v13 }
  0x14   :  { %5843 = vmatmul.mubr.msk.f32.gmra.mrb[6].mxu0 %vm50_vm0, %v47_v14 }
  0x15   :  { %5849 = vmatprep.mubr.msk.f32.mxu0 %vm50_vm0, %v40_v2 }
  0x18   :  { %5850 = vmatmul.mubr.msk.f32.vlgmr.msra.gmra.mrb[8].mxu0 %vm50_vm0, %v41_v8 }
  0x19   :  { %6178 = vmatpush3.bf16.msra.mxu0 %v6177_v18  ;;  %5852 = vmatprep.mubr.msk.f32.mxu0 %vm50_vm0, %v42_v9  ;;  %v6915_v9 = vld [vmem:[%s8743_s2] ss:$0 sm:$0xff] }
  0x1a   :  { %6179 = vmatprep.subr.bf16.mxu0 %v8758_v10 }
  0x1c   :  { %5853 = vmatmul.mubr.msk.f32.gmra.mrb[10].mxu0 %vm50_vm0, %v43_v11 }
  0x1d   :  { %6181 = vmatpush3.bf16.msra.mxu0 %v6180_v21  ;;  %5869 = vmatprep.mubr.msk.f32.mxu0 %vm6709_vm1, %v8756_v15 }
  0x1e   :  { %6188 = vmatprep.subr.bf16.mxu0 %v8758_v10 }
  0x20   :  { %5870 = vmatmul.mubr.f32.vlgmr.msra.gmra.mrb[12].mxu0 %v8756_v15 }
  0x21   :  { %6190 = vmatpush3.bf16.msra.mxu0 %v6177_v18  ;;  %5891 = vmatprep.mubr.msk.f32.mxu0 %vm6709_vm1, %v8756_v15 }
  0x22   :  { %6191 = vmatprep.subr.bf16.mxu0 %v8758_v10 }
  0x25   :  { %6193 = vmatpush3.bf16.msra.mxu0 %v6180_v21 }
  0x26   :  { %6218 = vmatprep.subr.bf16.mxu0 %v8758_v10 }
  0xdb   :  { %v5835_v23 = vpop.f32.mrb[0].mxu0 }
  0xdc   :  { %v188_v24 = vadd.f32 %v5835_v23, %v5609_v22  ;;  %v141_v25 = vpop.f32.mrb[1].mxu0 }
  0xdd   :  { %v187_v26 = vadd.f32 %v5609_v22, %v141_v25 }
  0xde   :  { %197 = vst.msk [vmem:[#allocation2 + $0x8] sm:$0xff] %vm195_vm2, %v188_v24 }
  0xdf   :  { %196 = vst.msk [vmem:[#allocation2] sm:$0xff] %vm195_vm2, %v187_v26  ;;  %v5838_v27 = vpop.f32.mrb[2].mxu0 }
  0xe0   :  { %v190_v28 = vadd.f32 %v5838_v27, %v5609_v22  ;;  %v151_v29 = vpop.f32.mrb[3].mxu0 }
  0xe1   :  { %v189_v30 = vadd.f32 %v5609_v22, %v151_v29 }
  0xe2   :  { %199 = vst.msk [vmem:[#allocation2 + $0x18] sm:$0xff] %vm195_vm2, %v190_v28 }
  0xe3   :  { %198 = vst.msk [vmem:[#allocation2 + $0x10] sm:$0xff] %vm195_vm2, %v189_v30  ;;  %v5841_v31 = vpop.f32.mrb[4].mxu0 }
  0xe4   :  { %v192_v32 = vadd.f32 %v5841_v31, %v5609_v22  ;;  %v161_v33 = vpop.f32.mrb[5].mxu0 }
  0xe5   :  { %v191_v34 = vadd.f32 %v5609_v22, %v161_v33  ;;  %v6907_v5 = vld [vmem:[#allocation2 + $0x8] sm:$0xff] }
  0xe6   :  { %201 = vst.msk [vmem:[#allocation2 + $0x28] sm:$0xff] %vm195_vm2, %v192_v32  ;;  %v6899_v62 = vld [vmem:[#allocation2] sm:$0xff] }
  0xe7   :  { %200 = vst.msk [vmem:[#allocation2 + $0x20] sm:$0xff] %vm195_vm2, %v191_v34  ;;  %v5844_v35 = vpop.f32.mrb[6].mxu0 }
  0xe8   :  { %v194_v36 = vadd.f32 %v5844_v35, %v5609_v22  ;;  %v171_v37 = vpop.f32.mrb[7].mxu0 }
  0xe9   :  { %v193_v41 = vadd.f32 %v5609_v22, %v171_v37  ;;  %v6921_v17 = vld [vmem:[#allocation2 + $0x18] sm:$0xff] }
  0xea   :  { %203 = vst.msk [vmem:[#allocation2 + $0x38] sm:$0xff] %vm195_vm2, %v194_v36  ;;  %v6905_v4 = vld [vmem:[#allocation2 + $0x10] sm:$0xff] }
  0xeb   :  { %202 = vst.msk [vmem:[#allocation2 + $0x30] sm:$0xff] %vm195_vm2, %v193_v41  ;;  %v5851_v42 = vpop.f32.mrb[8].mxu0 }
  0xec   :  { %313 = vst.msk [vmem:[#allocation3 + $0x8] sm:$0xff] %vm311_vm3, %v5851_v42  ;;  %v272_v43 = vpop.f32.mrb[9].mxu0 }
  0xed   :  { %312 = vst.msk [vmem:[#allocation3] sm:$0xff] %vm311_vm3, %v272_v43  ;;  %v6926_v24 = vld [vmem:[#allocation2 + $0x28] sm:$0xff] }
  0xee   :  { %v6909_v6 = vld [vmem:[#allocation2 + $0x20] sm:$0xff] }
  0xef   :  { %v5854_v46 = vpop.f32.mrb[10].mxu0 }
  0xf0   :  { %315 = vst.msk [vmem:[#allocation3 + $0x18] sm:$0xff] %vm311_vm3, %v5854_v46  ;;  %v282_v47 = vpop.f32.mrb[11].mxu0 }
  0xf1   :  { %314 = vst.msk [vmem:[#allocation3 + $0x10] sm:$0xff] %vm311_vm3, %v282_v47  ;;  %v6937_v35 = vld [vmem:[#allocation2 + $0x38] sm:$0xff] }
  0xf2   :  { %v6932_v30 = vld [vmem:[#allocation2 + $0x30] sm:$0xff] }
  0xf3   :  { %v6885_v49 = vpop.f32.mrb[12].mxu0 }
  0xf4   :  { %v423_v50 = vcombine.high %v6885_v49, %v6885_v49  ;;  %v430_v51 = vrot.slane %v6885_v49, %v6882_v48  ;;  %v5871_v52 = vpop.f32.mrb[13].mxu0 }
  0xf6   :  { %v437_v54 = vrot.slane %v423_v50, %v6882_v48  ;;  %v438_v55 = vcombine.high %v430_v51, %v430_v51  ;;  %v446_v56 = vrot.slane %v430_v51, %v6882_v48 }
  0xf8   :  { %v439_v57 = vcombine.high %v437_v54, %v437_v54  ;;  %v453_v58 = vrot.slane %v437_v54, %v6882_v48  ;;  %v460_v59 = vrot.slane %v438_v55, %v6882_v48  ;;  %v468_v60 = vcombine.high %v446_v56, %v446_v56 }
  0xf9   :  { %v475_v61 = vrot.slane %v446_v56, %v6892_v53 }
  0xfa   :  { %v483_v63 = vrot.slane %v468_v60, %v6892_v53  ;;  %v479_v0 = vrot.slane %v460_v59, %v6892_v53  ;;  %v470_v1 = vcombine.high %v460_v59, %v460_v59  ;;  %v491_v2 = vrot.slane %v453_v58, %v6892_v53 }
  0xfb   :  { %v512_v3 = vadd.f32 %v475_v61, %v6899_v62  ;;  %v467_v7 = vrot.slane %v439_v57, %v6882_v48  ;;  %v469_v8 = vcombine.high %v453_v58, %v453_v58  ;;  %v6953_v57 = vand.u32 127, %v320_v38 }
  0xfc   :  { %v514_v11 = vadd.f32 %v483_v63, %v6905_v4  ;;  %v513_v12 = vadd.f32 %v479_v0, %v6907_v5  ;;  %v487_v13 = vrot.slane %v470_v1, %v6892_v53  ;;  %v516_v14 = vadd.f32 %v491_v2, %v6909_v6 }
  0xfd   :  { %v520_v16 = vmax.f32 %v512_v3, 0.0  ;;  %v495_v18 = vrot.slane %v467_v7, %v6892_v53  ;;  %v499_v19 = vrot.slane %v469_v8, %v6892_v53  ;;  %v471_v20 = vcombine.high %v467_v7, %v467_v7 }
  0xfe   :  { %v522_v21 = vmax.f32 %v514_v11, 0.0  ;;  %v521_v22 = vmax.f32 %v513_v12, 0.0  ;;  %v515_v23 = vadd.f32 %v487_v13, %v6921_v17  ;;  %v524_v33 = vmax.f32 %v516_v14, 0.0 }
  0xff   :  { %v535_v25 = vmul.f32 %v6915_v9, %v520_v16  ;;  %v517_v26 = vadd.f32 %v495_v18, %v6926_v24  ;;  %v503_v27 = vrot.slane %v471_v20, %v6892_v53  ;;  %v518_v34 = vadd.f32 %v499_v19, %v6932_v30 }
 0x100   :  { %v537_v28 = vmul.f32 %v6915_v9, %v522_v21  ;;  %v523_v29 = vmax.f32 %v515_v23, 0.0  ;;  %v536_v32 = vmul.f32 %v6915_v9, %v521_v22  ;;  %v539_v42 = vmul.f32 %v6915_v9, %v524_v33 }
 0x101   :  { %v543_v31 = vsel %vm195_vm2, %v535_v25, 0.0  ;;  %v525_v39 = vmax.f32 %v517_v26, 0.0  ;;  %v519_v40 = vadd.f32 %v503_v27, %v6937_v35  ;;  %v526_v43 = vmax.f32 %v518_v34, 0.0 }
 0x102   :  { %544 = vadd.xlane.f32.xlu0 %v543_v31  ;;  %v549_v36 = vsel %vm195_vm2, %v537_v28, 0.0  ;;  %v538_v37 = vmul.f32 %v6915_v9, %v523_v29  ;;  %v546_v41 = vsel %vm195_vm2, %v536_v32, 0.0  ;;  %v555_v50 = vsel %vm195_vm2, %v539_v42, 0.0 }
 0x103   :  { %550 = vadd.xlane.f32.xlu1 %v549_v36  ;;  %v540_v46 = vmul.f32 %v6915_v9, %v525_v39  ;;  %v527_v47 = vmax.f32 %v519_v40, 0.0  ;;  %v541_v51 = vmul.f32 %v6915_v9, %v526_v43  ;;  %v6957_v59 = vsub.s32 %v6953_v57, %v6877_v45 }
 0x104   :  { %v552_v44 = vsel %vm195_vm2, %v538_v37, 0.0  ;;  %v6712_v27 = vmov 0   ;;  %v6976_v28 = vsub.s32 1, %v6877_v45  ;;  %v6979_v29 = vsub.s32 2, %v6877_v45 }
 0x105   :  { %v558_v52 = vsel %vm195_vm2, %v540_v46, 0.0  ;;  %v542_v54 = vmul.f32 %v6915_v9, %v527_v47  ;;  %v561_v55 = vsel %vm195_vm2, %v541_v51, 0.0  ;;  %6385 = vset.pattern.permute.xlu0 %v6712_v27  ;;  %6384 = vset.pattern.permute.xlu1 %v6712_v27  ;;  %v6982_v31 = vsub.s32 3, %v6877_v45 }
 0x106   :  { %547 = vadd.xlane.f32.xlu0 %v546_v41  ;;  %v6988_v40 = vsub.s32 4, %v6877_v45  ;;  %v6992_v46 = vsub.s32 5, %v6877_v45 }
 0x107   :  { %553 = vadd.xlane.f32.xlu1 %v552_v44  ;;  %v564_v56 = vsel %vm195_vm2, %v542_v54, 0.0 }
 0x10a   :  { %556 = vadd.xlane.f32.xlu0 %v555_v50 }
 0x10b   :  { %559 = vadd.xlane.f32.xlu1 %v558_v52  ;;  %v6996_v52 = vsub.s32 6, %v6877_v45 }
 0x10e   :  { %562 = vadd.xlane.f32.xlu0 %v561_v55 }
 0x10f   :  { %565 = vadd.xlane.f32.xlu1 %v564_v56 }
 0x18f   :  { %v545_v58 = vpop.xlane.xlu0 %544 }
 0x190   :  { %v551_v60 = vpop.xlane.xlu1 %550  ;;  %v578_v63 = vrot.slane %v545_v58, %v6957_v59 }
 0x191   :  { %v586_v2 = vrot.slane %v551_v60, %v6957_v59 }
 0x193   :  { %v548_v61 = vpop.xlane.xlu0 %547 }
 0x194   :  { %v582_v0 = vrot.slane %v548_v61, %v6957_v59  ;;  %v554_v1 = vpop.xlane.xlu1 %553 }
 0x195   :  { %v590_v38 = vrot.slane %v554_v1, %v6957_v59 }
 0x196   :  { %v608_v3 = vsel %vm607_vm4, %v582_v0, %v578_v63 }
 0x197   :  { %v610_v7 = vsel %vm609_vm5, %v586_v2, %v608_v3  ;;  %v557_v8 = vpop.xlane.xlu0 %556 }
 0x198   :  { %v612_v11 = vsel %vm611_vm6, %v590_v38, %v610_v7  ;;  %v594_v12 = vrot.slane %v557_v8, %v6957_v59  ;;  %v560_v13 = vpop.xlane.xlu1 %559 }
 0x199   :  { %v598_v14 = vrot.slane %v560_v13, %v6957_v59 }
 0x19a   :  { %v614_v16 = vsel %vm613_vm7, %v594_v12, %v612_v11 }
 0x19b   :  { %v563_v18 = vpop.xlane.xlu0 %562  ;;  %v616_v19 = vsel %vm615_vm8, %v598_v14, %v614_v16 }
 0x19c   :  { %v602_v20 = vrot.slane %v563_v18, %v6957_v59  ;;  %v566_v21 = vpop.xlane.xlu1 %565 }
 0x19d   :  { %v606_v22 = vrot.slane %v566_v21, %v6957_v59 }
 0x19e   :  { %v618_v23 = vsel %vm617_vm9, %v602_v20, %v616_v19 }
 0x19f   :  { %v620_v25 = vsel %vm619_vm10, %v606_v22, %v618_v23 }
 0x1a0   :  { %v623_v26 = vsel %vm622_vm11, %v620_v25, -inf }
 0x1a1   :  { %624 = vmax.xlane.f32.xlu0 %v623_v26 }
 0x22e   :  { %v625_v32 = vpop.xlane.xlu0 %624 }
 0x22f   :  { %v630_v33 = vrot.slane %v625_v32, %v6892_v53  ;;  %v634_v34 = vrot.slane %v625_v32, %v6976_v28  ;;  %v638_v36 = vrot.slane %v625_v32, %v6979_v29  ;;  %v642_v41 = vrot.slane %v625_v32, %v6982_v31 }
 0x230   :  { %v646_v47 = vrot.slane %v625_v32, %v6988_v40  ;;  %v650_v54 = vrot.slane %v625_v32, %v6992_v46 }
 0x231   :  { %v668_v37 = vsub.f32 %v548_v61, %v634_v34  ;;  %v667_v39 = vsub.f32 %v545_v58, %v630_v33  ;;  %v669_v42 = vsub.f32 %v551_v60, %v638_v36  ;;  %v670_v51 = vsub.f32 %v554_v1, %v642_v41  ;;  %v7012_v1 = vld [vmem:[%s8746_s5] ss:$0 sm:$0xff] }
 0x232   :  { %v671_v56 = vsub.f32 %v557_v8, %v646_v47  ;;  %v7000_v58 = vsub.s32 7, %v6877_v45  ;;  %v654_v60 = vrot.slane %v625_v32, %v6996_v52  ;;  %v672_v63 = vsub.f32 %v560_v13, %v650_v54 }
 0x233   :  { %v677_v43 = vmul.f32 1.442695, %v668_v37  ;;  %v675_v44 = vmul.f32 1.442695, %v667_v39  ;;  %v679_v50 = vmul.f32 1.442695, %v669_v42 }
 0x234   :  { %v681_v55 = vmul.f32 1.442695, %v670_v51  ;;  %v683_v61 = vmul.f32 1.442695, %v671_v56  ;;  %v658_v45 = vrot.slane %v625_v32, %v7000_v58  ;;  %v685_v38 = vmul.f32 1.442695, %v672_v63 }
 0x235   :  { %6386 = vpow2.f32 %v677_v43  ;;  %v673_v3 = vsub.f32 %v563_v18, %v654_v60 }
 0x236   :  { %6388 = vpow2.f32 %v675_v44  ;;  %v674_v11 = vsub.f32 %v566_v21, %v658_v45 }
 0x237   :  { %6390 = vpow2.f32 %v679_v50  ;;  %v687_v8 = vmul.f32 1.442695, %v673_v3 }
 0x238   :  { %6392 = vpow2.f32 %v681_v55  ;;  %v689_v13 = vmul.f32 1.442695, %v674_v11 }
 0x239   :  { %6394 = vpow2.f32 %v683_v61  ;;  %v5857_v61 = vpop.f32.mrb[0].mxu1 }
 0x23a   :  { %6396 = vpow2.f32 %v685_v38  ;;  %317 = vst.msk [vmem:[#allocation3 + $0x28] sm:$0xff] %vm311_vm3, %v5857_v61  ;;  %v292_v63 = vpop.f32.mrb[1].mxu1  ;;  %v7082_v61 = vld [vmem:[#allocation3 + $0x10] sm:$0xff] }
 0x23b   :  { %6398 = vpow2.f32 %v687_v8  ;;  %316 = vst.msk [vmem:[#allocation3 + $0x20] sm:$0xff] %vm311_vm3, %v292_v63  ;;  %v5860_v45 = vpop.f32.mrb[2].mxu1 }
 0x23c   :  { %6400 = vpow2.f32 %v689_v13  ;;  %319 = vst.msk [vmem:[#allocation3 + $0x38] sm:$0xff] %vm311_vm3, %v5860_v45 }
 0x23f   :  { %v7003_v0 = vpop.eup %6386 }
 0x240   :  { %v7005_v2 = vpop.eup %6388  ;;  %703 = vperm.xlu0 %6385, %v7003_v0  }
 0x241   :  { %700 = vperm.xlu1 %6384, %v7005_v2   ;;  %v7015_v7 = vpop.eup %6390 }
 0x242   :  { %v7020_v12 = vpop.eup %6392 }
 0x243   :  { %v7023_v14 = vpop.eup %6394 }
 0x244   :  { %410 = vrot.lane.b32.xlu0 %v7012_v1, %s6713_s3  ;;  %v7026_v16 = vpop.eup %6396 }
 0x245   :  { %706 = vperm.xlu1 %6384, %v7015_v7   ;;  %v7029_v18 = vpop.eup %6398 }
 0x246   :  { %v6401_v19 = vpop.eup %6400 }
 0x249   :  { %709 = vperm.xlu1 %6384, %v7020_v12  }
 0x24d   :  { %712 = vperm.xlu1 %6384, %v7023_v14  }
 0x251   :  { %715 = vperm.xlu1 %6384, %v7026_v16  }
 0x255   :  { %718 = vperm.xlu1 %6384, %v7029_v18  }
 0x259   :  { %721 = vperm.xlu1 %6384, %v6401_v19  }
 0x2bf   :  { %v704_v25 = vpop.permute.xlu0 %703 }
 0x2c0   :  { %v701_v20 = vpop.permute.xlu1 %700  ;;  %v730_v27 = vrot.slane %v704_v25, %v6957_v59 }
 0x2c1   :  { %v726_v32 = vrot.slane %v701_v20, %v6957_v59 }
 0x2c3   :  { %v755_v39 = vsel %vm607_vm4, %v730_v27, %v726_v32 }
 0x2c4   :  { %v707_v21 = vpop.permute.xlu1 %706 }
 0x2c5   :  { %v734_v33 = vrot.slane %v707_v21, %v6957_v59 }
 0x2c7   :  { %v756_v42 = vsel %vm609_vm5, %v734_v33, %v755_v39 }
 0x2c8   :  { %v710_v22 = vpop.permute.xlu1 %709 }
 0x2c9   :  { %v738_v34 = vrot.slane %v710_v22, %v6957_v59 }
 0x2cb   :  { %v757_v44 = vsel %vm611_vm6, %v738_v34, %v756_v42 }
 0x2cc   :  { %v713_v23 = vpop.permute.xlu1 %712 }
 0x2cd   :  { %v742_v36 = vrot.slane %v713_v23, %v6957_v59 }
 0x2cf   :  { %v758_v47 = vsel %vm613_vm7, %v742_v36, %v757_v44  ;;  %v302_v44 = vpop.f32.mrb[3].mxu1 }
 0x2d0   :  { %v716_v26 = vpop.permute.xlu1 %715  ;;  %318 = vst.msk [vmem:[#allocation3 + $0x30] sm:$0xff] %vm311_vm3, %v302_v44 }
 0x2d1   :  { %v746_v41 = vrot.slane %v716_v26, %v6957_v59 }
 0x2d3   :  { %v759_v54 = vsel %vm615_vm8, %v746_v41, %v758_v47  ;;  %v411_v47 = vpop.permute.xlu0 %410 }
 0x2d4   :  { %v719_v37 = vpop.permute.xlu1 %718 }
 0x2d5   :  { %v750_v43 = vrot.slane %v719_v37, %v6957_v59 }
 0x2d7   :  { %v760_v55 = vsel %vm617_vm9, %v750_v43, %v759_v54 }
 0x2d8   :  { %v722_v50 = vpop.permute.xlu1 %721 }
 0x2d9   :  { %v754_v51 = vrot.slane %v722_v50, %v6957_v59  ;;  %v413_v50 = vadd.f32 %v411_v47, %v6885_v49 }
 0x2db   :  { %v761_v56 = vsel %vm619_vm10, %v754_v51, %v760_v55  ;;  %v7073_v51 = vld [vmem:[#allocation3 + $0x8] sm:$0xff] }
 0x2dc   :  { %v763_v60 = vsel %vm622_vm11, %v761_v56, 0.0 }
 0x2dd   :  { %764 = vadd.xlane.f32.xlu1 %v763_v60 }
 0x36a   :  { %v765_v38 = vpop.xlane.xlu1 %764 }
 0x36b   :  { %v798_v3 = vrot.slane %v765_v38, %v7000_v58  ;;  %v770_v8 = vrot.slane %v765_v38, %v6892_v53  ;;  %v774_v11 = vrot.slane %v765_v38, %v6976_v28  ;;  %v778_v13 = vrot.slane %v765_v38, %v6979_v29 }
 0x36c   :  { %v782_v20 = vrot.slane %v765_v38, %v6982_v31  ;;  %v786_v25 = vrot.slane %v765_v38, %v6988_v40  ;;  %v790_v32 = vrot.slane %v765_v38, %v6992_v46  ;;  %v794_v36 = vrot.slane %v765_v38, %v6996_v52 }
 0x36d   :  { %6402 = vrcp.f32 %v798_v3 }
 0x36e   :  { %6404 = vrcp.f32 %v770_v8 }
 0x36f   :  { %6406 = vrcp.f32 %v774_v11 }
 0x370   :  { %6408 = vrcp.f32 %v778_v13 }
 0x371   :  { %6410 = vrcp.f32 %v782_v20  ;;  %v7088_v20 = vld [vmem:[#allocation3 + $0x18] sm:$0xff] }
 0x372   :  { %6412 = vrcp.f32 %v786_v25 }
 0x373   :  { %6414 = vrcp.f32 %v790_v32 }
 0x374   :  { %6416 = vrcp.f32 %v794_v36 }
 0x377   :  { %v6403_v21 = vpop.eup %6402 }
 0x378   :  { %v6405_v22 = vpop.eup %6404  ;;  %v822_v23 = vmul.f32 %v6403_v21, %v6401_v19 }
 0x379   :  { %v808_v26 = vmul.f32 %v6405_v22, %v7005_v2  ;;  %v6407_v27 = vpop.eup %6406 }
 0x37a   :  { %868 = vperm.xlu1 %6384, %v822_v23   ;;  %v810_v33 = vmul.f32 %v6407_v27, %v7003_v0  ;;  %v6409_v34 = vpop.eup %6408  ;;  %v7091_v23 = vld [vmem:[#allocation3 + $0x20] sm:$0xff] }
 0x37b   :  { %833 = vperm.xlu0 %6385, %v808_v26   ;;  %v812_v19 = vmul.f32 %v6409_v34, %v7015_v7  ;;  %v6411_v37 = vpop.eup %6410 }
 0x37c   :  { %v814_v2 = vmul.f32 %v6411_v37, %v7020_v12  ;;  %v6413_v39 = vpop.eup %6412 }
 0x37d   :  { %v816_v41 = vmul.f32 %v6413_v39, %v7023_v14  ;;  %v6415_v42 = vpop.eup %6414  ;;  %v7070_v14 = vld [vmem:[#allocation3] sm:$0xff] }
 0x37e   :  { %v818_v0 = vmul.f32 %v6415_v42, %v7026_v16  ;;  %v6417_v43 = vpop.eup %6416 }
 0x37f   :  { %838 = vperm.xlu0 %6385, %v810_v33   ;;  %v820_v7 = vmul.f32 %v6417_v43, %v7029_v18  ;;  %v7076_v18 = vld [vmem:[#allocation3 + $0x38] sm:$0xff] }
 0x383   :  { %843 = vperm.xlu0 %6385, %v812_v19  }
 0x387   :  { %848 = vperm.xlu0 %6385, %v814_v2  }
 0x38b   :  { %853 = vperm.xlu0 %6385, %v816_v41   ;;  %v7097_v41 = vld [vmem:[#allocation3 + $0x28] sm:$0xff] }
 0x38f   :  { %858 = vperm.xlu0 %6385, %v818_v0  }
 0x393   :  { %863 = vperm.xlu0 %6385, %v820_v7  }
 0x397   :  { %953 = vrot.lane.b32.xlu0 %v413_v50, %s6714_s18 }
 0x39b   :  { %963 = vrot.lane.b32.xlu0 %v413_v50, %s6713_s3 }
 0x3f9   :  { %v7078_v56 = vpop.permute.xlu1 %868 }
 0x3fa   :  { %v834_v12 = vpop.permute.xlu0 %833  ;;  %v878_v38 = vmul.f32 %v7078_v56, %v7076_v18 }
 0x3fb   :  { %v871_v16 = vmul.f32 %v834_v12, %v7070_v14  ;;  %v1081_v7 = vrot.slane %v834_v12, %v6957_v59 }
 0x3fc   :  { %v928_v25 = vsel %vm311_vm3, %v878_v38, 0.0 }
 0x3fd   :  { %v879_v49 = vsel %vm311_vm3, %v871_v16, 0.0  ;;  %v929_v37 = vrot.slane %v928_v25, 4 }
 0x3fe   :  { %v839_v54 = vpop.permute.xlu0 %838  ;;  %v880_v3 = vrot.slane %v879_v49, 4 }
 0x3ff   :  { %v872_v55 = vmul.f32 %v839_v54, %v7073_v51  ;;  %v1085_v2 = vrot.slane %v839_v54, %v6957_v59 }
 0x400   :  { %v881_v26 = vadd.f32 %v880_v3, %v879_v49 }
 0x401   :  { %v886_v60 = vsel %vm311_vm3, %v872_v55, 0.0  ;;  %v1110_v38 = vsel %vm607_vm4, %v1085_v2, %v1081_v7 }
 0x402   :  { %v844_v63 = vpop.permute.xlu0 %843  ;;  %v887_v8 = vrot.slane %v886_v60, 4  ;;  %v882_v42 = vrot.slane %v881_v26, 2 }
 0x403   :  { %v873_v45 = vmul.f32 %v844_v63, %v7082_v61  ;;  %v1089_v43 = vrot.slane %v844_v63, %v6957_v59 }
 0x404   :  { %v888_v27 = vadd.f32 %v887_v8, %v886_v60  ;;  %v7107_v8 = vld [vmem:[#allocation3 + $0x30] sm:$0xff] }
 0x405   :  { %v893_v11 = vsel %vm311_vm3, %v873_v45, 0.0  ;;  %v930_v45 = vadd.f32 %v929_v37, %v928_v25 }
 0x406   :  { %v894_v13 = vrot.slane %v893_v11, 4  ;;  %v849_v21 = vpop.permute.xlu0 %848  ;;  %v889_v0 = vrot.slane %v888_v27, 2 }
 0x407   :  { %v874_v22 = vmul.f32 %v849_v21, %v7088_v20  ;;  %v1093_v50 = vrot.slane %v849_v21, %v6957_v59 }
 0x408   :  { %v895_v33 = vadd.f32 %v894_v13, %v893_v11  ;;  %v883_v11 = vadd.f32 %v882_v42, %v881_v26  ;;  %v890_v12 = vadd.f32 %v889_v0, %v888_v27  ;;  %v1111_v13 = vsel %vm609_vm5, %v1089_v43, %v1110_v38 }
 0x409   :  { %v900_v32 = vsel %vm311_vm3, %v874_v22, 0.0  ;;  %v1109_v26 = vrot.slane %v7078_v56, %v6957_v59 }
 0x40a   :  { %v901_v34 = vrot.slane %v900_v32, 4  ;;  %v854_v36 = vpop.permute.xlu0 %853  ;;  %v896_v47 = vrot.slane %v895_v33, 2  ;;  %v891_v43 = vrot.slane %v890_v12, 1 }
 0x40b   :  { %v875_v19 = vmul.f32 %v854_v36, %v7091_v23  ;;  %v1097_v60 = vrot.slane %v854_v36, %v6957_v59 }
 0x40c   :  { %v902_v39 = vadd.f32 %v901_v34, %v900_v32  ;;  %v897_v22 = vadd.f32 %v896_v47, %v895_v33  ;;  %v1112_v32 = vsel %vm611_vm6, %v1093_v50, %v1111_v13  ;;  %v931_v33 = vrot.slane %v930_v45, 2 }
 0x40d   :  { %v907_v44 = vsel %vm311_vm3, %v875_v19, 0.0  ;;  %v1113_v37 = vsel %vm613_vm7, %v1097_v60, %v1112_v32 }
 0x40e   :  { %v908_v16 = vrot.slane %v907_v44, 4  ;;  %v859_v55 = vpop.permute.xlu0 %858  ;;  %v903_v49 = vrot.slane %v902_v39, 2 }
 0x40f   :  { %v876_v54 = vmul.f32 %v859_v55, %v7097_v41  ;;  %v1101_v63 = vrot.slane %v859_v55, %v6957_v59 }
 0x410   :  { %v909_v3 = vadd.f32 %v908_v16, %v907_v44  ;;  %v904_v25 = vadd.f32 %v903_v49, %v902_v39  ;;  %v898_v39 = vrot.slane %v897_v22, 1  ;;  %v884_v49 = vrot.slane %v883_v11, 1 }
 0x411   :  { %v914_v21 = vsel %vm311_vm3, %v876_v54, 0.0  ;;  %v1114_v0 = vsel %vm615_vm8, %v1101_v63, %v1113_v37  ;;  %v892_v63 = vadd.f32 %v891_v43, %v890_v12  ;;  %v5618_v12 = vld [vmem:[%s8747_s6 + $0x1] ss:$0 sm:$0xff] }
 0x412   :  { %v910_v34 = vrot.slane %v909_v3, 2  ;;  %v915_v36 = vrot.slane %v914_v21, 4  ;;  %v864_v19 = vpop.permute.xlu0 %863  ;;  %v905_v60 = vrot.slane %v904_v25, 1  ;;  %v899_v13 = vadd.f32 %v898_v39, %v897_v22 }
 0x413   :  { %v877_v2 = vmul.f32 %v864_v19, %v7107_v8  ;;  %v1105_v44 = vrot.slane %v864_v19, %v6957_v59 }
 0x414   :  { %v911_v27 = vadd.f32 %v910_v34, %v909_v3  ;;  %v916_v42 = vadd.f32 %v915_v36, %v914_v21  ;;  %v932_v3 = vadd.f32 %v931_v33, %v930_v45  ;;  %v885_v34 = vadd.f32 %v884_v49, %v883_v11 }
 0x415   :  { %v921_v7 = vsel %vm311_vm3, %v877_v2, 0.0  ;;  %v1115_v47 = vsel %vm617_vm9, %v1105_v44, %v1114_v0  ;;  %v906_v36 = vadd.f32 %v905_v60, %v904_v25 }
 0x416   :  { %v917_v50 = vrot.slane %v916_v42, 2  ;;  %v922_v16 = vrot.slane %v921_v7, 4  ;;  %v1116_v55 = vsel %vm619_vm10, %v1109_v26, %v1115_v47  ;;  %v912_v56 = vrot.slane %v911_v27, 1  ;;  %v954_v43 = vpop.permute.xlu0 %953 }
 0x417   :  { %1118 = vst.msk [vmem:[#allocation6] sm:$0xff] %vm622_vm11, %v1116_v55  ;;  %v933_v2 = vrot.slane %v932_v3, 1  ;;  %v943_v44 = vsel %vm607_vm4, %v892_v63, %v885_v34  ;;  %v982_v63 = vld [vmem:[%s8748_s7 + $0x8] sm:$0xff] }
 0x418   :  { %v918_v54 = vadd.f32 %v917_v50, %v916_v42  ;;  %v923_v38 = vadd.f32 %v922_v16, %v921_v7  ;;  %v913_v19 = vadd.f32 %v912_v56, %v911_v27  ;;  %v944_v0 = vsel %vm609_vm5, %v899_v13, %v943_v44  ;;  %v983_v13 = vld [vmem:[%s8748_s7 + $0x10] sm:$0xff] }
 0x419   :  { %v945_v55 = vsel %vm611_vm6, %v906_v36, %v944_v0  ;;  %v934_v11 = vadd.f32 %v933_v2, %v932_v3  ;;  %v981_v3 = vld [vmem:[%s8748_s7] sm:$0xff] }
 0x41a   :  { %v919_v21 = vrot.slane %v918_v54, 1  ;;  %v924_v32 = vrot.slane %v923_v38, 2  ;;  %v946_v45 = vsel %vm613_vm7, %v913_v19, %v945_v55  ;;  %v964_v60 = vpop.permute.xlu0 %963 }
 0x41c   :  { %v925_v37 = vadd.f32 %v924_v32, %v923_v38  ;;  %v920_v26 = vadd.f32 %v919_v21, %v918_v54  ;;  %v6183_v21 = vpack.c.bf16 %v982_v63, %v981_v3  ;;  %v984_v32 = vld [vmem:[%s8748_s7 + $0x18] sm:$0xff] }
 0x41d   :  { %v6186_v34 = vpack.c.bf16 %v984_v32, %v983_v13 }
 0x41e   :  { %v926_v47 = vrot.slane %v925_v37, 1  ;;  %v947_v22 = vsel %vm615_vm8, %v920_v26, %v946_v45  ;;  %6184 = vmatpush3.bf16.msra.mxu1 %v6183_v21 }
 0x41f   :  { %6185 = vmatprep.subr.bf16.mxu1 %v8758_v10 }
 0x420   :  { %v927_v42 = vadd.f32 %v926_v47, %v925_v37  ;;  %v7163_v47 = vld [vmem:[%s8749_s8] ss:$0 sm:$0xff] }
 0x422   :  { %v948_v25 = vsel %vm617_vm9, %v927_v42, %v947_v22  ;;  %6187 = vmatpush3.bf16.msra.mxu1 %v6186_v34 }
 0x423   :  { %v949_v27 = vsel %vm619_vm10, %v934_v11, %v948_v25  ;;  %6194 = vmatprep.subr.bf16.mxu1 %v8758_v10 }
 0x424   :  { %v951_v33 = vadd.f32 %v5618_v12, %v949_v27 }
 0x426   :  { %v956_v7 = vadd.f32 %v954_v43, %v951_v33 }
 0x428   :  { %v5621_v39 = vmul.f32 -1.442695, %v956_v7 }
 0x42a   :  { %6418 = vpow2.f32 %v5621_v39 }
 0x434   :  { %v6419_v50 = vpop.eup %6418 }
 0x435   :  { %v960_v16 = vadd.f32 1.0, %v6419_v50 }
 0x437   :  { %6420 = vrcp.f32 %v960_v16 }
 0x441   :  { %v6421_v49 = vpop.eup %6420 }
 0x442   :  { %v966_v56 = vmul.f32 %v6421_v49, %v964_v60  ;;  %v973_v19 = vsub.f32 1.0, %v6421_v49  ;;  %v979_v2 = vmul.f32 0.0, %v6421_v49 }
 0x444   :  { %968 = vrot.lane.b32.xlu0 %v966_v56, %s6715_s21 }
 0x4b6   :  { %v969_v54 = vpop.permute.xlu0 %968 }
 0x4b7   :  { %v971_v38 = vadd.f32 %v969_v54, %v951_v33 }
 0x4b9   :  { %6422 = vtanh.f32 %v971_v38 }
 0x4c3   :  { %v6423_v36 = vpop.eup %6422 }
 0x4c4   :  { %975 = vrot.lane.b32.xlu0 %v6423_v36, %s6714_s18 }
 0x536   :  { %v976_v37 = vpop.permute.xlu0 %975 }
 0x537   :  { %v978_v44 = vmul.f32 %v976_v37, %v973_v19 }
 0x539   :  { %v7148_v26 = vadd.f32 %v979_v2, %v978_v44 }
 0x53b   :  { %993 = vrot.lane.b32.xlu1 %v7148_v26, %s6714_s18 }
 0x5ad   :  { %v994_v0 = vpop.permute.xlu1 %993 }
 0x5ae   :  { %5881 = vmatmul.mubr.msk.f32.vlgmr.msra.gmra.mrb[4].mxu1 %vm195_vm2, %v994_v0  ;;  %5892 = vmatmul.mubr.msk.f32.vlgmr.msra.gmra.mrb[14].mxu0 %vm195_vm2, %v994_v0 }
 0x5af   :  { %5926 = vmatprep.mubr.msk.f32.mxu1 %vm6709_vm1, %v8756_v15  ;;  %6220 = vmatpush3.bf16.msra.mxu0 %v6183_v21 }
 0x5b0   :  { %6221 = vmatprep.subr.bf16.mxu0 %v8758_v10  ;;  %5937 = vmatprep.mubr.msk.f32.mxu0 %vm6709_vm1, %v8756_v15 }
 0x5b3   :  { %6223 = vmatpush3.bf16.msra.mxu0 %v6186_v34 }
 0x5b4   :  { %6224 = vmatprep.subr.bf16.mxu0 %v8758_v10 }
 0x681   :  { %v1063_v55 = vpop.f32.mrb[4].mxu1  ;;  %v7165_v42 = vpop.f32.mrb[14].mxu0 }
 0x682   :  { %v7168_v45 = vadd.f32 %v7163_v47, %v1063_v55  ;;  %v1247_v12 = vcombine.high %v7165_v42, %v7165_v42  ;;  %v1254_v11 = vrot.slane %v7165_v42, %v6882_v48  ;;  %v5882_v22 = vpop.f32.mrb[5].mxu1  ;;  %v5893_v25 = vpop.f32.mrb[15].mxu0 }
 0x684   :  { %8774 = vst [vmem:[#allocation11_spill] sm:$0xff] %v7168_v45  ;;  %v1261_v27 = vrot.slane %v1247_v12, %v6882_v48  ;;  %v1262_v33 = vcombine.high %v1254_v11, %v1254_v11  ;;  %v1270_v43 = vrot.slane %v1254_v11, %v6882_v48  ;;  %1067 = vmax.xlane.f32.xlu0 %v7168_v45 }
 0x686   :  { %v1263_v7 = vcombine.high %v1261_v27, %v1261_v27  ;;  %v1277_v39 = vrot.slane %v1261_v27, %v6882_v48  ;;  %v1284_v50 = vrot.slane %v1262_v33, %v6882_v48  ;;  %v1292_v16 = vcombine.high %v1270_v43, %v1270_v43 }
 0x687   :  { %v1299_v49 = vrot.slane %v1270_v43, %v6892_v53 }
 0x688   :  { %v1303_v60 = vrot.slane %v1284_v50, %v6892_v53  ;;  %v1294_v56 = vcombine.high %v1284_v50, %v1284_v50  ;;  %v1307_v54 = vrot.slane %v1292_v16, %v6892_v53  ;;  %v1291_v38 = vrot.slane %v1263_v7, %v6882_v48 }
 0x689   :  { %v1336_v3 = vadd.f32 %v1299_v49, %v6899_v62  ;;  %v1315_v63 = vrot.slane %v1277_v39, %v6892_v53  ;;  %v1293_v13 = vcombine.high %v1277_v39, %v1277_v39 }
 0x68a   :  { %v1337_v21 = vadd.f32 %v1303_v60, %v6907_v5  ;;  %v1311_v32 = vrot.slane %v1294_v56, %v6892_v53  ;;  %v1338_v34 = vadd.f32 %v1307_v54, %v6905_v4  ;;  %v1319_v36 = vrot.slane %v1291_v38, %v6892_v53 }
 0x68b   :  { %v1344_v19 = vmax.f32 %v1336_v3, 0.0  ;;  %v1340_v37 = vadd.f32 %v1315_v63, %v6909_v6  ;;  %v1295_v2 = vcombine.high %v1291_v38, %v1291_v38  ;;  %v1323_v44 = vrot.slane %v1293_v13, %v6892_v53 }
 0x68c   :  { %v1345_v0 = vmax.f32 %v1337_v21, 0.0  ;;  %v1339_v62 = vadd.f32 %v1311_v32, %v6921_v17  ;;  %v1346_v55 = vmax.f32 %v1338_v34, 0.0  ;;  %v1341_v12 = vadd.f32 %v1319_v36, %v6926_v24 }
 0x68d   :  { %v1359_v5 = vmul.f32 %v6915_v9, %v1344_v19  ;;  %v1327_v11 = vrot.slane %v1295_v2, %v6892_v53  ;;  %v1348_v6 = vmax.f32 %v1340_v37, 0.0  ;;  %v1342_v7 = vadd.f32 %v1323_v44, %v6932_v30 }
 0x68e   :  { %v1360_v4 = vmul.f32 %v6915_v9, %v1345_v0  ;;  %v1347_v22 = vmax.f32 %v1339_v62, 0.0  ;;  %v1349_v27 = vmax.f32 %v1341_v12, 0.0  ;;  %v1361_v24 = vmul.f32 %v6915_v9, %v1346_v55 }
 0x68f   :  { %v1367_v25 = vsel %vm195_vm2, %v1359_v5, 0.0  ;;  %v1343_v33 = vadd.f32 %v1327_v11, %v6937_v35  ;;  %v1363_v35 = vmul.f32 %v6915_v9, %v1348_v6  ;;  %v1350_v60 = vmax.f32 %v1342_v7, 0.0 }
 0x690   :  { %1368 = vadd.xlane.f32.xlu1 %v1367_v25  ;;  %v1370_v43 = vsel %vm195_vm2, %v1360_v4, 0.0  ;;  %v1362_v17 = vmul.f32 %v6915_v9, %v1347_v22  ;;  %v1364_v50 = vmul.f32 %v6915_v9, %v1349_v27  ;;  %v1373_v49 = vsel %vm195_vm2, %v1361_v24, 0.0 }
 0x691   :  { %1371 = vadd.xlane.f32.xlu0 %v1370_v43  ;;  %v1351_v16 = vmax.f32 %v1343_v33, 0.0  ;;  %v1379_v30 = vsel %vm195_vm2, %v1363_v35, 0.0  ;;  %v1365_v38 = vmul.f32 %v6915_v9, %v1350_v60  ;;  %v1140_v35 = vld [vmem:[%s8747_s6 + $0x10] sm:$0xff] }
 0x692   :  { %v1376_v39 = vsel %vm195_vm2, %v1362_v17, 0.0  ;;  %v1382_v56 = vsel %vm195_vm2, %v1364_v50, 0.0 }
 0x693   :  { %v1366_v54 = vmul.f32 %v6915_v9, %v1351_v16  ;;  %v1385_v63 = vsel %vm195_vm2, %v1365_v38, 0.0  ;;  %v1138_v16 = vld [vmem:[%s8747_s6] sm:$0xff]  ;;  %v1143_v38 = vld [vmem:[%s8747_s6 + $0x28] sm:$0xff] }
 0x694   :  { %1377 = vadd.xlane.f32.xlu1 %v1376_v39 }
 0x695   :  { %1374 = vadd.xlane.f32.xlu0 %v1373_v49  ;;  %v1388_v3 = vsel %vm195_vm2, %v1366_v54, 0.0  ;;  %v1139_v49 = vld [vmem:[%s8747_s6 + $0x8] sm:$0xff] }
 0x696   :  { %v7272_v60 = vpack.c.bf16 %v1139_v49, %v1138_v16 }
 0x698   :  { %1383 = vadd.xlane.f32.xlu1 %v1382_v56  ;;  %v1141_v56 = vld [vmem:[%s8747_s6 + $0x18] sm:$0xff]  ;;  %6196 = vmatpush3.bf16.msra.mxu1 %v7272_v60 }
 0x699   :  { %1380 = vadd.xlane.f32.xlu0 %v1379_v30  ;;  %v7278_v54 = vpack.c.bf16 %v1141_v56, %v1140_v35  ;;  %6197 = vmatprep.subr.bf16.mxu1 %v8758_v10  ;;  %v1142_v30 = vld [vmem:[%s8747_s6 + $0x20] sm:$0xff] }
 0x69c   :  { %1389 = vadd.xlane.f32.xlu1 %v1388_v3  ;;  %6199 = vmatpush3.bf16.msra.mxu1 %v7278_v54  ;;  %v7288_v3 = vpack.c.bf16 %v1143_v38, %v1142_v30 }
 0x69d   :  { %1386 = vadd.xlane.f32.xlu0 %v1385_v63  ;;  %6200 = vmatprep.subr.bf16.mxu1 %v8758_v10  ;;  %v1144_v63 = vld [vmem:[%s8747_s6 + $0x30] sm:$0xff] }
 0x6a0   :  { %6202 = vmatpush3.bf16.msra.mxu1 %v7288_v3 }
 0x6a1   :  { %6203 = vmatprep.subr.bf16.mxu1 %v8758_v10 }
 0x711   :  { %v7212_v13 = vpop.xlane.xlu0 %1067 }
 0x712   :  { %8775 = vst [vmem:[#allocation12_spill] sm:$0xff] %v7212_v13  ;;  %vm1119_vm12 = vcmp.ge.f32.partialorder %v7168_v45, %v7212_v13 }
 0x713   :  { %v7217_v21 = vsel %vm1119_vm12, %v6953_v57, 128 }
 0x714   :  { %v1122_v32 = vshra.s32 %v7217_v21, 16 }
 0x716   :  { %v7220_v34 = vcvt.s32.f32 %v1122_v32  ;;  %v1145_v32 = vld [vmem:[%s8747_s6 + $0x38] sm:$0xff] }
 0x718   :  { %1125 = vmin.xlane.f32.xlu0 %v7220_v34 }
 0x71d   :  { %v7223_v9 = vpop.xlane.xlu1 %1368 }
 0x71e   :  { %v7225_v36 = vpop.xlane.xlu0 %1371  ;;  %v1402_v2 = vrot.slane %v7223_v9, %v6957_v59 }
 0x71f   :  { %v1406_v19 = vrot.slane %v7225_v36, %v6957_v59 }
 0x721   :  { %v7229_v37 = vpop.xlane.xlu1 %1377  ;;  %v1431_v62 = vsel %vm607_vm4, %v1406_v19, %v1402_v2  ;;  %v7298_v19 = vpack.c.bf16 %v1145_v32, %v1144_v63  ;;  %v1146_v2 = vld [vmem:[%s8747_s6 + $0x40] sm:$0xff] }
 0x722   :  { %v7233_v44 = vpop.xlane.xlu0 %1374  ;;  %v1414_v5 = vrot.slane %v7229_v37, %v6957_v59 }
 0x723   :  { %v1410_v0 = vrot.slane %v7233_v44, %v6957_v59  ;;  %6205 = vmatpush3.bf16.msra.mxu1 %v7298_v19 }
 0x724   :  { %6206 = vmatprep.subr.bf16.mxu1 %v8758_v10 }
 0x725   :  { %v1432_v55 = vsel %vm609_vm5, %v1410_v0, %v1431_v62  ;;  %v7239_v12 = vpop.xlane.xlu1 %1383  ;;  %v1147_v0 = vld [vmem:[%s8747_s6 + $0x48] sm:$0xff] }
 0x726   :  { %v7243_v11 = vpop.xlane.xlu0 %1380  ;;  %v1433_v22 = vsel %vm611_vm6, %v1414_v5, %v1432_v55  ;;  %v1422_v6 = vrot.slane %v7239_v12, %v6957_v59  ;;  %v7308_v62 = vpack.c.bf16 %v1147_v0, %v1146_v2  ;;  %v1148_v55 = vld [vmem:[%s8747_s6 + $0x50] sm:$0xff]  ;;  %v1149_v5 = vld [vmem:[%s8747_s6 + $0x58] sm:$0xff] }
 0x727   :  { %v1418_v4 = vrot.slane %v7243_v11, %v6957_v59 }
 0x728   :  { %6208 = vmatpush3.bf16.msra.mxu1 %v7308_v62 }
 0x729   :  { %v1434_v25 = vsel %vm613_vm7, %v1418_v4, %v1433_v22  ;;  %v7249_v27 = vpop.xlane.xlu1 %1389  ;;  %v7318_v4 = vpack.c.bf16 %v1149_v5, %v1148_v55  ;;  %6209 = vmatprep.subr.bf16.mxu1 %v8758_v10  ;;  %v1150_v22 = vld [vmem:[%s8747_s6 + $0x60] sm:$0xff] }
 0x72a   :  { %v7253_v33 = vpop.xlane.xlu0 %1386  ;;  %v1430_v17 = vrot.slane %v7249_v27, %v6957_v59  ;;  %v1435_v24 = vsel %vm615_vm8, %v1422_v6, %v1434_v25  ;;  %v1151_v25 = vld [vmem:[%s8747_s6 + $0x68] sm:$0xff] }
 0x72b   :  { %v1426_v43 = vrot.slane %v7253_v33, %v6957_v59  ;;  %v7328_v6 = vpack.c.bf16 %v1151_v25, %v1150_v22 }
 0x72c   :  { %6211 = vmatpush3.bf16.msra.mxu1 %v7318_v4 }
 0x72d   :  { %v1436_v7 = vsel %vm617_vm9, %v1426_v43, %v1435_v24  ;;  %6212 = vmatprep.subr.bf16.mxu1 %v8758_v10  ;;  %v1121_v43 = vand.u32 65535, %v7217_v21 }
 0x72e   :  { %v1437_v39 = vsel %vm619_vm10, %v1430_v17, %v1436_v7 }
 0x72f   :  { %v1439_v50 = vsel %vm622_vm11, %v1437_v39, -inf  ;;  %v1123_v24 = vcvt.s32.f32 %v1121_v43  ;;  %v1152_v39 = vld [vmem:[%s8747_s6 + $0x70] sm:$0xff] }
 0x730   :  { %1440 = vmax.xlane.f32.xlu1 %v1439_v50  ;;  %6214 = vmatpush3.bf16.msra.mxu1 %v7328_v6  ;;  %v1153_v50 = vld [vmem:[%s8747_s6 + $0x78] sm:$0xff] }
 0x731   :  { %6215 = vmatprep.subr.bf16.mxu1 %v8758_v10  ;;  %v7341_v16 = vpack.c.bf16 %v1153_v50, %v1152_v39 }
 0x734   :  { %6217 = vmatpush3.bf16.msra.mxu1 %v7341_v16 }
 0x735   :  { %6254 = vmatprep.subr.bf16.mxu1 %v8758_v10 }
 0x7a5   :  { %v1126_v17 = vpop.xlane.xlu0 %1125 }
 0x7a6   :  { %vm1127_vm13 = vcmp.eq.f32.partialorder %v7220_v34, %v1126_v17 }
 0x7a7   :  { %v1128_v7 = vsel %vm1127_vm13, %v1123_v24, inf }
 0x7a8   :  { %1129 = vmin.xlane.f32.xlu0 %v1128_v7 }
 0x7bd   :  { %v1441_v21 = vpop.xlane.xlu1 %1440 }
 0x7be   :  { %v1446_v49 = vrot.slane %v1441_v21, %v6892_v53  ;;  %v1450_v34 = vrot.slane %v1441_v21, %v6976_v28  ;;  %v1454_v35 = vrot.slane %v1441_v21, %v6979_v29  ;;  %v1462_v56 = vrot.slane %v1441_v21, %v6988_v40 }
 0x7bf   :  { %v1458_v30 = vrot.slane %v1441_v21, %v6982_v31  ;;  %v1470_v2 = vrot.slane %v1441_v21, %v6996_v52  ;;  %v1466_v22 = vrot.slane %v1441_v21, %v6992_v46 }
 0x7c0   :  { %v1483_v38 = vsub.f32 %v7223_v9, %v1446_v49  ;;  %v1484_v63 = vsub.f32 %v7225_v36, %v1450_v34  ;;  %v1485_v32 = vsub.f32 %v7233_v44, %v1454_v35  ;;  %v1487_v0 = vsub.f32 %v7243_v11, %v1462_v56 }
 0x7c1   :  { %v1486_v43 = vsub.f32 %v7229_v37, %v1458_v30  ;;  %v1489_v9 = vsub.f32 %v7253_v33, %v1470_v2  ;;  %v1474_v36 = vrot.slane %v1441_v21, %v7000_v58  ;;  %v1488_v7 = vsub.f32 %v7239_v12, %v1466_v22 }
 0x7c2   :  { %v1491_v55 = vmul.f32 1.442695, %v1483_v38  ;;  %v1493_v5 = vmul.f32 1.442695, %v1484_v63  ;;  %v1495_v25 = vmul.f32 1.442695, %v1485_v32  ;;  %v1132_v30 = vcvt.f32.s32 %v1126_v17 }
 0x7c3   :  { %v1499_v24 = vmul.f32 1.442695, %v1487_v0  ;;  %v1497_v44 = vmul.f32 1.442695, %v1486_v43  ;;  %v1503_v11 = vmul.f32 1.442695, %v1489_v9  ;;  %v1490_v50 = vsub.f32 %v7249_v27, %v1474_v36 }
 0x7c4   :  { %6424 = vpow2.f32 %v1491_v55  ;;  %v1501_v39 = vmul.f32 1.442695, %v1488_v7  ;;  %v1133_v63 = vshll.u32 %v1132_v30, 16  ;;  %v8754_v0 = vmov 1.0  }
 0x7c5   :  { %6426 = vpow2.f32 %v1493_v5  ;;  %v1505_v33 = vmul.f32 1.442695, %v1490_v50 }
 0x7c6   :  { %6428 = vpow2.f32 %v1495_v25 }
 0x7c7   :  { %6430 = vpow2.f32 %v1499_v24 }
 0x7c8   :  { %6432 = vpow2.f32 %v1497_v44 }
 0x7c9   :  { %6434 = vpow2.f32 %v1503_v11 }
 0x7ca   :  { %6436 = vpow2.f32 %v1501_v39 }
 0x7cb   :  { %6438 = vpow2.f32 %v1505_v33 }
 0x7ce   :  { %v7361_v49 = vpop.eup %6424 }
 0x7cf   :  { %v7363_v37 = vpop.eup %6426  ;;  %1516 = vperm.xlu1 %6384, %v7361_v49  }
 0x7d0   :  { %1519 = vperm.xlu0 %6385, %v7363_v37   ;;  %v7367_v21 = vpop.eup %6428 }
 0x7d1   :  { %v7369_v12 = vpop.eup %6430 }
 0x7d2   :  { %v7373_v27 = vpop.eup %6432 }
 0x7d3   :  { %1522 = vperm.xlu1 %6384, %v7367_v21   ;;  %v7375_v34 = vpop.eup %6434 }
 0x7d4   :  { %1528 = vperm.xlu0 %6385, %v7369_v12   ;;  %v7379_v35 = vpop.eup %6436 }
 0x7d5   :  { %v6439_v56 = vpop.eup %6438 }
 0x7d7   :  { %1525 = vperm.xlu1 %6384, %v7373_v27  }
 0x7d8   :  { %1534 = vperm.xlu0 %6385, %v7375_v34  }
 0x7db   :  { %1531 = vperm.xlu1 %6384, %v7379_v35  }
 0x7df   :  { %1537 = vperm.xlu1 %6384, %v6439_v56  }
 0x7e3   :  { %1234 = vrot.lane.b32.xlu1 %v7012_v1, %s6713_s3 }
 0x835   :  { %v1130_v38 = vpop.xlane.xlu0 %1129 }
 0x836   :  { %v1131_v32 = vcvt.f32.s32 %v1130_v38 }
 0x838   :  { %v1134_v2 = vadd.s32 %v1133_v63, %v1131_v32 }
 0x83a   :  { %vm1135_vm14 = vcmp.eq.s32.totalorder %v6953_v57, %v1134_v2 }
 0x83b   :  { %5927 = vmatmul.mubr.msk.f32.vlgmr.msra.gmra.mrb[6].mxu1 %vm1135_vm14, %v8754_v0 }
 0x83c   :  { %5994 = vmatprep.mubr.msk.f32.mxu1 %vm6709_vm1, %v8756_v15 }
 0x84e   :  { %v1517_v55 = vpop.permute.xlu1 %1516 }
 0x84f   :  { %v1520_v5 = vpop.permute.xlu0 %1519  ;;  %v1542_v25 = vrot.slane %v1517_v55, %v6957_v59 }
 0x850   :  { %v1546_v1 = vrot.slane %v1520_v5, %v6957_v59 }
 0x852   :  { %v1523_v22 = vpop.permute.xlu1 %1522  ;;  %v1571_v9 = vsel %vm607_vm4, %v1546_v1, %v1542_v25 }
 0x853   :  { %v1550_v17 = vrot.slane %v1523_v22, %v6957_v59  ;;  %v1529_v43 = vpop.permute.xlu0 %1528 }
 0x854   :  { %v1558_v11 = vrot.slane %v1529_v43, %v6957_v59 }
 0x855   :  { %v1572_v44 = vsel %vm609_vm5, %v1550_v17, %v1571_v9 }
 0x856   :  { %v1526_v24 = vpop.permute.xlu1 %1525 }
 0x857   :  { %v1554_v36 = vrot.slane %v1526_v24, %v6957_v59  ;;  %v1535_v50 = vpop.permute.xlu0 %1534 }
 0x858   :  { %v1566_v63 = vrot.slane %v1535_v50, %v6957_v59 }
 0x859   :  { %v1573_v7 = vsel %vm611_vm6, %v1554_v36, %v1572_v44 }
 0x85a   :  { %v1532_v39 = vpop.permute.xlu1 %1531  ;;  %v1574_v30 = vsel %vm613_vm7, %v1558_v11, %v1573_v7 }
 0x85b   :  { %v1562_v33 = vrot.slane %v1532_v39, %v6957_v59 }
 0x85d   :  { %v1575_v38 = vsel %vm615_vm8, %v1562_v33, %v1574_v30 }
 0x85e   :  { %v1538_v32 = vpop.permute.xlu1 %1537  ;;  %v1576_v55 = vsel %vm617_vm9, %v1566_v63, %v1575_v38 }
 0x85f   :  { %v1570_v2 = vrot.slane %v1538_v32, %v6957_v59 }
 0x861   :  { %v1577_v5 = vsel %vm619_vm10, %v1570_v2, %v1576_v55 }
 0x862   :  { %v1579_v22 = vsel %vm622_vm11, %v1577_v5, 0.0 }
 0x863   :  { %1580 = vadd.xlane.f32.xlu0 %v1579_v22 }
 0x8f0   :  { %v1581_v25 = vpop.xlane.xlu0 %1580 }
 0x8f1   :  { %v1614_v1 = vrot.slane %v1581_v25, %v7000_v58  ;;  %v1586_v17 = vrot.slane %v1581_v25, %v6892_v53  ;;  %v1590_v43 = vrot.slane %v1581_v25, %v6976_v28  ;;  %v1594_v24 = vrot.slane %v1581_v25, %v6979_v29 }
 0x8f2   :  { %v1598_v9 = vrot.slane %v1581_v25, %v6982_v31  ;;  %v1602_v11 = vrot.slane %v1581_v25, %v6988_v40  ;;  %v1606_v33 = vrot.slane %v1581_v25, %v6992_v46  ;;  %v1610_v63 = vrot.slane %v1581_v25, %v6996_v52  ;;  %v1235_v25 = vpop.permute.xlu1 %1234 }
 0x8f3   :  { %6440 = vrcp.f32 %v1614_v1 }
 0x8f4   :  { %6442 = vrcp.f32 %v1586_v17 }
 0x8f5   :  { %6444 = vrcp.f32 %v1590_v43  ;;  %v1237_v43 = vadd.f32 %v1235_v25, %v7165_v42 }
 0x8f6   :  { %6446 = vrcp.f32 %v1594_v24 }
 0x8f7   :  { %6448 = vrcp.f32 %v1598_v9 }
 0x8f8   :  { %6450 = vrcp.f32 %v1602_v11 }
 0x8f9   :  { %6452 = vrcp.f32 %v1606_v33 }
 0x8fa   :  { %6454 = vrcp.f32 %v1610_v63 }
 0x8fd   :  { %v6441_v36 = vpop.eup %6440 }
 0x8fe   :  { %v6443_v44 = vpop.eup %6442  ;;  %v1638_v7 = vmul.f32 %v6441_v36, %v6439_v56 }
 0x8ff   :  { %v1624_v39 = vmul.f32 %v6443_v44, %v7361_v49  ;;  %v6445_v50 = vpop.eup %6444 }
 0x900   :  { %1684 = vperm.xlu0 %6385, %v1638_v7   ;;  %v1626_v30 = vmul.f32 %v6445_v50, %v7363_v37  ;;  %v6447_v38 = vpop.eup %6446 }
 0x901   :  { %1649 = vperm.xlu1 %6384, %v1624_v39   ;;  %v1628_v56 = vmul.f32 %v6447_v38, %v7367_v21  ;;  %v6449_v32 = vpop.eup %6448 }
 0x902   :  { %v1630_v49 = vmul.f32 %v6449_v32, %v7373_v27  ;;  %v6451_v2 = vpop.eup %6450 }
 0x903   :  { %v1632_v22 = vmul.f32 %v6451_v2, %v7369_v12  ;;  %v6453_v37 = vpop.eup %6452 }
 0x904   :  { %v1634_v1 = vmul.f32 %v6453_v37, %v7379_v35  ;;  %v6455_v17 = vpop.eup %6454 }
 0x905   :  { %1654 = vperm.xlu1 %6384, %v1626_v30   ;;  %v1636_v21 = vmul.f32 %v6455_v17, %v7375_v34 }
 0x909   :  { %1659 = vperm.xlu1 %6384, %v1628_v56  }
 0x90d   :  { %1664 = vperm.xlu1 %6384, %v1630_v49  }
 0x90e   :  { %v7416_v55 = vpop.f32.mrb[6].mxu1 }
 0x90f   :  { %v5928_v5 = vpop.f32.mrb[7].mxu1 }
 0x911   :  { %1669 = vperm.xlu1 %6384, %v1632_v22  }
 0x915   :  { %1674 = vperm.xlu1 %6384, %v1634_v1  }
 0x919   :  { %1679 = vperm.xlu1 %6384, %v1636_v21  }
 0x91d   :  { %1838 = vrot.lane.b32.xlu1 %v1237_v43, %s6714_s18 }
 0x921   :  { %1848 = vrot.lane.b32.xlu1 %v1237_v43, %s6713_s3 }
 0x97f   :  { %v7426_v36 = vpop.permute.xlu0 %1684 }
 0x980   :  { %v1650_v27 = vpop.permute.xlu1 %1649  ;;  %v1694_v42 = vmul.f32 %v7426_v36, %v7076_v18 }
 0x981   :  { %v1687_v24 = vmul.f32 %v1650_v27, %v7070_v14  ;;  %v1967_v21 = vrot.slane %v1650_v27, %v6957_v59 }
 0x982   :  { %v1744_v30 = vsel %vm311_vm3, %v1694_v42, 0.0 }
 0x983   :  { %v1695_v35 = vsel %vm311_vm3, %v1687_v24, 0.0  ;;  %v1745_v18 = vrot.slane %v1744_v30, 4 }
 0x984   :  { %v1655_v12 = vpop.permute.xlu1 %1654  ;;  %v1696_v11 = vrot.slane %v1695_v35, 4 }
 0x985   :  { %v1688_v9 = vmul.f32 %v1655_v12, %v7073_v51  ;;  %v1971_v5 = vrot.slane %v1655_v12, %v6957_v59  ;;  %v1746_v12 = vadd.f32 %v1745_v18, %v1744_v30 }
 0x986   :  { %v1697_v38 = vadd.f32 %v1696_v11, %v1695_v35 }
 0x987   :  { %v1702_v34 = vsel %vm311_vm3, %v1688_v9, 0.0 }
 0x988   :  { %v1660_v44 = vpop.permute.xlu1 %1659  ;;  %v1703_v39 = vrot.slane %v1702_v34, 4  ;;  %v1698_v37 = vrot.slane %v1697_v38, 2 }
 0x989   :  { %v1689_v7 = vmul.f32 %v1660_v44, %v7082_v61  ;;  %v1975_v17 = vrot.slane %v1660_v44, %v6957_v59 }
 0x98a   :  { %v1704_v63 = vadd.f32 %v1703_v39, %v1702_v34  ;;  %v1699_v11 = vadd.f32 %v1698_v37, %v1697_v38  ;;  %v1995_v38 = vrot.slane %v7426_v36, %v6957_v59 }
 0x98b   :  { %v1709_v50 = vsel %vm311_vm3, %v1689_v7, 0.0  ;;  %v1996_v7 = vsel %vm607_vm4, %v1971_v5, %v1967_v21 }
 0x98c   :  { %v1710_v14 = vrot.slane %v1709_v50, 4  ;;  %v1665_v33 = vpop.permute.xlu1 %1664  ;;  %v1705_v1 = vrot.slane %v1704_v63, 2  ;;  %v1997_v27 = vsel %vm609_vm5, %v1975_v17, %v1996_v7 }
 0x98d   :  { %v1690_v51 = vmul.f32 %v1665_v33, %v7088_v20  ;;  %v1979_v43 = vrot.slane %v1665_v33, %v6957_v59 }
 0x98e   :  { %v1711_v32 = vadd.f32 %v1710_v14, %v1709_v50  ;;  %v1706_v39 = vadd.f32 %v1705_v1, %v1704_v63 }
 0x98f   :  { %v1716_v56 = vsel %vm311_vm3, %v1690_v51, 0.0  ;;  %v1998_v33 = vsel %vm611_vm6, %v1979_v43, %v1997_v27 }
 0x990   :  { %v1717_v49 = vrot.slane %v1716_v56, 4  ;;  %v1670_v61 = vpop.permute.xlu1 %1669  ;;  %v1712_v25 = vrot.slane %v1711_v32, 2  ;;  %v1707_v37 = vrot.slane %v1706_v39, 1 }
 0x991   :  { %v1691_v2 = vmul.f32 %v1670_v61, %v7091_v23  ;;  %v1983_v23 = vrot.slane %v1670_v61, %v6957_v59 }
 0x992   :  { %v1718_v22 = vadd.f32 %v1717_v49, %v1716_v56  ;;  %v1713_v14 = vadd.f32 %v1712_v25, %v1711_v32  ;;  %v1747_v32 = vrot.slane %v1746_v12, 2  ;;  %v1700_v25 = vrot.slane %v1699_v11, 1 }
 0x993   :  { %v1723_v20 = vsel %vm311_vm3, %v1691_v2, 0.0 }
 0x994   :  { %v1724_v24 = vrot.slane %v1723_v20, 4  ;;  %v1675_v9 = vpop.permute.xlu1 %1674  ;;  %v1719_v35 = vrot.slane %v1718_v22, 2 }
 0x995   :  { %v1692_v34 = vmul.f32 %v1675_v9, %v7097_v41  ;;  %v1987_v44 = vrot.slane %v1675_v9, %v6957_v59  ;;  %v1999_v41 = vsel %vm613_vm7, %v1983_v23, %v1998_v33  ;;  %v1708_v23 = vadd.f32 %v1707_v37, %v1706_v39 }
 0x996   :  { %v1725_v42 = vadd.f32 %v1724_v24, %v1723_v20  ;;  %v1720_v61 = vadd.f32 %v1719_v35, %v1718_v22  ;;  %v1714_v22 = vrot.slane %v1713_v14, 1  ;;  %v1748_v35 = vadd.f32 %v1747_v32, %v1746_v12 }
 0x997   :  { %v1730_v50 = vsel %vm311_vm3, %v1692_v34, 0.0  ;;  %v2000_v5 = vsel %vm615_vm8, %v1987_v44, %v1999_v41  ;;  %v1701_v44 = vadd.f32 %v1700_v25, %v1699_v11 }
 0x998   :  { %v1726_v51 = vrot.slane %v1725_v42, 2  ;;  %v1731_v56 = vrot.slane %v1730_v50, 4  ;;  %v1680_v49 = vpop.permute.xlu1 %1679  ;;  %v1721_v43 = vrot.slane %v1720_v61, 1  ;;  %v1715_v34 = vadd.f32 %v1714_v22, %v1713_v14 }
 0x999   :  { %v1693_v30 = vmul.f32 %v1680_v49, %v7107_v8  ;;  %v1991_v2 = vrot.slane %v1680_v49, %v6957_v59 }
 0x99a   :  { %v1727_v63 = vadd.f32 %v1726_v51, %v1725_v42  ;;  %v1732_v18 = vadd.f32 %v1731_v56, %v1730_v50  ;;  %v1722_v27 = vadd.f32 %v1721_v43, %v1720_v61  ;;  %v1749_v51 = vrot.slane %v1748_v35, 1 }
 0x99b   :  { %v1737_v1 = vsel %vm311_vm3, %v1693_v30, 0.0  ;;  %v2001_v17 = vsel %vm617_vm9, %v1991_v2, %v2000_v5  ;;  %v1759_v56 = vsel %vm607_vm4, %v1708_v23, %v1701_v44  ;;  %v2042_v23 = vld [vmem:[%s8745_s4 + $0x8] sm:$0xff] }
 0x99c   :  { %v1733_v20 = vrot.slane %v1732_v18, 2  ;;  %v1738_v21 = vrot.slane %v1737_v1, 4  ;;  %v2002_v8 = vsel %vm619_vm10, %v1995_v38, %v2001_v17  ;;  %v1728_v36 = vrot.slane %v1727_v63, 1 }
 0x99d   :  { %2005 = vst.msk [vmem:[#allocation6 + $0x8] sm:$0xff] %vm622_vm11, %v2002_v8  ;;  %v1760_v41 = vsel %vm609_vm5, %v1715_v34, %v1759_v56  ;;  %v1750_v39 = vadd.f32 %v1749_v51, %v1748_v35  ;;  %v2041_v35 = vld [vmem:[%s8745_s4] sm:$0xff] }
 0x99e   :  { %v1734_v24 = vadd.f32 %v1733_v20, %v1732_v18  ;;  %v1739_v9 = vadd.f32 %v1738_v21, %v1737_v1  ;;  %v1729_v50 = vadd.f32 %v1728_v36, %v1727_v63  ;;  %v1761_v2 = vsel %vm611_vm6, %v1722_v27, %v1760_v41  ;;  %v1839_v18 = vpop.permute.xlu1 %1838  ;;  %v7532_v41 = vld [vmem:[#allocation2] sm:$0xff] }
 0x99f   :  { %v7481_v34 = vpack.c.bf16 %v2042_v23, %v2041_v35 }
 0x9a0   :  { %v1735_v7 = vrot.slane %v1734_v24, 1  ;;  %v1740_v42 = vrot.slane %v1739_v9, 2  ;;  %v1762_v12 = vsel %vm613_vm7, %v1729_v50, %v1761_v2 }
 0x9a2   :  { %v1741_v33 = vadd.f32 %v1740_v42, %v1739_v9  ;;  %v1736_v49 = vadd.f32 %v1735_v7, %v1734_v24  ;;  %v1849_v22 = vpop.permute.xlu1 %1848  ;;  %v2044_v7 = vld [vmem:[%s8745_s4 + $0x18] sm:$0xff] }
 0x9a4   :  { %v1742_v30 = vrot.slane %v1741_v33, 1  ;;  %v1763_v14 = vsel %vm615_vm8, %v1736_v49, %v1762_v12 }
 0x9a6   :  { %v1743_v38 = vadd.f32 %v1742_v30, %v1741_v33 }
 0x9a8   :  { %v1764_v11 = vsel %vm617_vm9, %v1743_v38, %v1763_v14  ;;  %v7538_v14 = vld [vmem:[#allocation2 + $0x8] sm:$0xff] }
 0x9a9   :  { %v1765_v61 = vsel %vm619_vm10, %v1750_v39, %v1764_v11  ;;  %v7540_v11 = vld [vmem:[#allocation2 + $0x10] sm:$0xff] }
 0x9aa   :  { %v1834_v63 = vadd.f32 %v7416_v55, %v1765_v61 }
 0x9ac   :  { %v1841_v5 = vadd.f32 %v1839_v18, %v1834_v63  ;;  %v7546_v18 = vld [vmem:[%s8743_s2] ss:$0 sm:$0xff] }
 0x9ae   :  { %v5629_v32 = vmul.f32 -1.442695, %v1841_v5 }
 0x9b0   :  { %6456 = vpow2.f32 %v5629_v32 }
 0x9ba   :  { %v6457_v37 = vpop.eup %6456 }
 0x9bb   :  { %v1845_v1 = vadd.f32 1.0, %v6457_v37 }
 0x9bd   :  { %6458 = vrcp.f32 %v1845_v1 }
 0x9c7   :  { %v6459_v17 = vpop.eup %6458 }
 0x9c8   :  { %v1851_v20 = vmul.f32 %v6459_v17, %v1849_v22  ;;  %v1858_v43 = vsub.f32 1.0, %v6459_v17  ;;  %v1864_v36 = vmul.f32 %v6459_v17, %v7148_v26  ;;  %v2043_v26 = vld [vmem:[%s8745_s4 + $0x10] sm:$0xff]  ;;  %v7552_v17 = vld [vmem:[#allocation2 + $0x20] sm:$0xff] }
 0x9c9   :  { %v7491_v44 = vpack.c.bf16 %v2044_v7, %v2043_v26 }
 0x9ca   :  { %1853 = vrot.lane.b32.xlu1 %v1851_v20, %s6715_s21  ;;  %v7554_v20 = vld [vmem:[#allocation2 + $0x18] sm:$0xff] }
 0xa3c   :  { %v1854_v21 = vpop.permute.xlu1 %1853 }
 0xa3d   :  { %v1856_v8 = vadd.f32 %v1854_v21, %v1834_v63  ;;  %v7556_v21 = vld [vmem:[#allocation2 + $0x28] sm:$0xff] }
 0xa3f   :  { %6460 = vtanh.f32 %v1856_v8 }
 0xa49   :  { %v6461_v25 = vpop.eup %6460 }
 0xa4a   :  { %1860 = vrot.lane.b32.xlu1 %v6461_v25, %s6714_s18 }
 0xabc   :  { %v1861_v55 = vpop.permute.xlu1 %1860 }
 0xabd   :  { %v1863_v24 = vmul.f32 %v1861_v55, %v1858_v43 }
 0xabf   :  { %v7471_v9 = vadd.f32 %v1864_v36, %v1863_v24 }
 0xac1   :  { %1878 = vrot.lane.b32.xlu1 %v7471_v9, %s6714_s18 }
 0xb33   :  { %v1879_v42 = vpop.permute.xlu1 %1878 }
 0xb34   :  { %5938 = vmatmul.mubr.msk.f32.vlgmr.msra.gmra.mrb[16].mxu0 %vm195_vm2, %v1879_v42 }
 0xb35   :  { %6226 = vmatpush3.bf16.msra.mxu0 %v7481_v34  ;;  %5948 = vmatprep.mubr.msk.f32.mxu0 %vm6709_vm1, %v8756_v15 }
 0xb36   :  { %6227 = vmatprep.subr.bf16.mxu0 %v8758_v10 }
 0xb39   :  { %6229 = vmatpush3.bf16.msra.mxu0 %v7491_v44 }
 0xb3a   :  { %6230 = vmatprep.subr.bf16.mxu0 %v8758_v10 }
 0xb3c   :  { %5949 = vmatmul.mubr.msk.f32.vlgmr.msra.gmra.mrb[18].mxu0 %vm195_vm2, %v1879_v42 }
 0xb3d   :  { %6232 = vmatpush3.bf16.msra.mxu0 %v7272_v60  ;;  %5983 = vmatprep.mubr.msk.f32.mxu0 %vm6709_vm1, %v8756_v15 }
 0xb3e   :  { %6233 = vmatprep.subr.bf16.mxu0 %v8758_v10 }
 0xb41   :  { %6235 = vmatpush3.bf16.msra.mxu0 %v7278_v54 }
 0xb42   :  { %6236 = vmatprep.subr.bf16.mxu0 %v8758_v10 }
 0xb45   :  { %6238 = vmatpush3.bf16.msra.mxu0 %v7288_v3 }
 0xb46   :  { %6239 = vmatprep.subr.bf16.mxu0 %v8758_v10 }
 0xb49   :  { %6241 = vmatpush3.bf16.msra.mxu0 %v7298_v19 }
 0xb4a   :  { %6242 = vmatprep.subr.bf16.mxu0 %v8758_v10 }
 0xb4d   :  { %6244 = vmatpush3.bf16.msra.mxu0 %v7308_v62 }
 0xb4e   :  { %6245 = vmatprep.subr.bf16.mxu0 %v8758_v10 }
 0xb51   :  { %6247 = vmatpush3.bf16.msra.mxu0 %v7318_v4 }
 0xb52   :  { %6248 = vmatprep.subr.bf16.mxu0 %v8758_v10 }
 0xb55   :  { %6250 = vmatpush3.bf16.msra.mxu0 %v7328_v6 }
 0xb56   :  { %6251 = vmatprep.subr.bf16.mxu0 %v8758_v10 }
 0xb59   :  { %6253 = vmatpush3.bf16.msra.mxu0 %v7341_v16 }
 0xb5a   :  { %6290 = vmatprep.subr.bf16.mxu0 %v8758_v10 }
 0xc07   :  { %v1948_v60 = vpop.f32.mrb[16].mxu0 }
 0xc08   :  { %v7518_v54 = vadd.f32 %v7163_v47, %v1948_v60  ;;  %v5939_v3 = vpop.f32.mrb[17].mxu0  ;;  %v7565_v60 = vld [vmem:[#allocation2 + $0x38] sm:$0xff] }
 0xc0a   :  { %8776 = vst [vmem:[#allocation13_spill] sm:$0xff] %v7518_v54  ;;  %1952 = vmax.xlane.f32.xlu0 %v7518_v54 }
 0xc0f   :  { %v7521_v19 = vpop.f32.mrb[18].mxu0 }
 0xc10   :  { %v2134_v62 = vcombine.high %v7521_v19, %v7521_v19  ;;  %v2141_v4 = vrot.slane %v7521_v19, %v6882_v48  ;;  %v5950_v6 = vpop.f32.mrb[19].mxu0 }
 0xc12   :  { %v2148_v16 = vrot.slane %v2134_v62, %v6882_v48  ;;  %v2149_v27 = vcombine.high %v2141_v4, %v2141_v4  ;;  %v2157_v50 = vrot.slane %v2141_v4, %v6882_v48 }
 0xc14   :  { %v2150_v33 = vcombine.high %v2148_v16, %v2148_v16  ;;  %v2164_v47 = vrot.slane %v2148_v16, %v6882_v48  ;;  %v2171_v51 = vrot.slane %v2149_v27, %v6882_v48  ;;  %v2179_v56 = vcombine.high %v2157_v50, %v2157_v50  ;;  %v7569_v16 = vld [vmem:[#allocation2 + $0x30] sm:$0xff] }
 0xc15   :  { %v2186_v49 = vrot.slane %v2157_v50, %v6892_v53 }
 0xc16   :  { %v2190_v30 = vrot.slane %v2171_v51, %v6892_v53  ;;  %v2181_v2 = vcombine.high %v2171_v51, %v2171_v51  ;;  %v2194_v38 = vrot.slane %v2179_v56, %v6892_v53  ;;  %v2178_v12 = vrot.slane %v2150_v33, %v6882_v48 }
 0xc17   :  { %v2223_v39 = vadd.f32 %v2186_v49, %v7532_v41  ;;  %v2202_v61 = vrot.slane %v2164_v47, %v6892_v53  ;;  %v2180_v63 = vcombine.high %v2164_v47, %v2164_v47 }
 0xc18   :  { %v2224_v5 = vadd.f32 %v2190_v30, %v7538_v14  ;;  %v2198_v32 = vrot.slane %v2181_v2, %v6892_v53  ;;  %v2225_v37 = vadd.f32 %v2194_v38, %v7540_v11  ;;  %v2206_v1 = vrot.slane %v2178_v12, %v6892_v53 }
 0xc19   :  { %v2231_v22 = vmax.f32 %v2223_v39, 0.0  ;;  %v2227_v8 = vadd.f32 %v2202_v61, %v7552_v17  ;;  %v2182_v25 = vcombine.high %v2178_v12, %v2178_v12  ;;  %v2210_v43 = vrot.slane %v2180_v63, %v6892_v53 }
 0xc1a   :  { %v2232_v55 = vmax.f32 %v2224_v5, 0.0  ;;  %v2226_v36 = vadd.f32 %v2198_v32, %v7554_v20  ;;  %v2233_v24 = vmax.f32 %v2225_v37, 0.0  ;;  %v2228_v35 = vadd.f32 %v2206_v1, %v7556_v21 }
 0xc1b   :  { %v2246_v23 = vmul.f32 %v7546_v18, %v2231_v22  ;;  %v2214_v26 = vrot.slane %v2182_v25, %v6892_v53  ;;  %v2235_v4 = vmax.f32 %v2227_v8, 0.0  ;;  %v2229_v47 = vadd.f32 %v2210_v43, %v7569_v16 }
 0xc1c   :  { %v2247_v7 = vmul.f32 %v7546_v18, %v2232_v55  ;;  %v2234_v42 = vmax.f32 %v2226_v36, 0.0  ;;  %v2236_v62 = vmax.f32 %v2228_v35, 0.0  ;;  %v2248_v33 = vmul.f32 %v7546_v18, %v2233_v24 }
 0xc1d   :  { %v2254_v3 = vsel %vm195_vm2, %v2246_v23, 0.0  ;;  %v2230_v6 = vadd.f32 %v2214_v26, %v7565_v60  ;;  %v2250_v2 = vmul.f32 %v7546_v18, %v2235_v4  ;;  %v2237_v38 = vmax.f32 %v2229_v47, 0.0 }
 0xc1e   :  { %2255 = vadd.xlane.f32.xlu1 %v2254_v3  ;;  %v2257_v27 = vsel %vm195_vm2, %v2247_v7, 0.0  ;;  %v2249_v50 = vmul.f32 %v7546_v18, %v2234_v42  ;;  %v2251_v56 = vmul.f32 %v7546_v18, %v2236_v62  ;;  %v2260_v30 = vsel %vm195_vm2, %v2248_v33, 0.0 }
 0xc1f   :  { %2258 = vadd.xlane.f32.xlu0 %v2257_v27  ;;  %v2238_v49 = vmax.f32 %v2230_v6, 0.0  ;;  %v2266_v61 = vsel %vm195_vm2, %v2250_v2, 0.0  ;;  %v2252_v63 = vmul.f32 %v7546_v18, %v2237_v38 }
 0xc20   :  { %v2263_v51 = vsel %vm195_vm2, %v2249_v50, 0.0  ;;  %v2269_v12 = vsel %vm195_vm2, %v2251_v56, 0.0 }
 0xc21   :  { %v2253_v39 = vmul.f32 %v7546_v18, %v2238_v49  ;;  %v2272_v32 = vsel %vm195_vm2, %v2252_v63, 0.0 }
 0xc22   :  { %2264 = vadd.xlane.f32.xlu1 %v2263_v51 }
 0xc23   :  { %2261 = vadd.xlane.f32.xlu0 %v2260_v30  ;;  %v2275_v5 = vsel %vm195_vm2, %v2253_v39, 0.0 }
 0xc26   :  { %2270 = vadd.xlane.f32.xlu1 %v2269_v12 }
 0xc27   :  { %2267 = vadd.xlane.f32.xlu0 %v2266_v61 }
 0xc2a   :  { %2276 = vadd.xlane.f32.xlu1 %v2275_v5 }
 0xc2b   :  { %2273 = vadd.xlane.f32.xlu0 %v2272_v32 }
 0xc97   :  { %v7585_v37 = vpop.xlane.xlu0 %1952 }
 0xc98   :  { %8777 = vst [vmem:[#allocation14_spill] sm:$0xff] %v7585_v37  ;;  %vm2006_vm15 = vcmp.ge.f32.partialorder %v7518_v54, %v7585_v37 }
 0xc99   :  { %v2007_v1 = vsel %vm2006_vm15, %v6953_v57, 128 }
 0xc9a   :  { %v2009_v22 = vshra.s32 %v2007_v1, 16  ;;  %v2008_v12 = vand.u32 65535, %v2007_v1 }
 0xc9c   :  { %v2011_v8 = vcvt.s32.f32 %v2009_v22  ;;  %v2010_v61 = vcvt.s32.f32 %v2008_v12 }
 0xc9e   :  { %2012 = vmin.xlane.f32.xlu0 %v2011_v8 }
 0xcab   :  { %v2256_v25 = vpop.xlane.xlu1 %2255 }
 0xcac   :  { %v2259_v43 = vpop.xlane.xlu0 %2258  ;;  %v2289_v24 = vrot.slane %v2256_v25, %v6957_v59 }
 0xcad   :  { %v2293_v55 = vrot.slane %v2259_v43, %v6957_v59 }
 0xcaf   :  { %v2265_v36 = vpop.xlane.xlu1 %2264  ;;  %v2318_v26 = vsel %vm607_vm4, %v2293_v55, %v2289_v24 }
 0xcb0   :  { %v2262_v35 = vpop.xlane.xlu0 %2261  ;;  %v2301_v3 = vrot.slane %v2265_v36, %v6957_v59 }
 0xcb1   :  { %v2297_v23 = vrot.slane %v2262_v35, %v6957_v59 }
 0xcb3   :  { %v2319_v7 = vsel %vm609_vm5, %v2297_v23, %v2318_v26  ;;  %v2271_v42 = vpop.xlane.xlu1 %2270 }
 0xcb4   :  { %v2268_v62 = vpop.xlane.xlu0 %2267  ;;  %v2320_v6 = vsel %vm611_vm6, %v2301_v3, %v2319_v7  ;;  %v2309_v33 = vrot.slane %v2271_v42, %v6957_v59 }
 0xcb5   :  { %v2305_v4 = vrot.slane %v2268_v62, %v6957_v59 }
 0xcb7   :  { %v2321_v27 = vsel %vm613_vm7, %v2305_v4, %v2320_v6  ;;  %v2277_v50 = vpop.xlane.xlu1 %2276 }
 0xcb8   :  { %v2274_v47 = vpop.xlane.xlu0 %2273  ;;  %v2317_v56 = vrot.slane %v2277_v50, %v6957_v59  ;;  %v2322_v49 = vsel %vm615_vm8, %v2309_v33, %v2321_v27 }
 0xcb9   :  { %v2313_v51 = vrot.slane %v2274_v47, %v6957_v59 }
 0xcbb   :  { %v2323_v30 = vsel %vm617_vm9, %v2313_v51, %v2322_v49 }
 0xcbc   :  { %v2324_v2 = vsel %vm619_vm10, %v2317_v56, %v2323_v30 }
 0xcbd   :  { %v2326_v38 = vsel %vm622_vm11, %v2324_v2, -inf }
 0xcbe   :  { %2327 = vmax.xlane.f32.xlu1 %v2326_v38 }
 0xd2b   :  { %v2013_v39 = vpop.xlane.xlu0 %2012 }
 0xd2c   :  { %vm2014_vm0 = vcmp.eq.f32.partialorder %v2011_v8, %v2013_v39 }
 0xd2d   :  { %v2015_v63 = vsel %vm2014_vm0, %v2010_v61, inf }
 0xd2e   :  { %2016 = vmin.xlane.f32.xlu0 %v2015_v63 }
 0xd4b   :  { %v2328_v5 = vpop.xlane.xlu1 %2327 }
 0xd4c   :  { %v2333_v32 = vrot.slane %v2328_v5, %v6892_v53  ;;  %v2337_v22 = vrot.slane %v2328_v5, %v6976_v28  ;;  %v2341_v55 = vrot.slane %v2328_v5, %v6979_v29  ;;  %v2349_v24 = vrot.slane %v2328_v5, %v6988_v40 }
 0xd4d   :  { %v2357_v23 = vrot.slane %v2328_v5, %v6996_v52  ;;  %v2345_v1 = vrot.slane %v2328_v5, %v6982_v31  ;;  %v2353_v51 = vrot.slane %v2328_v5, %v6992_v46  ;;  %v2361_v2 = vrot.slane %v2328_v5, %v7000_v58 }
 0xd4e   :  { %v2371_v26 = vsub.f32 %v2259_v43, %v2337_v22  ;;  %v2370_v7 = vsub.f32 %v2256_v25, %v2333_v32  ;;  %v2374_v3 = vsub.f32 %v2268_v62, %v2349_v24  ;;  %v2372_v4 = vsub.f32 %v2262_v35, %v2341_v55  ;;  %v7638_v32 = vld [vmem:[%s8746_s5] ss:$0 sm:$0xff] }
 0xd4f   :  { %v2376_v33 = vsub.f32 %v2274_v47, %v2357_v23  ;;  %v2373_v49 = vsub.f32 %v2265_v36, %v2345_v1  ;;  %v2375_v43 = vsub.f32 %v2271_v42, %v2353_v51  ;;  %v2377_v62 = vsub.f32 %v2277_v50, %v2361_v2 }
 0xd50   :  { %v2380_v8 = vmul.f32 1.442695, %v2371_v26  ;;  %v2378_v6 = vmul.f32 1.442695, %v2370_v7  ;;  %v2386_v27 = vmul.f32 1.442695, %v2374_v3  ;;  %v2019_v22 = vcvt.f32.s32 %v2013_v39 }
 0xd51   :  { %v2382_v56 = vmul.f32 1.442695, %v2372_v4  ;;  %v2390_v30 = vmul.f32 1.442695, %v2376_v33  ;;  %v2384_v25 = vmul.f32 1.442695, %v2373_v49 }
 0xd52   :  { %6462 = vpow2.f32 %v2380_v8  ;;  %v2388_v35 = vmul.f32 1.442695, %v2375_v43  ;;  %v2392_v36 = vmul.f32 1.442695, %v2377_v62  ;;  %v2020_v24 = vshll.u32 %v2019_v22, 16 }
 0xd53   :  { %6464 = vpow2.f32 %v2378_v6 }
 0xd54   :  { %6466 = vpow2.f32 %v2386_v27 }
 0xd55   :  { %6468 = vpow2.f32 %v2382_v56 }
 0xd56   :  { %6470 = vpow2.f32 %v2390_v30 }
 0xd57   :  { %6472 = vpow2.f32 %v2384_v25 }
 0xd58   :  { %6474 = vpow2.f32 %v2388_v35 }
 0xd59   :  { %6476 = vpow2.f32 %v2392_v36 }
 0xd5c   :  { %v7614_v38 = vpop.eup %6462 }
 0xd5d   :  { %v7616_v12 = vpop.eup %6464  ;;  %2406 = vperm.xlu0 %6385, %v7614_v38  }
 0xd5e   :  { %2403 = vperm.xlu1 %6384, %v7616_v12   ;;  %v7620_v47 = vpop.eup %6466 }
 0xd5f   :  { %v7622_v61 = vpop.eup %6468 }
 0xd60   :  { %v7626_v42 = vpop.eup %6470 }
 0xd61   :  { %2415 = vperm.xlu0 %6385, %v7620_v47   ;;  %v7628_v50 = vpop.eup %6472 }
 0xd62   :  { %2409 = vperm.xlu1 %6384, %v7622_v61   ;;  %v7632_v63 = vpop.eup %6474 }
 0xd63   :  { %v6477_v5 = vpop.eup %6476 }
 0xd65   :  { %2421 = vperm.xlu0 %6385, %v7626_v42  }
 0xd66   :  { %2412 = vperm.xlu1 %6384, %v7628_v50  }
 0xd6a   :  { %2418 = vperm.xlu1 %6384, %v7632_v63  }
 0xd6e   :  { %2424 = vperm.xlu1 %6384, %v6477_v5  }
 0xd72   :  { %2121 = vrot.lane.b32.xlu1 %v7638_v32, %s6713_s3 }
 0xdbb   :  { %v2017_v55 = vpop.xlane.xlu0 %2016 }
 0xdbc   :  { %v2018_v23 = vcvt.f32.s32 %v2017_v55 }
 0xdbe   :  { %v2021_v26 = vadd.s32 %v2020_v24, %v2018_v23 }
 0xdc0   :  { %vm2022_vm12 = vcmp.eq.s32.totalorder %v6953_v57, %v2021_v26 }
 0xdc1   :  { %5984 = vmatmul.mubr.msk.f32.vlgmr.msra.gmra.mrb[20].mxu0 %vm2022_vm12, %v8754_v0 }
 0xdc2   :  { %6051 = vmatprep.mubr.msk.f32.mxu0 %vm6709_vm1, %v8756_v15 }
 0xddc   :  { %v2407_v1 = vpop.permute.xlu0 %2406 }
 0xddd   :  { %v2404_v7 = vpop.permute.xlu1 %2403  ;;  %v2433_v4 = vrot.slane %v2407_v1, %v6957_v59 }
 0xdde   :  { %v2429_v8 = vrot.slane %v2404_v7, %v6957_v59 }
 0xde0   :  { %v2416_v6 = vpop.permute.xlu0 %2415  ;;  %v2458_v33 = vsel %vm607_vm4, %v2433_v4, %v2429_v8 }
 0xde1   :  { %v2410_v3 = vpop.permute.xlu1 %2409  ;;  %v2445_v30 = vrot.slane %v2416_v6, %v6957_v59 }
 0xde2   :  { %v2437_v39 = vrot.slane %v2410_v3, %v6957_v59 }
 0xde4   :  { %v2459_v56 = vsel %vm609_vm5, %v2437_v39, %v2458_v33  ;;  %v2422_v25 = vpop.permute.xlu0 %2421 }
 0xde5   :  { %v2413_v27 = vpop.permute.xlu1 %2412  ;;  %v2453_v36 = vrot.slane %v2422_v25, %v6957_v59 }
 0xde6   :  { %v2441_v51 = vrot.slane %v2413_v27, %v6957_v59 }
 0xde8   :  { %v2460_v49 = vsel %vm611_vm6, %v2441_v51, %v2459_v56 }
 0xde9   :  { %v2419_v2 = vpop.permute.xlu1 %2418  ;;  %v2461_v35 = vsel %vm613_vm7, %v2445_v30, %v2460_v49 }
 0xdea   :  { %v2449_v43 = vrot.slane %v2419_v2, %v6957_v59 }
 0xdec   :  { %v2462_v62 = vsel %vm615_vm8, %v2449_v43, %v2461_v35 }
 0xded   :  { %v2425_v22 = vpop.permute.xlu1 %2424  ;;  %v2463_v24 = vsel %vm617_vm9, %v2453_v36, %v2462_v62 }
 0xdee   :  { %v2457_v55 = vrot.slane %v2425_v22, %v6957_v59 }
 0xdf0   :  { %v2464_v23 = vsel %vm619_vm10, %v2457_v55, %v2463_v24 }
 0xdf1   :  { %v2466_v26 = vsel %vm622_vm11, %v2464_v23, 0.0 }
 0xdf2   :  { %2467 = vadd.xlane.f32.xlu0 %v2466_v26 }
 0xe7f   :  { %v2468_v7 = vpop.xlane.xlu0 %2467 }
 0xe80   :  { %v2501_v1 = vrot.slane %v2468_v7, %v7000_v58  ;;  %v2473_v3 = vrot.slane %v2468_v7, %v6892_v53  ;;  %v2477_v4 = vrot.slane %v2468_v7, %v6976_v28  ;;  %v2481_v8 = vrot.slane %v2468_v7, %v6979_v29 }
 0xe81   :  { %v2485_v39 = vrot.slane %v2468_v7, %v6982_v31  ;;  %v2489_v51 = vrot.slane %v2468_v7, %v6988_v40  ;;  %v2493_v30 = vrot.slane %v2468_v7, %v6992_v46 }
 0xe82   :  { %6478 = vrcp.f32 %v2501_v1  ;;  %v7682_v1 = vld [vmem:[#allocation3] sm:$0xff] }
 0xe83   :  { %6480 = vrcp.f32 %v2473_v3  ;;  %v7685_v3 = vld [vmem:[#allocation3 + $0x8] sm:$0xff] }
 0xe84   :  { %6482 = vrcp.f32 %v2477_v4 }
 0xe85   :  { %6484 = vrcp.f32 %v2481_v8 }
 0xe86   :  { %6486 = vrcp.f32 %v2485_v39  ;;  %v7692_v39 = vld [vmem:[#allocation3 + $0x10] sm:$0xff] }
 0xe87   :  { %6488 = vrcp.f32 %v2489_v51 }
 0xe88   :  { %6490 = vrcp.f32 %v2493_v30 }
 0xe8c   :  { %v6479_v6 = vpop.eup %6478 }
 0xe8d   :  { %v6481_v27 = vpop.eup %6480  ;;  %v2525_v33 = vmul.f32 %v6479_v6, %v6477_v5  ;;  %v2497_v5 = vrot.slane %v2468_v7, %v6996_v52  ;;  %v2122_v7 = vpop.permute.xlu1 %2121 }
 0xe8e   :  { %v2511_v56 = vmul.f32 %v6481_v27, %v7616_v12  ;;  %v6483_v49 = vpop.eup %6482 }
 0xe8f   :  { %2571 = vperm.xlu0 %6385, %v2525_v33   ;;  %v2513_v2 = vmul.f32 %v6483_v49, %v7614_v38  ;;  %v6485_v25 = vpop.eup %6484  ;;  %6492 = vrcp.f32 %v2497_v5  ;;  %v7695_v33 = vld [vmem:[#allocation3 + $0x38] sm:$0xff] }
 0xe90   :  { %2536 = vperm.xlu1 %6384, %v2511_v56   ;;  %v2515_v62 = vmul.f32 %v6485_v25, %v7622_v61  ;;  %v6487_v36 = vpop.eup %6486  ;;  %v2124_v61 = vadd.f32 %v2122_v7, %v7521_v19  ;;  %v7700_v25 = vld [vmem:[#allocation3 + $0x18] sm:$0xff] }
 0xe91   :  { %v2517_v12 = vmul.f32 %v6487_v36, %v7628_v50  ;;  %v6489_v22 = vpop.eup %6488 }
 0xe92   :  { %v2519_v55 = vmul.f32 %v6489_v22, %v7620_v47  ;;  %v6491_v38 = vpop.eup %6490 }
 0xe93   :  { %v2521_v24 = vmul.f32 %v6491_v38, %v7632_v63 }
 0xe94   :  { %2541 = vperm.xlu1 %6384, %v2513_v2   ;;  %v7671_v43 = vpop.f32.mrb[20].mxu0 }
 0xe95   :  { %v5985_v35 = vpop.f32.mrb[21].mxu0 }
 0xe98   :  { %2546 = vperm.xlu1 %6384, %v2515_v62  }
 0xe99   :  { %v6493_v23 = vpop.eup %6492 }
 0xe9a   :  { %v2523_v26 = vmul.f32 %v6493_v23, %v7626_v42 }
 0xe9c   :  { %2551 = vperm.xlu1 %6384, %v2517_v12  }
 0xea0   :  { %2556 = vperm.xlu1 %6384, %v2519_v55  }
 0xea4   :  { %2561 = vperm.xlu1 %6384, %v2521_v24   ;;  %v7705_v24 = vld [vmem:[#allocation3 + $0x20] sm:$0xff] }
 0xea5   :  { %8778 = vst [vmem:[#allocation15_spill] sm:$0xff] %v7705_v24 }
 0xea8   :  { %2566 = vperm.xlu1 %6384, %v2523_v26  }
 0xeac   :  { %2725 = vrot.lane.b32.xlu1 %v2124_v61, %s6714_s18 }
 0xeb0   :  { %2735 = vrot.lane.b32.xlu1 %v2124_v61, %s6713_s3 }
 0xf0e   :  { %v7688_v8 = vpop.permute.xlu0 %2571 }
 0xf0f   :  { %v2537_v50 = vpop.permute.xlu1 %2536  ;;  %v2581_v51 = vmul.f32 %v7688_v8, %v7695_v33 }
 0xf10   :  { %v2574_v47 = vmul.f32 %v2537_v50, %v7682_v1 }
 0xf11   :  { %v2631_v62 = vsel %vm311_vm3, %v2581_v51, 0.0 }
 0xf12   :  { %v2582_v42 = vsel %vm311_vm3, %v2574_v47, 0.0  ;;  %v2632_v7 = vrot.slane %v2631_v62, 4 }
 0xf13   :  { %v2542_v63 = vpop.permute.xlu1 %2541  ;;  %v2583_v56 = vrot.slane %v2582_v42, 4 }
 0xf14   :  { %v2575_v4 = vmul.f32 %v2542_v63, %v7685_v3  ;;  %v2858_v61 = vrot.slane %v2542_v63, %v6957_v59 }
 0xf15   :  { %v2584_v36 = vadd.f32 %v2583_v56, %v2582_v42 }
 0xf16   :  { %v2589_v19 = vsel %vm311_vm3, %v2575_v4, 0.0 }
 0xf17   :  { %v2547_v6 = vpop.permute.xlu1 %2546  ;;  %v2590_v49 = vrot.slane %v2589_v19, 4  ;;  %v2585_v4 = vrot.slane %v2584_v36, 2 }
 0xf18   :  { %v2576_v27 = vmul.f32 %v2547_v6, %v7692_v39  ;;  %v2862_v0 = vrot.slane %v2547_v6, %v6957_v59 }
 0xf19   :  { %v2591_v12 = vadd.f32 %v2590_v49, %v2589_v19  ;;  %v2854_v19 = vrot.slane %v2537_v50, %v6957_v59  ;;  %v2586_v10 = vadd.f32 %v2585_v4, %v2584_v36 }
 0xf1a   :  { %v2596_v30 = vsel %vm311_vm3, %v2576_v27, 0.0 }
 0xf1b   :  { %v2597_v2 = vrot.slane %v2596_v30, 4  ;;  %v2552_v35 = vpop.permute.xlu1 %2551  ;;  %v2592_v27 = vrot.slane %v2591_v12, 2 }
 0xf1c   :  { %v2577_v5 = vmul.f32 %v2552_v35, %v7700_v25  ;;  %v2866_v56 = vrot.slane %v2552_v35, %v6957_v59 }
 0xf1d   :  { %v2598_v55 = vadd.f32 %v2597_v2, %v2596_v30  ;;  %v7713_v30 = vld [vmem:[#allocation3 + $0x28] sm:$0xff]  ;;  %v2593_v50 = vadd.f32 %v2592_v27, %v2591_v12 }
 0xf1e   :  { %v2603_v22 = vsel %vm311_vm3, %v2577_v5, 0.0  ;;  %8779 = vst [vmem:[#allocation16_spill] sm:$0xff] %v7713_v30 }
 0xf1f   :  { %v2604_v38 = vrot.slane %v2603_v22, 4  ;;  %v2557_v23 = vpop.permute.xlu1 %2556  ;;  %v2599_v51 = vrot.slane %v2598_v55, 2  ;;  %v2594_v27 = vrot.slane %v2593_v50, 1 }
 0xf20   :  { %v2578_v26 = vmul.f32 %v2557_v23, %v7705_v24  ;;  %v2870_v15 = vrot.slane %v2557_v23, %v6957_v59  ;;  %v7722_v23 = vld [vmem:[#allocation3 + $0x30] sm:$0xff] }
 0xf21   :  { %v2605_v47 = vadd.f32 %v2604_v38, %v2603_v22  ;;  %v2633_v22 = vadd.f32 %v2632_v7, %v2631_v62  ;;  %v2883_v38 = vsel %vm607_vm4, %v2858_v61, %v2854_v19  ;;  %v2600_v13 = vadd.f32 %v2599_v51, %v2598_v55 }
 0xf22   :  { %v2610_v42 = vsel %vm311_vm3, %v2578_v26, 0.0  ;;  %v2884_v45 = vsel %vm609_vm5, %v2862_v0, %v2883_v38  ;;  %v2882_v0 = vrot.slane %v7688_v8, %v6957_v59 }
 0xf23   :  { %v2611_v49 = vrot.slane %v2610_v42, 4  ;;  %v2562_v2 = vpop.permute.xlu1 %2561  ;;  %v2606_v5 = vrot.slane %v2605_v47, 2  ;;  %v2885_v54 = vsel %vm611_vm6, %v2866_v56, %v2884_v45  ;;  %v2634_v45 = vrot.slane %v2633_v22, 2 }
 0xf24   :  { %v2579_v63 = vmul.f32 %v2562_v2, %v7713_v30  ;;  %v2874_v26 = vrot.slane %v2562_v2, %v6957_v59  ;;  %v2886_v7 = vsel %vm613_vm7, %v2870_v15, %v2885_v54  ;;  %v2587_v56 = vrot.slane %v2586_v10, 1 }
 0xf25   :  { %v2612_v6 = vadd.f32 %v2611_v49, %v2610_v42  ;;  %v2607_v62 = vadd.f32 %v2606_v5, %v2605_v47  ;;  %v2601_v47 = vrot.slane %v2600_v13, 1  ;;  %v2595_v2 = vadd.f32 %v2594_v27, %v2593_v50 }
 0xf26   :  { %v2617_v35 = vsel %vm311_vm3, %v2579_v63, 0.0  ;;  %v2887_v55 = vsel %vm615_vm8, %v2874_v26, %v2886_v7 }
 0xf27   :  { %v2613_v37 = vrot.slane %v2612_v6, 2  ;;  %v2618_v24 = vrot.slane %v2617_v35, 4  ;;  %v2567_v30 = vpop.permute.xlu1 %2566  ;;  %v2608_v49 = vrot.slane %v2607_v62, 1  ;;  %v2602_v5 = vadd.f32 %v2601_v47, %v2600_v13 }
 0xf28   :  { %v2580_v61 = vmul.f32 %v2567_v30, %v7722_v23  ;;  %v2878_v36 = vrot.slane %v2567_v30, %v6957_v59  ;;  %v2635_v30 = vadd.f32 %v2634_v45, %v2633_v22 }
 0xf29   :  { %v2614_v12 = vadd.f32 %v2613_v37, %v2612_v6  ;;  %v2619_v4 = vadd.f32 %v2618_v24, %v2617_v35  ;;  %v2588_v6 = vadd.f32 %v2587_v56, %v2586_v10  ;;  %v2609_v26 = vadd.f32 %v2608_v49, %v2607_v62 }
 0xf2a   :  { %v2624_v42 = vsel %vm311_vm3, %v2580_v61, 0.0  ;;  %v2888_v19 = vsel %vm617_vm9, %v2878_v36, %v2887_v55  ;;  %v2636_v61 = vrot.slane %v2635_v30, 1 }
 0xf2b   :  { %v2620_v51 = vrot.slane %v2619_v4, 2  ;;  %v2625_v15 = vrot.slane %v2624_v42, 4  ;;  %v2889_v54 = vsel %vm619_vm10, %v2882_v0, %v2888_v19  ;;  %v2615_v8 = vrot.slane %v2614_v12, 1  ;;  %v2726_v45 = vpop.permute.xlu1 %2725 }
 0xf2c   :  { %2892 = vst.msk [vmem:[#allocation6 + $0x10] sm:$0xff] %vm622_vm11, %v2889_v54  ;;  %v2646_v36 = vsel %vm607_vm4, %v2595_v2, %v2588_v6  ;;  %v2637_v50 = vadd.f32 %v2636_v61, %v2635_v30  ;;  %v2755_v30 = vld [vmem:[%s8748_s7 + $0x10] sm:$0xff] }
 0xf2d   :  { %v2621_v37 = vadd.f32 %v2620_v51, %v2619_v4  ;;  %v2626_v24 = vadd.f32 %v2625_v15, %v2624_v42  ;;  %v2616_v35 = vadd.f32 %v2615_v8, %v2614_v12  ;;  %v2647_v55 = vsel %vm609_vm5, %v2602_v5, %v2646_v36  ;;  %v2756_v5 = vld [vmem:[%s8748_s7 + $0x18] sm:$0xff] }
 0xf2e   :  { %v2648_v54 = vsel %vm611_vm6, %v2609_v26, %v2647_v55  ;;  %v8781_v55 = vmov 0.0  }
 0xf2f   :  { %v2622_v63 = vrot.slane %v2621_v37, 1  ;;  %v2627_v38 = vrot.slane %v2626_v24, 2  ;;  %v2649_v22 = vsel %vm613_vm7, %v2616_v35, %v2648_v54  ;;  %v2736_v56 = vpop.permute.xlu1 %2735 }
 0xf31   :  { %v2628_v7 = vadd.f32 %v2627_v38, %v2626_v24  ;;  %v2623_v0 = vadd.f32 %v2622_v63, %v2621_v37  ;;  %v2753_v24 = vld [vmem:[%s8748_s7] sm:$0xff]  ;;  %v6258_v63 = vpack.c.bf16 %v2756_v5, %v2755_v30  ;;  %v8780_v38 = vmov 0.0|0.0  }
 0xf33   :  { %v2629_v19 = vrot.slane %v2628_v7, 1  ;;  %v2650_v13 = vsel %vm615_vm8, %v2623_v0, %v2649_v22 }
 0xf35   :  { %v2630_v4 = vadd.f32 %v2629_v19, %v2628_v7 }
 0xf37   :  { %v2651_v10 = vsel %vm617_vm9, %v2630_v4, %v2650_v13 }
 0xf38   :  { %v2652_v62 = vsel %vm619_vm10, %v2637_v50, %v2651_v10 }
 0xf39   :  { %v2721_v12 = vadd.f32 %v7671_v43, %v2652_v62  ;;  %v2754_v43 = vld [vmem:[%s8748_s7 + $0x8] sm:$0xff] }
 0xf3a   :  { %v6255_v2 = vpack.c.bf16 %v2754_v43, %v2753_v24 }
 0xf3b   :  { %v2728_v27 = vadd.f32 %v2726_v45, %v2721_v12 }
 0xf3c   :  { %6256 = vmatpush3.bf16.msra.mxu1 %v6255_v2  ;;  %6292 = vmatpush3.bf16.msra.mxu0 %v6255_v2 }
 0xf3d   :  { %v5637_v42 = vmul.f32 -1.442695, %v2728_v27  ;;  %6257 = vmatprep.subr.bf16.mxu1 %v8780_v38  ;;  %6293 = vmatprep.subr.bf16.mxu0 %v8780_v38 }
 0xf3f   :  { %6494 = vpow2.f32 %v5637_v42 }
 0xf40   :  { %6259 = vmatpush3.bf16.msra.mxu1 %v6258_v63  ;;  %6295 = vmatpush3.bf16.msra.mxu0 %v6258_v63 }
 0xf41   :  { %6260 = vmatprep.subr.bf16.mxu1 %v8780_v38  ;;  %6296 = vmatprep.subr.bf16.mxu0 %v8780_v38 }
 0xf49   :  { %v6495_v47 = vpop.eup %6494 }
 0xf4a   :  { %v2732_v51 = vadd.f32 1.0, %v6495_v47 }
 0xf4c   :  { %6496 = vrcp.f32 %v2732_v51 }
 0xf56   :  { %v6497_v15 = vpop.eup %6496 }
 0xf57   :  { %v2738_v49 = vmul.f32 %v6497_v15, %v2736_v56  ;;  %v2745_v26 = vsub.f32 1.0, %v6497_v15  ;;  %v2751_v7 = vmul.f32 %v6497_v15, %v7471_v9  ;;  %v7778_v9 = vld [vmem:[%s8749_s8] ss:$0 sm:$0xff] }
 0xf59   :  { %2740 = vrot.lane.b32.xlu1 %v2738_v49, %s6715_s21 }
 0xfcb   :  { %v2741_v8 = vpop.permute.xlu1 %2740 }
 0xfcc   :  { %v2743_v37 = vadd.f32 %v2741_v8, %v2721_v12 }
 0xfce   :  { %6498 = vtanh.f32 %v2743_v37 }
 0xfd8   :  { %v6499_v6 = vpop.eup %6498 }
 0xfd9   :  { %2747 = vrot.lane.b32.xlu1 %v6499_v6, %s6714_s18 }
0x104b   :  { %v2748_v35 = vpop.permute.xlu1 %2747 }
0x104c   :  { %v2750_v61 = vmul.f32 %v2748_v35, %v2745_v26 }
0x104e   :  { %v7761_v36 = vadd.f32 %v2751_v7, %v2750_v61 }
0x1050   :  { %2765 = vrot.lane.b32.xlu1 %v7761_v36, %s6714_s18 }
0x10c2   :  { %v2766_v0 = vpop.permute.xlu1 %2765 }
0x10c3   :  { %5995 = vmatmul.mubr.msk.f32.vlgmr.msra.gmra.mrb[8].mxu1 %vm195_vm2, %v2766_v0 }
0x10c4   :  { %6262 = vmatpush3.bf16.msra.mxu1 %v7481_v34  ;;  %6005 = vmatprep.mubr.msk.f32.mxu1 %vm6709_vm1, %v8781_v55 }
0x10c5   :  { %6263 = vmatprep.subr.bf16.mxu1 %v8780_v38 }
0x10c8   :  { %6265 = vmatpush3.bf16.msra.mxu1 %v7491_v44 }
0x10c9   :  { %6266 = vmatprep.subr.bf16.mxu1 %v8780_v38 }
0x10cb   :  { %6006 = vmatmul.mubr.msk.f32.vlgmr.msra.gmra.mrb[10].mxu1 %vm195_vm2, %v2766_v0 }
0x10cc   :  { %6040 = vmatprep.mubr.msk.f32.mxu1 %vm6709_vm1, %v8781_v55 }
0x1196   :  { %v2835_v34 = vpop.f32.mrb[8].mxu1 }
0x1197   :  { %v7781_v19 = vadd.f32 %v7778_v9, %v2835_v34  ;;  %v5996_v54 = vpop.f32.mrb[9].mxu1 }
0x1199   :  { %2839 = vmax.xlane.f32.xlu0 %v7781_v19 }
0x119e   :  { %v7784_v44 = vpop.f32.mrb[10].mxu1 }
0x119f   :  { %v3021_v4 = vcombine.high %v7784_v44, %v7784_v44  ;;  %v3028_v22 = vrot.slane %v7784_v44, %v6882_v48  ;;  %v6007_v50 = vpop.f32.mrb[11].mxu1 }
0x11a1   :  { %v3035_v13 = vrot.slane %v3021_v4, %v6882_v48  ;;  %v3036_v10 = vcombine.high %v3028_v22, %v3028_v22  ;;  %v3044_v62 = vrot.slane %v3028_v22, %v6882_v48 }
0x11a3   :  { %v3037_v12 = vcombine.high %v3035_v13, %v3035_v13  ;;  %v3051_v45 = vrot.slane %v3035_v13, %v6882_v48  ;;  %v3058_v27 = vrot.slane %v3036_v10, %v6882_v48  ;;  %v3066_v42 = vcombine.high %v3044_v62, %v3044_v62 }
0x11a4   :  { %v3073_v47 = vrot.slane %v3044_v62, %v6892_v53 }
0x11a5   :  { %v3065_v51 = vrot.slane %v3037_v12, %v6882_v48  ;;  %v3068_v15 = vcombine.high %v3058_v27, %v3058_v27  ;;  %v3077_v56 = vrot.slane %v3058_v27, %v6892_v53  ;;  %v3081_v49 = vrot.slane %v3066_v42, %v6892_v53 }
0x11a6   :  { %v3110_v8 = vadd.f32 %v3073_v47, %v7532_v41  ;;  %v3089_v37 = vrot.slane %v3051_v45, %v6892_v53  ;;  %v3067_v24 = vcombine.high %v3051_v45, %v3051_v45 }
0x11a7   :  { %v3111_v43 = vadd.f32 %v3077_v56, %v7538_v14  ;;  %v3085_v30 = vrot.slane %v3068_v15, %v6892_v53  ;;  %v3112_v2 = vadd.f32 %v3081_v49, %v7540_v11  ;;  %v3093_v5 = vrot.slane %v3065_v51, %v6892_v53 }
0x11a8   :  { %v3118_v63 = vmax.f32 %v3110_v8, 0.0  ;;  %v3114_v6 = vadd.f32 %v3089_v37, %v7552_v17  ;;  %v3069_v26 = vcombine.high %v3065_v51, %v3065_v51  ;;  %v3097_v35 = vrot.slane %v3067_v24, %v6892_v53 }
0x11a9   :  { %v3119_v7 = vmax.f32 %v3111_v43, 0.0  ;;  %v3113_v41 = vadd.f32 %v3085_v30, %v7554_v20  ;;  %v3120_v61 = vmax.f32 %v3112_v2, 0.0  ;;  %v3115_v0 = vadd.f32 %v3093_v5, %v7556_v21 }
0x11aa   :  { %v3133_v14 = vmul.f32 %v7546_v18, %v3118_v63  ;;  %v3101_v34 = vrot.slane %v3069_v26, %v6892_v53  ;;  %v3122_v17 = vmax.f32 %v3114_v6, 0.0  ;;  %v3116_v10 = vadd.f32 %v3097_v35, %v7569_v16 }
0x11ab   :  { %v3134_v11 = vmul.f32 %v7546_v18, %v3119_v7  ;;  %v3121_v54 = vmax.f32 %v3113_v41, 0.0  ;;  %v3123_v22 = vmax.f32 %v3115_v0, 0.0  ;;  %v3135_v21 = vmul.f32 %v7546_v18, %v3120_v61 }
0x11ac   :  { %v3141_v4 = vsel %vm195_vm2, %v3133_v14, 0.0  ;;  %v3117_v50 = vadd.f32 %v3101_v34, %v7565_v60  ;;  %v3137_v60 = vmul.f32 %v7546_v18, %v3122_v17  ;;  %v3124_v42 = vmax.f32 %v3116_v10, 0.0 }
0x11ad   :  { %3142 = vadd.xlane.f32.xlu1 %v3141_v4  ;;  %v3144_v13 = vsel %vm195_vm2, %v3134_v11, 0.0  ;;  %v3136_v20 = vmul.f32 %v7546_v18, %v3121_v54  ;;  %v3138_v12 = vmul.f32 %v7546_v18, %v3123_v22  ;;  %v3147_v27 = vsel %vm195_vm2, %v3135_v21, 0.0 }
0x11ae   :  { %3145 = vadd.xlane.f32.xlu0 %v3144_v13  ;;  %v3125_v45 = vmax.f32 %v3117_v50, 0.0  ;;  %v3153_v16 = vsel %vm195_vm2, %v3137_v60, 0.0  ;;  %v3139_v15 = vmul.f32 %v7546_v18, %v3124_v42  ;;  %v2915_v60 = vld [vmem:[%s8747_s6 + $0x18] sm:$0xff] }
0x11af   :  { %v3150_v62 = vsel %vm195_vm2, %v3136_v20, 0.0  ;;  %v3156_v47 = vsel %vm195_vm2, %v3138_v12, 0.0  ;;  %v2913_v12 = vld [vmem:[%s8747_s6 + $0x8] sm:$0xff] }
0x11b0   :  { %v3140_v51 = vmul.f32 %v7546_v18, %v3125_v45  ;;  %v3159_v49 = vsel %vm195_vm2, %v3139_v15, 0.0  ;;  %v2914_v45 = vld [vmem:[%s8747_s6 + $0x10] sm:$0xff] }
0x11b1   :  { %3151 = vadd.xlane.f32.xlu1 %v3150_v62  ;;  %v2912_v62 = vld [vmem:[%s8747_s6] sm:$0xff]  ;;  %v7893_v42 = vpack.c.bf16 %v2915_v60, %v2914_v45  ;;  %v2918_v15 = vld [vmem:[%s8747_s6 + $0x30] sm:$0xff] }
0x11b2   :  { %3148 = vadd.xlane.f32.xlu0 %v3147_v27  ;;  %v3162_v56 = vsel %vm195_vm2, %v3140_v51, 0.0  ;;  %v7887_v27 = vpack.c.bf16 %v2913_v12, %v2912_v62  ;;  %v2917_v51 = vld [vmem:[%s8747_s6 + $0x28] sm:$0xff] }
0x11b4   :  { %6268 = vmatpush3.bf16.msra.mxu1 %v7887_v27 }
0x11b5   :  { %3157 = vadd.xlane.f32.xlu1 %v3156_v47  ;;  %6269 = vmatprep.subr.bf16.mxu1 %v8780_v38  ;;  %v2916_v47 = vld [vmem:[%s8747_s6 + $0x20] sm:$0xff] }
0x11b6   :  { %3154 = vadd.xlane.f32.xlu0 %v3153_v16  ;;  %v7903_v16 = vpack.c.bf16 %v2917_v51, %v2916_v47 }
0x11b8   :  { %6271 = vmatpush3.bf16.msra.mxu1 %v7893_v42 }
0x11b9   :  { %3163 = vadd.xlane.f32.xlu1 %v3162_v56  ;;  %6272 = vmatprep.subr.bf16.mxu1 %v8780_v38  ;;  %v2919_v56 = vld [vmem:[%s8747_s6 + $0x38] sm:$0xff] }
0x11ba   :  { %3160 = vadd.xlane.f32.xlu0 %v3159_v49  ;;  %v7913_v49 = vpack.c.bf16 %v2919_v56, %v2918_v15 }
0x11bc   :  { %6274 = vmatpush3.bf16.msra.mxu1 %v7903_v16 }
0x11bd   :  { %6275 = vmatprep.subr.bf16.mxu1 %v8780_v38 }
0x11c0   :  { %6277 = vmatpush3.bf16.msra.mxu1 %v7913_v49 }
0x11c1   :  { %6278 = vmatprep.subr.bf16.mxu1 %v8780_v38 }
0x1226   :  { %v7827_v8 = vpop.xlane.xlu0 %2839 }
0x1227   :  { %vm2893_vm13 = vcmp.ge.f32.partialorder %v7781_v19, %v7827_v8 }
0x1228   :  { %v7832_v37 = vsel %vm2893_vm13, %v6953_v57, 128 }
0x1229   :  { %v2896_v24 = vshra.s32 %v7832_v37, 16 }
0x122b   :  { %v7835_v43 = vcvt.s32.f32 %v2896_v24  ;;  %v2920_v24 = vld [vmem:[%s8747_s6 + $0x40] sm:$0xff] }
0x122d   :  { %2899 = vmin.xlane.f32.xlu0 %v7835_v43 }
0x123a   :  { %v7838_v18 = vpop.xlane.xlu1 %3142 }
0x123b   :  { %v7840_v30 = vpop.xlane.xlu0 %3145  ;;  %v3176_v63 = vrot.slane %v7838_v18, %v6957_v59 }
0x123c   :  { %v3180_v2 = vrot.slane %v7840_v30, %v6957_v59 }
0x123e   :  { %v7844_v5 = vpop.xlane.xlu1 %3151  ;;  %v3205_v35 = vsel %vm607_vm4, %v3180_v2, %v3176_v63  ;;  %v2921_v2 = vld [vmem:[%s8747_s6 + $0x48] sm:$0xff] }
0x123f   :  { %v7848_v6 = vpop.xlane.xlu0 %3148  ;;  %v3188_v61 = vrot.slane %v7844_v5, %v6957_v59  ;;  %v7923_v63 = vpack.c.bf16 %v2921_v2, %v2920_v24 }
0x1240   :  { %v3184_v26 = vrot.slane %v7848_v6, %v6957_v59 }
0x1241   :  { %6280 = vmatpush3.bf16.msra.mxu1 %v7923_v63 }
0x1242   :  { %v3206_v7 = vsel %vm609_vm5, %v3184_v26, %v3205_v35  ;;  %v7854_v41 = vpop.xlane.xlu1 %3157  ;;  %v2922_v26 = vld [vmem:[%s8747_s6 + $0x50] sm:$0xff]  ;;  %v2923_v35 = vld [vmem:[%s8747_s6 + $0x58] sm:$0xff]  ;;  %6281 = vmatprep.subr.bf16.mxu1 %v8780_v38 }
0x1243   :  { %v7858_v0 = vpop.xlane.xlu0 %3154  ;;  %v3207_v34 = vsel %vm611_vm6, %v3188_v61, %v3206_v7  ;;  %v3196_v4 = vrot.slane %v7854_v41, %v6957_v59  ;;  %v7933_v7 = vpack.c.bf16 %v2923_v35, %v2922_v26  ;;  %v2924_v61 = vld [vmem:[%s8747_s6 + $0x60] sm:$0xff] }
0x1244   :  { %v3192_v14 = vrot.slane %v7858_v0, %v6957_v59 }
0x1245   :  { %6283 = vmatpush3.bf16.msra.mxu1 %v7933_v7 }
0x1246   :  { %v3208_v11 = vsel %vm613_vm7, %v3192_v14, %v3207_v34  ;;  %v7864_v54 = vpop.xlane.xlu1 %3163  ;;  %v2925_v14 = vld [vmem:[%s8747_s6 + $0x68] sm:$0xff]  ;;  %6284 = vmatprep.subr.bf16.mxu1 %v8780_v38 }
0x1247   :  { %v7868_v22 = vpop.xlane.xlu0 %3160  ;;  %v3204_v50 = vrot.slane %v7864_v54, %v6957_v59  ;;  %v3209_v13 = vsel %vm615_vm8, %v3196_v4, %v3208_v11  ;;  %v7943_v34 = vpack.c.bf16 %v2925_v14, %v2924_v61  ;;  %v2895_v11 = vand.u32 65535, %v7832_v37 }
0x1248   :  { %v3200_v17 = vrot.slane %v7868_v22, %v6957_v59 }
0x1249   :  { %6286 = vmatpush3.bf16.msra.mxu1 %v7943_v34 }
0x124a   :  { %v3210_v20 = vsel %vm617_vm9, %v3200_v17, %v3209_v13  ;;  %6287 = vmatprep.subr.bf16.mxu1 %v8780_v38  ;;  %v2897_v17 = vcvt.s32.f32 %v2895_v11  ;;  %v2926_v13 = vld [vmem:[%s8747_s6 + $0x70] sm:$0xff] }
0x124b   :  { %v3211_v21 = vsel %vm619_vm10, %v3204_v50, %v3210_v20  ;;  %v2927_v20 = vld [vmem:[%s8747_s6 + $0x78] sm:$0xff] }
0x124c   :  { %v3213_v10 = vsel %vm622_vm11, %v3211_v21, -inf  ;;  %v7956_v21 = vpack.c.bf16 %v2927_v20, %v2926_v13 }
0x124d   :  { %3214 = vmax.xlane.f32.xlu1 %v3213_v10 }
0x124e   :  { %6289 = vmatpush3.bf16.msra.mxu1 %v7956_v21 }
0x124f   :  { %6326 = vmatprep.subr.bf16.mxu1 %v8780_v38 }
0x12ba   :  { %v2900_v4 = vpop.xlane.xlu0 %2899 }
0x12bb   :  { %vm2901_vm14 = vcmp.eq.f32.partialorder %v7835_v43, %v2900_v4 }
0x12bc   :  { %v2902_v50 = vsel %vm2901_vm14, %v2897_v17, inf }
0x12bd   :  { %2903 = vmin.xlane.f32.xlu0 %v2902_v50 }
0x12da   :  { %v3215_v37 = vpop.xlane.xlu1 %3214 }
0x12db   :  { %v3220_v10 = vrot.slane %v3215_v37, %v6892_v53  ;;  %v3224_v43 = vrot.slane %v3215_v37, %v6976_v28  ;;  %v3228_v62 = vrot.slane %v3215_v37, %v6979_v29  ;;  %v3236_v12 = vrot.slane %v3215_v37, %v6988_v40 }
0x12dc   :  { %v3232_v45 = vrot.slane %v3215_v37, %v6982_v31  ;;  %v3244_v15 = vrot.slane %v3215_v37, %v6996_v52  ;;  %v3240_v26 = vrot.slane %v3215_v37, %v6992_v46 }
0x12dd   :  { %v3257_v60 = vsub.f32 %v7838_v18, %v3220_v10  ;;  %v3258_v47 = vsub.f32 %v7840_v30, %v3224_v43  ;;  %v3259_v51 = vsub.f32 %v7848_v6, %v3228_v62  ;;  %v3261_v56 = vsub.f32 %v7858_v0, %v3236_v12 }
0x12de   :  { %v3260_v35 = vsub.f32 %v7844_v5, %v3232_v45  ;;  %v3263_v14 = vsub.f32 %v7868_v22, %v3244_v15  ;;  %v3248_v30 = vrot.slane %v3215_v37, %v7000_v58  ;;  %v3262_v6 = vsub.f32 %v7854_v41, %v3240_v26 }
0x12df   :  { %v3265_v24 = vmul.f32 1.442695, %v3257_v60  ;;  %v3267_v2 = vmul.f32 1.442695, %v3258_v47  ;;  %v3269_v61 = vmul.f32 1.442695, %v3259_v51  ;;  %v2906_v62 = vcvt.f32.s32 %v2900_v4 }
0x12e0   :  { %v3273_v18 = vmul.f32 1.442695, %v3261_v56  ;;  %v3271_v11 = vmul.f32 1.442695, %v3260_v35  ;;  %v3277_v0 = vmul.f32 1.442695, %v3263_v14  ;;  %v3264_v17 = vsub.f32 %v7864_v54, %v3248_v30 }
0x12e1   :  { %6500 = vpow2.f32 %v3265_v24  ;;  %v3275_v50 = vmul.f32 1.442695, %v3262_v6  ;;  %v2907_v45 = vshll.u32 %v2906_v62, 16  ;;  %v8782_v51 = vmov 1.0  }
0x12e2   :  { %6502 = vpow2.f32 %v3267_v2  ;;  %v3279_v22 = vmul.f32 1.442695, %v3264_v17 }
0x12e3   :  { %6504 = vpow2.f32 %v3269_v61 }
0x12e4   :  { %6506 = vpow2.f32 %v3273_v18 }
0x12e5   :  { %6508 = vpow2.f32 %v3271_v11 }
0x12e6   :  { %6510 = vpow2.f32 %v3277_v0 }
0x12e7   :  { %6512 = vpow2.f32 %v3275_v50 }
0x12e8   :  { %6514 = vpow2.f32 %v3279_v22 }
0x12eb   :  { %v7976_v5 = vpop.eup %6500 }
0x12ec   :  { %v7978_v13 = vpop.eup %6502  ;;  %3290 = vperm.xlu1 %6384, %v7976_v5  }
0x12ed   :  { %3293 = vperm.xlu0 %6385, %v7978_v13   ;;  %v7982_v41 = vpop.eup %6504 }
0x12ee   :  { %v7984_v20 = vpop.eup %6506 }
0x12ef   :  { %v7988_v54 = vpop.eup %6508 }
0x12f0   :  { %3296 = vperm.xlu1 %6384, %v7982_v41   ;;  %v7990_v37 = vpop.eup %6510 }
0x12f1   :  { %3302 = vperm.xlu0 %6385, %v7984_v20   ;;  %v7994_v10 = vpop.eup %6512 }
0x12f2   :  { %v6515_v43 = vpop.eup %6514 }
0x12f4   :  { %3299 = vperm.xlu1 %6384, %v7988_v54  }
0x12f5   :  { %3308 = vperm.xlu0 %6385, %v7990_v37  }
0x12f8   :  { %3305 = vperm.xlu1 %6384, %v7994_v10  }
0x12fc   :  { %3311 = vperm.xlu1 %6384, %v6515_v43  }
0x1300   :  { %3008 = vrot.lane.b32.xlu1 %v7638_v32, %s6713_s3 }
0x134a   :  { %v2904_v12 = vpop.xlane.xlu0 %2903 }
0x134b   :  { %v2905_v60 = vcvt.f32.s32 %v2904_v12 }
0x134d   :  { %v2908_v47 = vadd.s32 %v2907_v45, %v2905_v60 }
0x134f   :  { %vm2909_vm15 = vcmp.eq.s32.totalorder %v6953_v57, %v2908_v47 }
0x1350   :  { %6041 = vmatmul.mubr.msk.f32.vlgmr.msra.gmra.mrb[12].mxu1 %vm2909_vm15, %v8782_v51 }
0x1351   :  { %6108 = vmatprep.mubr.msk.f32.mxu1 %vm6709_vm1, %v8781_v55 }
0x136b   :  { %v3291_v15 = vpop.permute.xlu1 %3290 }
0x136c   :  { %v3294_v56 = vpop.permute.xlu0 %3293  ;;  %v3316_v26 = vrot.slane %v3291_v15, %v6957_v59 }
0x136d   :  { %v3320_v2 = vrot.slane %v3294_v56, %v6957_v59 }
0x136f   :  { %v3297_v24 = vpop.permute.xlu1 %3296  ;;  %v3345_v61 = vsel %vm607_vm4, %v3320_v2, %v3316_v26 }
0x1370   :  { %v3324_v32 = vrot.slane %v3297_v24, %v6957_v59  ;;  %v3303_v4 = vpop.permute.xlu0 %3302 }
0x1371   :  { %v3332_v6 = vrot.slane %v3303_v4, %v6957_v59 }
0x1372   :  { %v3346_v18 = vsel %vm609_vm5, %v3324_v32, %v3345_v61 }
0x1373   :  { %v3300_v35 = vpop.permute.xlu1 %3299 }
0x1374   :  { %v3328_v14 = vrot.slane %v3300_v35, %v6957_v59  ;;  %v3309_v0 = vpop.permute.xlu0 %3308 }
0x1375   :  { %v3340_v62 = vrot.slane %v3309_v0, %v6957_v59 }
0x1376   :  { %v3347_v30 = vsel %vm611_vm6, %v3328_v14, %v3346_v18 }
0x1377   :  { %v3306_v11 = vpop.permute.xlu1 %3305  ;;  %v3348_v50 = vsel %vm613_vm7, %v3332_v6, %v3347_v30 }
0x1378   :  { %v3336_v17 = vrot.slane %v3306_v11, %v6957_v59 }
0x137a   :  { %v3349_v22 = vsel %vm615_vm8, %v3336_v17, %v3348_v50 }
0x137b   :  { %v3312_v12 = vpop.permute.xlu1 %3311  ;;  %v3350_v60 = vsel %vm617_vm9, %v3340_v62, %v3349_v22 }
0x137c   :  { %v3344_v45 = vrot.slane %v3312_v12, %v6957_v59 }
0x137e   :  { %v3351_v47 = vsel %vm619_vm10, %v3344_v45, %v3350_v60 }
0x137f   :  { %v3353_v15 = vsel %vm622_vm11, %v3351_v47, 0.0 }
0x1380   :  { %3354 = vadd.xlane.f32.xlu0 %v3353_v15 }
0x140d   :  { %v3355_v56 = vpop.xlane.xlu0 %3354 }
0x140e   :  { %v3388_v24 = vrot.slane %v3355_v56, %v7000_v58  ;;  %v3360_v2 = vrot.slane %v3355_v56, %v6892_v53  ;;  %v3364_v26 = vrot.slane %v3355_v56, %v6976_v28  ;;  %v3368_v32 = vrot.slane %v3355_v56, %v6979_v29 }
0x140f   :  { %v3372_v4 = vrot.slane %v3355_v56, %v6982_v31  ;;  %v3376_v18 = vrot.slane %v3355_v56, %v6988_v40  ;;  %v3380_v11 = vrot.slane %v3355_v56, %v6992_v46 }
0x1410   :  { %6516 = vrcp.f32 %v3388_v24  ;;  %v3009_v24 = vpop.permute.xlu1 %3008 }
0x1411   :  { %6518 = vrcp.f32 %v3360_v2 }
0x1412   :  { %6520 = vrcp.f32 %v3364_v26 }
0x1413   :  { %6522 = vrcp.f32 %v3368_v32 }
0x1414   :  { %6524 = vrcp.f32 %v3372_v4 }
0x1415   :  { %6526 = vrcp.f32 %v3376_v18 }
0x1416   :  { %6528 = vrcp.f32 %v3380_v11 }
0x141a   :  { %v6517_v35 = vpop.eup %6516 }
0x141b   :  { %v6519_v61 = vpop.eup %6518  ;;  %v3412_v14 = vmul.f32 %v6517_v35, %v6515_v43  ;;  %v3384_v43 = vrot.slane %v3355_v56, %v6996_v52 }
0x141c   :  { %v3398_v30 = vmul.f32 %v6519_v61, %v7976_v5  ;;  %v6521_v6 = vpop.eup %6520 }
0x141d   :  { %3458 = vperm.xlu0 %6385, %v3412_v14   ;;  %v3400_v0 = vmul.f32 %v6521_v6, %v7978_v13  ;;  %v6523_v17 = vpop.eup %6522  ;;  %6530 = vrcp.f32 %v3384_v43 }
0x141e   :  { %3423 = vperm.xlu1 %6384, %v3398_v30   ;;  %v3402_v22 = vmul.f32 %v6523_v17, %v7982_v41  ;;  %v6525_v12 = vpop.eup %6524  ;;  %v3011_v41 = vadd.f32 %v3009_v24, %v7784_v44 }
0x141f   :  { %v3404_v5 = vmul.f32 %v6525_v12, %v7988_v54  ;;  %v6527_v45 = vpop.eup %6526 }
0x1420   :  { %v3406_v60 = vmul.f32 %v6527_v45, %v7984_v20  ;;  %v6529_v13 = vpop.eup %6528 }
0x1421   :  { %v3408_v47 = vmul.f32 %v6529_v13, %v7994_v10 }
0x1422   :  { %3428 = vperm.xlu1 %6384, %v3400_v0  }
0x1423   :  { %v8028_v50 = vpop.f32.mrb[12].mxu1 }
0x1424   :  { %v6042_v62 = vpop.f32.mrb[13].mxu1 }
0x1425   :  { %v8783_v62 = vld [vmem:[#allocation15_spill] sm:$0xff] }
0x1426   :  { %3433 = vperm.xlu1 %6384, %v3402_v22  }
0x1427   :  { %v6531_v15 = vpop.eup %6530 }
0x1428   :  { %v3410_v56 = vmul.f32 %v6531_v15, %v7990_v37 }
0x142a   :  { %3438 = vperm.xlu1 %6384, %v3404_v5  }
0x142e   :  { %3443 = vperm.xlu1 %6384, %v3406_v60  }
0x1432   :  { %3448 = vperm.xlu1 %6384, %v3408_v47  }
0x1436   :  { %3453 = vperm.xlu1 %6384, %v3410_v56  }
0x143a   :  { %3612 = vrot.lane.b32.xlu1 %v3011_v41, %s6714_s18 }
0x143e   :  { %3622 = vrot.lane.b32.xlu1 %v3011_v41, %s6713_s3 }
0x149c   :  { %v8041_v32 = vpop.permute.xlu0 %3458 }
0x149d   :  { %v3424_v54 = vpop.permute.xlu1 %3423  ;;  %v3468_v44 = vmul.f32 %v8041_v32, %v7695_v33 }
0x149e   :  { %v3461_v2 = vmul.f32 %v3424_v54, %v7682_v1  ;;  %v3741_v15 = vrot.slane %v3424_v54, %v6957_v59 }
0x149f   :  { %v3518_v6 = vsel %vm311_vm3, %v3468_v44, 0.0 }
0x14a0   :  { %v3469_v10 = vsel %vm311_vm3, %v3461_v2, 0.0  ;;  %v3519_v33 = vrot.slane %v3518_v6, 4 }
0x14a1   :  { %v3429_v20 = vpop.permute.xlu1 %3428  ;;  %v3470_v61 = vrot.slane %v3469_v10, 4 }
0x14a2   :  { %v3462_v26 = vmul.f32 %v3429_v20, %v7685_v3  ;;  %v3745_v5 = vrot.slane %v3429_v20, %v6957_v59  ;;  %v3520_v20 = vadd.f32 %v3519_v33, %v3518_v6 }
0x14a3   :  { %v3471_v11 = vadd.f32 %v3470_v61, %v3469_v10 }
0x14a4   :  { %v3476_v37 = vsel %vm311_vm3, %v3462_v26, 0.0  ;;  %v3770_v44 = vsel %vm607_vm4, %v3745_v5, %v3741_v15 }
0x14a5   :  { %v3434_v4 = vpop.permute.xlu1 %3433  ;;  %v3477_v14 = vrot.slane %v3476_v37, 4  ;;  %v3472_v60 = vrot.slane %v3471_v11, 2 }
0x14a6   :  { %v3463_v35 = vmul.f32 %v3434_v4, %v7692_v39  ;;  %v3749_v47 = vrot.slane %v3434_v4, %v6957_v59 }
0x14a7   :  { %v3478_v0 = vadd.f32 %v3477_v14, %v3476_v37  ;;  %v8784_v37 = vld [vmem:[#allocation16_spill] sm:$0xff]  ;;  %v3473_v14 = vadd.f32 %v3472_v60, %v3471_v11  ;;  %v3769_v11 = vrot.slane %v8041_v32, %v6957_v59 }
0x14a8   :  { %v3483_v18 = vsel %vm311_vm3, %v3463_v35, 0.0  ;;  %v3771_v54 = vsel %vm609_vm5, %v3749_v47, %v3770_v44 }
0x14a9   :  { %v3484_v1 = vrot.slane %v3483_v18, 4  ;;  %v3439_v30 = vpop.permute.xlu1 %3438  ;;  %v3479_v13 = vrot.slane %v3478_v0, 2 }
0x14aa   :  { %v3464_v3 = vmul.f32 %v3439_v30, %v7700_v25  ;;  %v3753_v24 = vrot.slane %v3439_v30, %v6957_v59 }
0x14ab   :  { %v3485_v43 = vadd.f32 %v3484_v1, %v3483_v18  ;;  %v3480_v18 = vadd.f32 %v3479_v13, %v3478_v0 }
0x14ac   :  { %v3490_v17 = vsel %vm311_vm3, %v3464_v3, 0.0  ;;  %v3772_v3 = vsel %vm611_vm6, %v3753_v24, %v3771_v54  ;;  %v3474_v24 = vrot.slane %v3473_v14, 1 }
0x14ad   :  { %v3491_v22 = vrot.slane %v3490_v17, 4  ;;  %v3444_v39 = vpop.permute.xlu1 %3443  ;;  %v3486_v56 = vrot.slane %v3485_v43, 2  ;;  %v3481_v13 = vrot.slane %v3480_v18, 1 }
0x14ae   :  { %v3465_v12 = vmul.f32 %v3444_v39, %v8783_v62  ;;  %v3757_v10 = vrot.slane %v3444_v39, %v6957_v59 }
0x14af   :  { %v3492_v45 = vadd.f32 %v3491_v22, %v3490_v17  ;;  %v3487_v30 = vadd.f32 %v3486_v56, %v3485_v43  ;;  %v3521_v43 = vrot.slane %v3520_v20, 2 }
0x14b0   :  { %v3497_v25 = vsel %vm311_vm3, %v3465_v12, 0.0  ;;  %v3773_v6 = vsel %vm613_vm7, %v3757_v10, %v3772_v3 }
0x14b1   :  { %v3498_v41 = vrot.slane %v3497_v25, 4  ;;  %v3449_v2 = vpop.permute.xlu1 %3448  ;;  %v3493_v26 = vrot.slane %v3492_v45, 2  ;;  %v3522_v10 = vadd.f32 %v3521_v43, %v3520_v20 }
0x14b2   :  { %v3466_v35 = vmul.f32 %v3449_v2, %v8784_v37  ;;  %v3761_v4 = vrot.slane %v3449_v2, %v6957_v59  ;;  %v3482_v37 = vadd.f32 %v3481_v13, %v3480_v18 }
0x14b3   :  { %v3499_v61 = vadd.f32 %v3498_v41, %v3497_v25  ;;  %v3494_v62 = vadd.f32 %v3493_v26, %v3492_v45  ;;  %v3488_v45 = vrot.slane %v3487_v30, 1 }
0x14b4   :  { %v3504_v1 = vsel %vm311_vm3, %v3466_v35, 0.0  ;;  %v3774_v60 = vsel %vm615_vm8, %v3761_v4, %v3773_v6  ;;  %v3475_v4 = vadd.f32 %v3474_v24, %v3473_v14 }
0x14b5   :  { %v3500_v17 = vrot.slane %v3499_v61, 2  ;;  %v3505_v22 = vrot.slane %v3504_v1, 4  ;;  %v3454_v39 = vpop.permute.xlu1 %3453  ;;  %v3495_v41 = vrot.slane %v3494_v62, 1  ;;  %v3489_v35 = vadd.f32 %v3488_v45, %v3487_v30 }
0x14b6   :  { %v3467_v12 = vmul.f32 %v3454_v39, %v7722_v23  ;;  %v3765_v33 = vrot.slane %v3454_v39, %v6957_v59 }
0x14b7   :  { %v3501_v0 = vadd.f32 %v3500_v17, %v3499_v61  ;;  %v3506_v5 = vadd.f32 %v3505_v22, %v3504_v1  ;;  %v3496_v54 = vadd.f32 %v3495_v41, %v3494_v62  ;;  %v3523_v17 = vrot.slane %v3522_v10, 1 }
0x14b8   :  { %v3511_v47 = vsel %vm311_vm3, %v3467_v12, 0.0  ;;  %v3775_v25 = vsel %vm617_vm9, %v3765_v33, %v3774_v60  ;;  %v3533_v22 = vsel %vm607_vm4, %v3482_v37, %v3475_v4  ;;  %v3816_v37 = vld [vmem:[%s8745_s4 + $0x8] sm:$0xff] }
0x14b9   :  { %v3507_v15 = vrot.slane %v3506_v5, 2  ;;  %v3512_v56 = vrot.slane %v3511_v47, 4  ;;  %v3776_v23 = vsel %vm619_vm10, %v3769_v11, %v3775_v25  ;;  %v3502_v32 = vrot.slane %v3501_v0, 1 }
0x14ba   :  { %3779 = vst.msk [vmem:[#allocation6 + $0x18] sm:$0xff] %vm622_vm11, %v3776_v23  ;;  %v3534_v6 = vsel %vm609_vm5, %v3489_v35, %v3533_v22  ;;  %v3524_v18 = vadd.f32 %v3523_v17, %v3522_v10  ;;  %v3815_v10 = vld [vmem:[%s8745_s4] sm:$0xff] }
0x14bb   :  { %v3508_v2 = vadd.f32 %v3507_v15, %v3506_v5  ;;  %v3513_v26 = vadd.f32 %v3512_v56, %v3511_v47  ;;  %v3503_v1 = vadd.f32 %v3502_v32, %v3501_v0  ;;  %v3535_v33 = vsel %vm611_vm6, %v3496_v54, %v3534_v6  ;;  %v3613_v5 = vpop.permute.xlu1 %3612 }
0x14bc   :  { %v8096_v35 = vpack.c.bf16 %v3816_v37, %v3815_v10  ;;  %v8177_v10 = vld [vmem:[#allocation2 + $0x38] sm:$0xff] }
0x14bd   :  { %v3509_v44 = vrot.slane %v3508_v2, 1  ;;  %v3514_v61 = vrot.slane %v3513_v26, 2  ;;  %v3536_v20 = vsel %vm613_vm7, %v3503_v1, %v3535_v33  ;;  %v8148_v33 = vld [vmem:[#allocation2] sm:$0xff] }
0x14bf   :  { %v3515_v3 = vadd.f32 %v3514_v61, %v3513_v26  ;;  %v3510_v39 = vadd.f32 %v3509_v44, %v3508_v2  ;;  %v3623_v45 = vpop.permute.xlu1 %3622  ;;  %v3818_v44 = vld [vmem:[%s8745_s4 + $0x18] sm:$0xff] }
0x14c1   :  { %v3516_v12 = vrot.slane %v3515_v3, 1  ;;  %v3537_v30 = vsel %vm615_vm8, %v3510_v39, %v3536_v20 }
0x14c3   :  { %v3517_v11 = vadd.f32 %v3516_v12, %v3515_v3 }
0x14c5   :  { %v3538_v14 = vsel %vm617_vm9, %v3517_v11, %v3537_v30 }
0x14c6   :  { %v3539_v62 = vsel %vm619_vm10, %v3524_v18, %v3538_v14  ;;  %v8152_v18 = vld [vmem:[#allocation2 + $0x8] sm:$0xff] }
0x14c7   :  { %v3608_v0 = vadd.f32 %v8028_v50, %v3539_v62  ;;  %v8159_v62 = vld [vmem:[%s8743_s2] ss:$0 sm:$0xff] }
0x14c9   :  { %v3615_v60 = vadd.f32 %v3613_v5, %v3608_v0 }
0x14cb   :  { %v5645_v43 = vmul.f32 -1.442695, %v3615_v60  ;;  %v8163_v60 = vld [vmem:[#allocation2 + $0x10] sm:$0xff] }
0x14cd   :  { %6532 = vpow2.f32 %v5645_v43 }
0x14d7   :  { %v6533_v13 = vpop.eup %6532 }
0x14d8   :  { %v3619_v47 = vadd.f32 1.0, %v6533_v13 }
0x14da   :  { %6534 = vrcp.f32 %v3619_v47 }
0x14e4   :  { %v6535_v25 = vpop.eup %6534 }
0x14e5   :  { %v3625_v15 = vmul.f32 %v6535_v25, %v3623_v45  ;;  %v3632_v41 = vsub.f32 1.0, %v6535_v25  ;;  %v3638_v32 = vmul.f32 %v6535_v25, %v7761_v36  ;;  %v3817_v36 = vld [vmem:[%s8745_s4 + $0x10] sm:$0xff]  ;;  %v8166_v45 = vld [vmem:[#allocation2 + $0x18] sm:$0xff] }
0x14e6   :  { %v8106_v4 = vpack.c.bf16 %v3818_v44, %v3817_v36 }
0x14e7   :  { %3627 = vrot.lane.b32.xlu1 %v3625_v15, %s6715_s21 }
0x1559   :  { %v3628_v56 = vpop.permute.xlu1 %3627 }
0x155a   :  { %v3630_v23 = vadd.f32 %v3628_v56, %v3608_v0  ;;  %v8169_v56 = vld [vmem:[#allocation2 + $0x28] sm:$0xff] }
0x155c   :  { %6536 = vtanh.f32 %v3630_v23 }
0x1566   :  { %v6537_v24 = vpop.eup %6536 }
0x1567   :  { %3634 = vrot.lane.b32.xlu1 %v6537_v24, %s6714_s18 }
0x15d9   :  { %v3635_v50 = vpop.permute.xlu1 %3634 }
0x15da   :  { %v3637_v2 = vmul.f32 %v3635_v50, %v3632_v41 }
0x15dc   :  { %v8086_v26 = vadd.f32 %v3638_v32, %v3637_v2  ;;  %v8175_v2 = vld [vmem:[#allocation2 + $0x20] sm:$0xff] }
0x15de   :  { %3652 = vrot.lane.b32.xlu1 %v8086_v26, %s6714_s18 }
0x1650   :  { %v3653_v61 = vpop.permute.xlu1 %3652 }
0x1651   :  { %6052 = vmatmul.mubr.msk.f32.vlgmr.msra.gmra.mrb[22].mxu0 %vm195_vm2, %v3653_v61 }
0x1652   :  { %6298 = vmatpush3.bf16.msra.mxu0 %v8096_v35  ;;  %6062 = vmatprep.mubr.msk.f32.mxu0 %vm6709_vm1, %v8781_v55 }
0x1653   :  { %6299 = vmatprep.subr.bf16.mxu0 %v8780_v38 }
0x1656   :  { %6301 = vmatpush3.bf16.msra.mxu0 %v8106_v4 }
0x1657   :  { %6302 = vmatprep.subr.bf16.mxu0 %v8780_v38 }
0x1659   :  { %6063 = vmatmul.mubr.msk.f32.vlgmr.msra.gmra.mrb[24].mxu0 %vm195_vm2, %v3653_v61 }
0x165a   :  { %6304 = vmatpush3.bf16.msra.mxu0 %v7887_v27  ;;  %6097 = vmatprep.mubr.msk.f32.mxu0 %vm6709_vm1, %v8781_v55 }
0x165b   :  { %6305 = vmatprep.subr.bf16.mxu0 %v8780_v38 }
0x165e   :  { %6307 = vmatpush3.bf16.msra.mxu0 %v7893_v42 }
0x165f   :  { %6308 = vmatprep.subr.bf16.mxu0 %v8780_v38 }
0x1662   :  { %6310 = vmatpush3.bf16.msra.mxu0 %v7903_v16 }
0x1663   :  { %6311 = vmatprep.subr.bf16.mxu0 %v8780_v38 }
0x1666   :  { %6313 = vmatpush3.bf16.msra.mxu0 %v7913_v49 }
0x1667   :  { %6314 = vmatprep.subr.bf16.mxu0 %v8780_v38 }
0x166a   :  { %6316 = vmatpush3.bf16.msra.mxu0 %v7923_v63 }
0x166b   :  { %6317 = vmatprep.subr.bf16.mxu0 %v8780_v38 }
0x166e   :  { %6319 = vmatpush3.bf16.msra.mxu0 %v7933_v7 }
0x166f   :  { %6320 = vmatprep.subr.bf16.mxu0 %v8780_v38 }
0x1672   :  { %6322 = vmatpush3.bf16.msra.mxu0 %v7943_v34 }
0x1673   :  { %6323 = vmatprep.subr.bf16.mxu0 %v8780_v38 }
0x1676   :  { %6325 = vmatpush3.bf16.msra.mxu0 %v7956_v21 }
0x1677   :  { %6362 = vmatprep.subr.bf16.mxu0 %v8780_v38 }
0x1724   :  { %v3722_v27 = vpop.f32.mrb[22].mxu0 }
0x1725   :  { %v8133_v42 = vadd.f32 %v7778_v9, %v3722_v27  ;;  %v6053_v16 = vpop.f32.mrb[23].mxu0 }
0x1727   :  { %8785 = vst [vmem:[#allocation15_spill] sm:$0xff] %v8133_v42  ;;  %3726 = vmax.xlane.f32.xlu1 %v8133_v42 }
0x172c   :  { %v8136_v49 = vpop.f32.mrb[24].mxu0 }
0x172d   :  { %v3908_v63 = vcombine.high %v8136_v49, %v8136_v49  ;;  %v3915_v7 = vrot.slane %v8136_v49, %v6882_v48  ;;  %v6064_v34 = vpop.f32.mrb[25].mxu0 }
0x172f   :  { %v3922_v21 = vrot.slane %v3908_v63, %v6882_v48  ;;  %v3923_v54 = vcombine.high %v3915_v7, %v3915_v7  ;;  %v3931_v1 = vrot.slane %v3915_v7, %v6882_v48 }
0x1731   :  { %v3924_v3 = vcombine.high %v3922_v21, %v3922_v21  ;;  %v3938_v9 = vrot.slane %v3922_v21, %v6882_v48  ;;  %v3945_v17 = vrot.slane %v3923_v54, %v6882_v48  ;;  %v3953_v22 = vcombine.high %v3931_v1, %v3931_v1 }
0x1732   :  { %v3960_v39 = vrot.slane %v3931_v1, %v6892_v53 }
0x1733   :  { %v3952_v6 = vrot.slane %v3924_v3, %v6882_v48  ;;  %v3955_v12 = vcombine.high %v3945_v17, %v3945_v17  ;;  %v3964_v11 = vrot.slane %v3945_v17, %v6892_v53  ;;  %v3968_v30 = vrot.slane %v3953_v22, %v6892_v53  ;;  %v8187_v3 = vld [vmem:[#allocation2 + $0x30] sm:$0xff] }
0x1734   :  { %v3997_v20 = vadd.f32 %v3960_v39, %v8148_v33  ;;  %v3976_v14 = vrot.slane %v3938_v9, %v6892_v53  ;;  %v3954_v47 = vcombine.high %v3938_v9, %v3938_v9 }
0x1735   :  { %v3998_v0 = vadd.f32 %v3964_v11, %v8152_v18  ;;  %v3972_v5 = vrot.slane %v3955_v12, %v6892_v53  ;;  %v3980_v43 = vrot.slane %v3952_v6, %v6892_v53  ;;  %v3956_v13 = vcombine.high %v3952_v6, %v3952_v6 }
0x1736   :  { %v4005_v25 = vmax.f32 %v3997_v20, 0.0  ;;  %v3999_v15 = vadd.f32 %v3968_v30, %v8163_v60  ;;  %v4001_v44 = vadd.f32 %v3976_v14, %v8175_v2  ;;  %v3984_v7 = vrot.slane %v3954_v47, %v6892_v53 }
0x1737   :  { %v4006_v23 = vmax.f32 %v3998_v0, 0.0  ;;  %v4000_v24 = vadd.f32 %v3972_v5, %v8166_v45  ;;  %v4002_v41 = vadd.f32 %v3980_v43, %v8169_v56  ;;  %v3988_v50 = vrot.slane %v3956_v13, %v6892_v53 }
0x1738   :  { %v4020_v32 = vmul.f32 %v8159_v62, %v4005_v25  ;;  %v4007_v63 = vmax.f32 %v3999_v15, 0.0  ;;  %v4009_v22 = vmax.f32 %v4001_v44, 0.0  ;;  %v4003_v39 = vadd.f32 %v3984_v7, %v8187_v3 }
0x1739   :  { %v4008_v37 = vmax.f32 %v4000_v24, 0.0  ;;  %v4010_v36 = vmax.f32 %v4002_v41, 0.0  ;;  %v4004_v61 = vadd.f32 %v3988_v50, %v8177_v10  ;;  %v4021_v16 = vmul.f32 %v8159_v62, %v4006_v23 }
0x173a   :  { %v4028_v27 = vsel %vm195_vm2, %v4020_v32, 0.0  ;;  %v4022_v17 = vmul.f32 %v8159_v62, %v4007_v63  ;;  %v4024_v20 = vmul.f32 %v8159_v62, %v4009_v22  ;;  %v4011_v30 = vmax.f32 %v4003_v39, 0.0 }
0x173b   :  { %4029 = vadd.xlane.f32.xlu0 %v4028_v27  ;;  %v4023_v34 = vmul.f32 %v8159_v62, %v4008_v37  ;;  %v4025_v54 = vmul.f32 %v8159_v62, %v4010_v36  ;;  %v4012_v1 = vmax.f32 %v4004_v61, 0.0  ;;  %v4031_v9 = vsel %vm195_vm2, %v4021_v16, 0.0 }
0x173c   :  { %v4034_v11 = vsel %vm195_vm2, %v4022_v17, 0.0  ;;  %v4040_v0 = vsel %vm195_vm2, %v4024_v20, 0.0  ;;  %v4026_v5 = vmul.f32 %v8159_v62, %v4011_v30 }
0x173d   :  { %v4037_v21 = vsel %vm195_vm2, %v4023_v34, 0.0  ;;  %v4043_v6 = vsel %vm195_vm2, %v4025_v54, 0.0  ;;  %v4027_v12 = vmul.f32 %v8159_v62, %v4012_v1 }
0x173e   :  { %4038 = vadd.xlane.f32.xlu1 %v4037_v21  ;;  %v4046_v43 = vsel %vm195_vm2, %v4026_v5, 0.0 }
0x173f   :  { %4032 = vadd.xlane.f32.xlu0 %v4031_v9  ;;  %v4049_v14 = vsel %vm195_vm2, %v4027_v12, 0.0 }
0x1742   :  { %4044 = vadd.xlane.f32.xlu1 %v4043_v6 }
0x1743   :  { %4035 = vadd.xlane.f32.xlu0 %v4034_v11 }
0x1746   :  { %4050 = vadd.xlane.f32.xlu1 %v4049_v14 }
0x1747   :  { %4041 = vadd.xlane.f32.xlu0 %v4040_v0 }
0x174b   :  { %4047 = vadd.xlane.f32.xlu0 %v4046_v43 }
0x17b4   :  { %v8200_v13 = vpop.xlane.xlu1 %3726 }
0x17b5   :  { %vm3780_vm0 = vcmp.ge.f32.partialorder %v8133_v42, %v8200_v13 }
0x17b6   :  { %v3781_v47 = vsel %vm3780_vm0, %v6953_v57, 128 }
0x17b7   :  { %v3783_v25 = vshra.s32 %v3781_v47, 16  ;;  %v3782_v20 = vand.u32 65535, %v3781_v47 }
0x17b9   :  { %v3785_v15 = vcvt.s32.f32 %v3783_v25  ;;  %v3784_v14 = vcvt.s32.f32 %v3782_v20 }
0x17bb   :  { %3786 = vmin.xlane.f32.xlu0 %v3785_v15 }
0x17c8   :  { %v4030_v23 = vpop.xlane.xlu0 %4029 }
0x17c9   :  { %v4063_v32 = vrot.slane %v4030_v23, %v6957_v59 }
0x17cb   :  { %v4039_v24 = vpop.xlane.xlu1 %4038 }
0x17cc   :  { %v4033_v41 = vpop.xlane.xlu0 %4032  ;;  %v4075_v16 = vrot.slane %v4039_v24, %v6957_v59 }
0x17cd   :  { %v4067_v50 = vrot.slane %v4033_v41, %v6957_v59 }
0x17cf   :  { %v4045_v44 = vpop.xlane.xlu1 %4044  ;;  %v4092_v61 = vsel %vm607_vm4, %v4067_v50, %v4063_v32 }
0x17d0   :  { %v4036_v37 = vpop.xlane.xlu0 %4035  ;;  %v4083_v1 = vrot.slane %v4045_v44, %v6957_v59 }
0x17d1   :  { %v4071_v36 = vrot.slane %v4036_v37, %v6957_v59 }
0x17d3   :  { %v4093_v27 = vsel %vm609_vm5, %v4071_v36, %v4092_v61  ;;  %v4051_v54 = vpop.xlane.xlu1 %4050 }
0x17d4   :  { %v4042_v63 = vpop.xlane.xlu0 %4041  ;;  %v4094_v34 = vsel %vm611_vm6, %v4075_v16, %v4093_v27  ;;  %v4091_v22 = vrot.slane %v4051_v54, %v6957_v59 }
0x17d5   :  { %v4079_v7 = vrot.slane %v4042_v63, %v6957_v59 }
0x17d7   :  { %v4095_v21 = vsel %vm613_vm7, %v4079_v7, %v4094_v34 }
0x17d8   :  { %v4048_v9 = vpop.xlane.xlu0 %4047  ;;  %v4096_v39 = vsel %vm615_vm8, %v4083_v1, %v4095_v21 }
0x17d9   :  { %v4087_v17 = vrot.slane %v4048_v9, %v6957_v59 }
0x17db   :  { %v4097_v6 = vsel %vm617_vm9, %v4087_v17, %v4096_v39 }
0x17dc   :  { %v4098_v12 = vsel %vm619_vm10, %v4091_v22, %v4097_v6 }
0x17dd   :  { %v4100_v11 = vsel %vm622_vm11, %v4098_v12, -inf }
0x17de   :  { %4101 = vmax.xlane.f32.xlu1 %v4100_v11 }
0x1848   :  { %v3787_v30 = vpop.xlane.xlu0 %3786 }
0x1849   :  { %vm3788_vm12 = vcmp.eq.f32.partialorder %v3785_v15, %v3787_v30 }
0x184a   :  { %v3789_v0 = vsel %vm3788_vm12, %v3784_v14, inf }
0x184b   :  { %3790 = vmin.xlane.f32.xlu0 %v3789_v0  ;;  %v8250_v0 = vld [vmem:[%s8746_s5] ss:$0 sm:$0xff] }
0x186b   :  { %v4102_v5 = vpop.xlane.xlu1 %4101 }
0x186c   :  { %v4107_v43 = vrot.slane %v4102_v5, %v6892_v53  ;;  %v4111_v25 = vrot.slane %v4102_v5, %v6976_v28  ;;  %v4115_v50 = vrot.slane %v4102_v5, %v6979_v29  ;;  %v4127_v32 = vrot.slane %v4102_v5, %v6992_v46 }
0x186d   :  { %v4119_v36 = vrot.slane %v4102_v5, %v6982_v31  ;;  %v4135_v47 = vrot.slane %v4102_v5, %v7000_v58  ;;  %v4123_v21 = vrot.slane %v4102_v5, %v6988_v40  ;;  %v4131_v6 = vrot.slane %v4102_v5, %v6996_v52 }
0x186e   :  { %v4144_v61 = vsub.f32 %v4030_v23, %v4107_v43  ;;  %v4145_v27 = vsub.f32 %v4033_v41, %v4111_v25  ;;  %v4146_v16 = vsub.f32 %v4036_v37, %v4115_v50  ;;  %v4149_v7 = vsub.f32 %v4045_v44, %v4127_v32 }
0x186f   :  { %v4147_v1 = vsub.f32 %v4039_v24, %v4119_v36  ;;  %v4151_v22 = vsub.f32 %v4051_v54, %v4135_v47  ;;  %v4148_v12 = vsub.f32 %v4042_v63, %v4123_v21  ;;  %v4150_v37 = vsub.f32 %v4048_v9, %v4131_v6 }
0x1870   :  { %v4152_v15 = vmul.f32 1.442695, %v4144_v61  ;;  %v4154_v34 = vmul.f32 1.442695, %v4145_v27  ;;  %v4156_v17 = vmul.f32 1.442695, %v4146_v16  ;;  %v3793_v25 = vcvt.f32.s32 %v3787_v30 }
0x1871   :  { %v4162_v39 = vmul.f32 1.442695, %v4149_v7  ;;  %v4158_v23 = vmul.f32 1.442695, %v4147_v1  ;;  %v4166_v41 = vmul.f32 1.442695, %v4151_v22 }
0x1872   :  { %6538 = vpow2.f32 %v4152_v15  ;;  %v4160_v44 = vmul.f32 1.442695, %v4148_v12  ;;  %v4164_v24 = vmul.f32 1.442695, %v4150_v37  ;;  %v3794_v32 = vshll.u32 %v3793_v25, 16 }
0x1873   :  { %6540 = vpow2.f32 %v4154_v34 }
0x1874   :  { %6542 = vpow2.f32 %v4156_v17 }
0x1875   :  { %6544 = vpow2.f32 %v4162_v39 }
0x1876   :  { %6546 = vpow2.f32 %v4158_v23 }
0x1877   :  { %6548 = vpow2.f32 %v4166_v41 }
0x1878   :  { %6550 = vpow2.f32 %v4160_v44 }
0x1879   :  { %6552 = vpow2.f32 %v4164_v24 }
0x187c   :  { %v8229_v11 = vpop.eup %6538 }
0x187d   :  { %v8231_v20 = vpop.eup %6540  ;;  %4177 = vperm.xlu1 %6384, %v8229_v11  }
0x187e   :  { %4180 = vperm.xlu0 %6385, %v8231_v20   ;;  %v8235_v54 = vpop.eup %6542 }
0x187f   :  { %v8237_v63 = vpop.eup %6544 }
0x1880   :  { %v8241_v9 = vpop.eup %6546 }
0x1881   :  { %4183 = vperm.xlu1 %6384, %v8235_v54   ;;  %v8243_v14 = vpop.eup %6548 }
0x1882   :  { %4192 = vperm.xlu0 %6385, %v8237_v63   ;;  %v8252_v5 = vpop.eup %6550 }
0x1883   :  { %v8257_v43 = vpop.eup %6552 }
0x1885   :  { %4186 = vperm.xlu1 %6384, %v8241_v9  }
0x1886   :  { %4198 = vperm.xlu0 %6385, %v8243_v14  }
0x1889   :  { %4189 = vperm.xlu1 %6384, %v8252_v5  }
0x188a   :  { %3895 = vrot.lane.b32.xlu0 %v8250_v0, %s6713_s3 }
0x188d   :  { %4195 = vperm.xlu1 %6384, %v8257_v43  }
0x18d8   :  { %v3791_v50 = vpop.xlane.xlu0 %3790 }
0x18d9   :  { %v3792_v36 = vcvt.f32.s32 %v3791_v50 }
0x18db   :  { %v3795_v61 = vadd.s32 %v3794_v32, %v3792_v36 }
0x18dd   :  { %vm3796_vm13 = vcmp.eq.s32.totalorder %v6953_v57, %v3795_v61 }
0x18de   :  { %6098 = vmatmul.mubr.msk.f32.vlgmr.msra.gmra.mrb[26].mxu0 %vm3796_vm13, %v8782_v51 }
0x18df   :  { %6165 = vmatprep.mubr.msk.f32.mxu0 %vm6709_vm1, %v8781_v55 }
0x18fc   :  { %v4178_v27 = vpop.permute.xlu1 %4177 }
0x18fd   :  { %v4181_v16 = vpop.permute.xlu0 %4180  ;;  %v4203_v15 = vrot.slane %v4178_v27, %v6957_v59 }
0x18fe   :  { %v4207_v7 = vrot.slane %v4181_v16, %v6957_v59 }
0x1900   :  { %v4184_v47 = vpop.permute.xlu1 %4183  ;;  %v4232_v17 = vsel %vm607_vm4, %v4207_v7, %v4203_v15 }
0x1901   :  { %v4193_v30 = vpop.permute.xlu0 %4192  ;;  %v4211_v21 = vrot.slane %v4184_v47, %v6957_v59 }
0x1902   :  { %v4223_v37 = vrot.slane %v4193_v30, %v6957_v59 }
0x1903   :  { %v4233_v39 = vsel %vm609_vm5, %v4211_v21, %v4232_v17 }
0x1904   :  { %v4187_v34 = vpop.permute.xlu1 %4186 }
0x1905   :  { %v4215_v1 = vrot.slane %v4187_v34, %v6957_v59  ;;  %v4199_v23 = vpop.permute.xlu0 %4198 }
0x1906   :  { %v4231_v25 = vrot.slane %v4199_v23, %v6957_v59 }
0x1907   :  { %v4234_v12 = vsel %vm611_vm6, %v4215_v1, %v4233_v39 }
0x1908   :  { %v4190_v22 = vpop.permute.xlu1 %4189 }
0x1909   :  { %v4219_v6 = vrot.slane %v4190_v22, %v6957_v59  ;;  %v3896_v27 = vpop.permute.xlu0 %3895 }
0x190a   :  { %v3898_v16 = vadd.f32 %v3896_v27, %v8136_v49 }
0x190b   :  { %v4235_v41 = vsel %vm613_vm7, %v4219_v6, %v4234_v12 }
0x190c   :  { %v4196_v44 = vpop.permute.xlu1 %4195  ;;  %v4236_v50 = vsel %vm615_vm8, %v4223_v37, %v4235_v41 }
0x190d   :  { %v4227_v24 = vrot.slane %v4196_v44, %v6957_v59 }
0x190f   :  { %v4237_v32 = vsel %vm617_vm9, %v4227_v24, %v4236_v50 }
0x1910   :  { %v4238_v36 = vsel %vm619_vm10, %v4231_v25, %v4237_v32 }
0x1911   :  { %v4240_v61 = vsel %vm622_vm11, %v4238_v36, 0.0 }
0x1912   :  { %4241 = vadd.xlane.f32.xlu1 %v4240_v61 }
0x1923   :  { %4499 = vrot.lane.b32.xlu1 %v3898_v16, %s6714_s18 }
0x199f   :  { %v4242_v47 = vpop.xlane.xlu1 %4241 }
0x19a0   :  { %v4247_v7 = vrot.slane %v4242_v47, %v6892_v53  ;;  %v4251_v15 = vrot.slane %v4242_v47, %v6976_v28  ;;  %v4255_v34 = vrot.slane %v4242_v47, %v6979_v29  ;;  %v4259_v30 = vrot.slane %v4242_v47, %v6982_v31 }
0x19a1   :  { %v4263_v1 = vrot.slane %v4242_v47, %v6988_v40  ;;  %v4267_v22 = vrot.slane %v4242_v47, %v6992_v46  ;;  %v4271_v41 = vrot.slane %v4242_v47, %v6996_v52 }
0x19a2   :  { %6554 = vrcp.f32 %v4247_v7  ;;  %v8301_v7 = vld [vmem:[#allocation3 + $0x8] sm:$0xff] }
0x19a3   :  { %6556 = vrcp.f32 %v4251_v15  ;;  %8786 = vst [vmem:[#allocation16_spill] sm:$0xff] %v8301_v7 }
0x19a4   :  { %6558 = vrcp.f32 %v4255_v34  ;;  %v8307_v34 = vld [vmem:[#allocation3 + $0x10] sm:$0xff] }
0x19a5   :  { %6560 = vrcp.f32 %v4259_v30  ;;  %8788 = vst [vmem:[#allocation18_spill] sm:$0xff] %v8307_v34 }
0x19a6   :  { %6562 = vrcp.f32 %v4263_v1  ;;  %v8313_v1 = vld [vmem:[#allocation3 + $0x18] sm:$0xff] }
0x19a7   :  { %6564 = vrcp.f32 %v4267_v22  ;;  %8789 = vst [vmem:[#allocation19_spill] sm:$0xff] %v8313_v1 }
0x19a8   :  { %6566 = vrcp.f32 %v4271_v41 }
0x19ac   :  { %v6555_v21 = vpop.eup %6554 }
0x19ad   :  { %v4285_v49 = vmul.f32 %v6555_v21, %v8229_v11  ;;  %v6557_v17 = vpop.eup %6556  ;;  %v4275_v11 = vrot.slane %v4242_v47, %v7000_v58 }
0x19ae   :  { %v4287_v39 = vmul.f32 %v6557_v17, %v8231_v20  ;;  %v6559_v12 = vpop.eup %6558 }
0x19af   :  { %4310 = vperm.xlu0 %6385, %v4285_v49   ;;  %v4289_v37 = vmul.f32 %v6559_v12, %v8235_v54  ;;  %v6561_v44 = vpop.eup %6560  ;;  %6568 = vrcp.f32 %v4275_v11 }
0x19b0   :  { %v4291_v24 = vmul.f32 %v6561_v44, %v8241_v9  ;;  %v6563_v25 = vpop.eup %6562 }
0x19b1   :  { %v8290_v6 = vpop.f32.mrb[26].mxu0  ;;  %v4293_v20 = vmul.f32 %v6563_v25, %v8252_v5  ;;  %v6565_v50 = vpop.eup %6564  ;;  %v8303_v5 = vld [vmem:[#allocation3] sm:$0xff] }
0x19b2   :  { %v6099_v23 = vpop.f32.mrb[27].mxu0  ;;  %v4295_v32 = vmul.f32 %v6565_v50, %v8237_v63  ;;  %v6567_v36 = vpop.eup %6566  ;;  %8787 = vst [vmem:[#allocation17_spill] sm:$0xff] %v8303_v5 }
0x19b3   :  { %4315 = vperm.xlu0 %6385, %v4287_v39   ;;  %v4297_v54 = vmul.f32 %v6567_v36, %v8257_v43 }
0x19b7   :  { %4320 = vperm.xlu0 %6385, %v4289_v37   ;;  %v8317_v37 = vld [vmem:[#allocation3 + $0x20] sm:$0xff] }
0x19b8   :  { %8790 = vst [vmem:[#allocation20_spill] sm:$0xff] %v8317_v37 }
0x19b9   :  { %v6569_v61 = vpop.eup %6568 }
0x19ba   :  { %v4299_v27 = vmul.f32 %v6569_v61, %v8243_v14 }
0x19bb   :  { %4325 = vperm.xlu0 %6385, %v4291_v24  }
0x19bf   :  { %4330 = vperm.xlu0 %6385, %v4293_v20  }
0x19c3   :  { %4335 = vperm.xlu0 %6385, %v4295_v32  }
0x19c7   :  { %4340 = vperm.xlu0 %6385, %v4297_v54   ;;  %v8321_v54 = vld [vmem:[#allocation3 + $0x28] sm:$0xff] }
0x19c8   :  { %8791 = vst [vmem:[#allocation21_spill] sm:$0xff] %v8321_v54 }
0x19cb   :  { %4345 = vperm.xlu0 %6385, %v4299_v27  }
0x19cf   :  { %4509 = vrot.lane.b32.xlu0 %v3898_v16, %s6713_s3 }
0x1a2e   :  { %v4311_v9 = vpop.permute.xlu0 %4310 }
0x1a2f   :  { %v4348_v63 = vmul.f32 %v4311_v9, %v8303_v5 }
0x1a31   :  { %v4356_v21 = vsel %vm311_vm3, %v4348_v63, 0.0  ;;  %v4628_v63 = vrot.slane %v4311_v9, %v6957_v59 }
0x1a32   :  { %v4316_v47 = vpop.permute.xlu0 %4315  ;;  %v4357_v39 = vrot.slane %v4356_v21, 4 }
0x1a33   :  { %v4349_v15 = vmul.f32 %v4316_v47, %v8301_v7  ;;  %v4632_v27 = vrot.slane %v4316_v47, %v6957_v59 }
0x1a34   :  { %v4358_v25 = vadd.f32 %v4357_v39, %v4356_v21 }
0x1a35   :  { %v4363_v14 = vsel %vm311_vm3, %v4349_v15, 0.0 }
0x1a36   :  { %v4321_v43 = vpop.permute.xlu0 %4320  ;;  %v4364_v22 = vrot.slane %v4363_v14, 4 }
0x1a37   :  { %v4350_v30 = vmul.f32 %v4321_v43, %v8307_v34 }
0x1a38   :  { %v4365_v24 = vadd.f32 %v4364_v22, %v4363_v14  ;;  %v4359_v14 = vrot.slane %v4358_v25, 2 }
0x1a39   :  { %v4370_v16 = vsel %vm311_vm3, %v4350_v30, 0.0 }
0x1a3a   :  { %v4326_v49 = vpop.permute.xlu0 %4325  ;;  %v4371_v12 = vrot.slane %v4370_v16, 4  ;;  %v4366_v30 = vrot.slane %v4365_v24, 2 }
0x1a3b   :  { %v4351_v17 = vmul.f32 %v4326_v49, %v8313_v1  ;;  %v4360_v1 = vadd.f32 %v4359_v14, %v4358_v25 }
0x1a3c   :  { %v4372_v20 = vadd.f32 %v4371_v12, %v4370_v16  ;;  %v4640_v16 = vrot.slane %v4326_v49, %v6957_v59 }
0x1a3d   :  { %v4377_v23 = vsel %vm311_vm3, %v4351_v17, 0.0  ;;  %v4636_v17 = vrot.slane %v4321_v43, %v6957_v59 }
0x1a3e   :  { %v4378_v41 = vrot.slane %v4377_v23, 4  ;;  %v4331_v44 = vpop.permute.xlu0 %4330  ;;  %v4373_v21 = vrot.slane %v4372_v20, 2 }
0x1a3f   :  { %v4352_v11 = vmul.f32 %v4331_v44, %v8317_v37  ;;  %v4644_v12 = vrot.slane %v4331_v44, %v6957_v59 }
0x1a40   :  { %v4379_v32 = vadd.f32 %v4378_v41, %v4377_v23  ;;  %v8330_v41 = vld [vmem:[#allocation3 + $0x30] sm:$0xff]  ;;  %v4374_v34 = vadd.f32 %v4373_v21, %v4372_v20 }
0x1a41   :  { %v4384_v50 = vsel %vm311_vm3, %v4352_v11, 0.0  ;;  %8792 = vst [vmem:[#allocation22_spill] sm:$0xff] %v8330_v41  ;;  %v4657_v11 = vsel %vm607_vm4, %v4632_v27, %v4628_v63 }
0x1a42   :  { %v4385_v36 = vrot.slane %v4384_v50, 4  ;;  %v4336_v61 = vpop.permute.xlu0 %4335  ;;  %v4380_v39 = vrot.slane %v4379_v32, 2 }
0x1a43   :  { %v4353_v15 = vmul.f32 %v4336_v61, %v8321_v54  ;;  %v4648_v54 = vrot.slane %v4336_v61, %v6957_v59  ;;  %v8340_v61 = vld [vmem:[#allocation3 + $0x38] sm:$0xff] }
0x1a44   :  { %v4386_v37 = vadd.f32 %v4385_v36, %v4384_v50  ;;  %v4367_v50 = vadd.f32 %v4366_v30, %v4365_v24  ;;  %v4658_v36 = vsel %vm609_vm5, %v4636_v17, %v4657_v11  ;;  %v4381_v5 = vadd.f32 %v4380_v39, %v4379_v32 }
0x1a45   :  { %v4391_v22 = vsel %vm311_vm3, %v4353_v15, 0.0  ;;  %v4659_v44 = vsel %vm611_vm6, %v4640_v16, %v4658_v36  ;;  %v4375_v32 = vrot.slane %v4374_v34, 1 }
0x1a46   :  { %v4392_v23 = vrot.slane %v4391_v22, 4  ;;  %v4341_v47 = vpop.permute.xlu0 %4340  ;;  %v4387_v9 = vrot.slane %v4386_v37, 2  ;;  %v4660_v27 = vsel %vm613_vm7, %v4644_v12, %v4659_v44  ;;  %v4368_v20 = vrot.slane %v4367_v50, 1 }
0x1a47   :  { %v4354_v43 = vmul.f32 %v4341_v47, %v8330_v41  ;;  %v4652_v15 = vrot.slane %v4341_v47, %v6957_v59  ;;  %v4661_v30 = vsel %vm615_vm8, %v4648_v54, %v4660_v27  ;;  %v4361_v12 = vrot.slane %v4360_v1, 1 }
0x1a48   :  { %v4393_v49 = vadd.f32 %v4392_v23, %v4391_v22  ;;  %v4388_v24 = vadd.f32 %v4387_v9, %v4386_v37  ;;  %v4382_v23 = vrot.slane %v4381_v5, 1  ;;  %v4369_v11 = vadd.f32 %v4368_v20, %v4367_v50 }
0x1a49   :  { %v4398_v7 = vsel %vm311_vm3, %v4354_v43, 0.0  ;;  %v4662_v16 = vsel %vm617_vm9, %v4652_v15, %v4661_v30  ;;  %v4376_v36 = vadd.f32 %v4375_v32, %v4374_v34 }
0x1a4a   :  { %v4394_v63 = vrot.slane %v4393_v49, 2  ;;  %v4399_v42 = vrot.slane %v4398_v7, 4  ;;  %v4346_v41 = vpop.permute.xlu0 %4345  ;;  %v4389_v54 = vrot.slane %v4388_v24, 1 }
0x1a4b   :  { %v4355_v17 = vmul.f32 %v4346_v41, %v8340_v61  ;;  %v4656_v25 = vrot.slane %v4346_v41, %v6957_v59 }
0x1a4c   :  { %v4395_v14 = vadd.f32 %v4394_v63, %v4393_v49  ;;  %v4400_v21 = vadd.f32 %v4399_v42, %v4398_v7  ;;  %v4362_v42 = vadd.f32 %v4361_v12, %v4360_v1  ;;  %v4383_v7 = vadd.f32 %v4382_v23, %v4381_v5 }
0x1a4d   :  { %v4405_v22 = vsel %vm311_vm3, %v4355_v17, 0.0  ;;  %v4663_v39 = vsel %vm619_vm10, %v4656_v25, %v4662_v16  ;;  %v4390_v44 = vadd.f32 %v4389_v54, %v4388_v24 }
0x1a4e   :  { %v4401_v47 = vrot.slane %v4400_v21, 2  ;;  %v4406_v37 = vrot.slane %v4405_v22, 4  ;;  %4666 = vst.msk [vmem:[#allocation6 + $0x20] sm:$0xff] %vm622_vm11, %v4663_v39  ;;  %v4396_v9 = vrot.slane %v4395_v14, 1  ;;  %v4420_v27 = vsel %vm607_vm4, %v4369_v11, %v4362_v42 }
0x1a4f   :  { %v4421_v17 = vsel %vm609_vm5, %v4376_v36, %v4420_v27  ;;  %v4530_v36 = vld [vmem:[%s8748_s7 + $0x18] sm:$0xff] }
0x1a50   :  { %v4402_v41 = vadd.f32 %v4401_v47, %v4400_v21  ;;  %v4407_v43 = vadd.f32 %v4406_v37, %v4405_v22  ;;  %v4397_v63 = vadd.f32 %v4396_v9, %v4395_v14  ;;  %v4422_v16 = vsel %vm611_vm6, %v4383_v7, %v4421_v17  ;;  %v4500_v21 = vpop.permute.xlu1 %4499  ;;  %v4510_v47 = vpop.permute.xlu0 %4509  ;;  %v4527_v9 = vld [vmem:[%s8748_s7] sm:$0xff] }
0x1a51   :  { %v4423_v50 = vsel %vm613_vm7, %v4390_v44, %v4422_v16 }
0x1a52   :  { %v4403_v49 = vrot.slane %v4402_v41, 1  ;;  %v4408_v15 = vrot.slane %v4407_v43, 2  ;;  %v4424_v20 = vsel %vm615_vm8, %v4397_v63, %v4423_v50 }
0x1a54   :  { %v4409_v30 = vadd.f32 %v4408_v15, %v4407_v43  ;;  %v4404_v25 = vadd.f32 %v4403_v49, %v4402_v41  ;;  %v4529_v41 = vld [vmem:[%s8748_s7 + $0x10] sm:$0xff] }
0x1a55   :  { %v6330_v42 = vpack.c.bf16 %v4530_v36, %v4529_v41 }
0x1a56   :  { %v4410_v39 = vrot.slane %v4409_v30, 1  ;;  %v4425_v5 = vsel %vm617_vm9, %v4404_v25, %v4424_v20 }
0x1a58   :  { %v4411_v34 = vadd.f32 %v4410_v39, %v4409_v30 }
0x1a5a   :  { %v4426_v1 = vsel %vm619_vm10, %v4411_v34, %v4425_v5 }
0x1a5b   :  { %v4495_v24 = vadd.f32 %v8290_v6, %v4426_v1  ;;  %v4528_v6 = vld [vmem:[%s8748_s7 + $0x8] sm:$0xff] }
0x1a5c   :  { %v6327_v43 = vpack.c.bf16 %v4528_v6, %v4527_v9 }
0x1a5d   :  { %v4502_v14 = vadd.f32 %v4500_v21, %v4495_v24 }
0x1a5e   :  { %6328 = vmatpush3.bf16.msra.mxu1 %v6327_v43  ;;  %6364 = vmatpush3.bf16.msra.mxu0 %v6327_v43 }
0x1a5f   :  { %v5653_v32 = vmul.f32 -1.442695, %v4502_v14  ;;  %6329 = vmatprep.subr.bf16.mxu1 %v8780_v38  ;;  %6365 = vmatprep.subr.bf16.mxu0 %v8780_v38 }
0x1a61   :  { %6570 = vpow2.f32 %v5653_v32 }
0x1a62   :  { %6331 = vmatpush3.bf16.msra.mxu1 %v6330_v42  ;;  %6367 = vmatpush3.bf16.msra.mxu0 %v6330_v42 }
0x1a63   :  { %6332 = vmatprep.subr.bf16.mxu1 %v8780_v38 }
0x1a6b   :  { %v6571_v22 = vpop.eup %6570 }
0x1a6c   :  { %v4506_v12 = vadd.f32 1.0, %v6571_v22 }
0x1a6e   :  { %6572 = vrcp.f32 %v4506_v12 }
0x1a78   :  { %v6573_v23 = vpop.eup %6572 }
0x1a79   :  { %v4512_v37 = vmul.f32 %v6573_v23, %v4510_v47  ;;  %v4519_v49 = vsub.f32 1.0, %v6573_v23  ;;  %v4525_v44 = vmul.f32 %v6573_v23, %v8086_v26  ;;  %v8392_v26 = vld [vmem:[%s8749_s8] ss:$0 sm:$0xff] }
0x1a7b   :  { %4514 = vrot.lane.b32.xlu0 %v4512_v37, %s6715_s21 }
0x1aed   :  { %v4515_v54 = vpop.permute.xlu0 %4514 }
0x1aee   :  { %v4517_v11 = vadd.f32 %v4515_v54, %v4495_v24 }
0x1af0   :  { %6574 = vtanh.f32 %v4517_v11 }
0x1afa   :  { %v6575_v7 = vpop.eup %6574 }
0x1afb   :  { %4521 = vrot.lane.b32.xlu0 %v6575_v7, %s6714_s18 }
0x1b6d   :  { %v4522_v15 = vpop.permute.xlu0 %4521 }
0x1b6e   :  { %v4524_v27 = vmul.f32 %v4522_v15, %v4519_v49 }
0x1b70   :  { %v8375_v63 = vadd.f32 %v4525_v44, %v4524_v27 }
0x1b72   :  { %4539 = vrot.lane.b32.xlu0 %v8375_v63, %s6714_s18 }
0x1be4   :  { %v4540_v30 = vpop.permute.xlu0 %4539 }
0x1be5   :  { %6109 = vmatmul.mubr.msk.f32.vlgmr.msra.gmra.mrb[14].mxu1 %vm195_vm2, %v4540_v30 }
0x1be6   :  { %6334 = vmatpush3.bf16.msra.mxu1 %v8096_v35  ;;  %6119 = vmatprep.mubr.msk.f32.mxu1 %vm6709_vm1, %v8781_v55 }
0x1be7   :  { %6335 = vmatprep.subr.bf16.mxu1 %v8780_v38 }
0x1bea   :  { %6337 = vmatpush3.bf16.msra.mxu1 %v8106_v4 }
0x1beb   :  { %6338 = vmatprep.subr.bf16.mxu1 %v8780_v38 }
0x1bed   :  { %6120 = vmatmul.mubr.msk.f32.vlgmr.msra.gmra.mrb[16].mxu1 %vm195_vm2, %v4540_v30 }
0x1bee   :  { %6154 = vmatprep.mubr.msk.f32.mxu1 %vm6709_vm1, %v8781_v55 }
0x1cb8   :  { %v4609_v35 = vpop.f32.mrb[14].mxu1 }
0x1cb9   :  { %v8395_v17 = vadd.f32 %v8392_v26, %v4609_v35  ;;  %v6110_v25 = vpop.f32.mrb[15].mxu1 }
0x1cbb   :  { %4613 = vmax.xlane.f32.xlu0 %v8395_v17 }
0x1cc0   :  { %v8398_v4 = vpop.f32.mrb[16].mxu1 }
0x1cc1   :  { %v4795_v16 = vcombine.high %v8398_v4, %v8398_v4  ;;  %v4802_v55 = vrot.slane %v8398_v4, %v6882_v48  ;;  %v6121_v39 = vpop.f32.mrb[17].mxu1 }
0x1cc3   :  { %v4809_v50 = vrot.slane %v4795_v16, %v6882_v48  ;;  %v4810_v20 = vcombine.high %v4802_v55, %v4802_v55  ;;  %v4818_v34 = vrot.slane %v4802_v55, %v6882_v48 }
0x1cc5   :  { %v4811_v5 = vcombine.high %v4809_v50, %v4809_v50  ;;  %v4825_v1 = vrot.slane %v4809_v50, %v6882_v48  ;;  %v4832_v24 = vrot.slane %v4810_v20, %v6882_v48  ;;  %v4840_v21 = vcombine.high %v4818_v34, %v4818_v34 }
0x1cc6   :  { %v4847_v14 = vrot.slane %v4818_v34, %v6892_v53 }
0x1cc7   :  { %v4839_v32 = vrot.slane %v4811_v5, %v6882_v48  ;;  %v4841_v22 = vcombine.high %v4825_v1, %v4825_v1  ;;  %v4842_v12 = vcombine.high %v4832_v24, %v4832_v24  ;;  %v4851_v23 = vrot.slane %v4832_v24, %v6892_v53 }
0x1cc8   :  { %v4884_v47 = vadd.f32 %v4847_v14, %v8148_v33  ;;  %v4855_v37 = vrot.slane %v4840_v21, %v6892_v53  ;;  %v4863_v54 = vrot.slane %v4825_v1, %v6892_v53 }
0x1cc9   :  { %v4885_v11 = vadd.f32 %v4851_v23, %v8152_v18  ;;  %v4859_v9 = vrot.slane %v4842_v12, %v6892_v53  ;;  %v4867_v6 = vrot.slane %v4839_v32, %v6892_v53  ;;  %v4843_v41 = vcombine.high %v4839_v32, %v4839_v32 }
0x1cca   :  { %v4892_v43 = vmax.f32 %v4884_v47, 0.0  ;;  %v4886_v48 = vadd.f32 %v4855_v37, %v8163_v60  ;;  %v4888_v36 = vadd.f32 %v4863_v54, %v8175_v2  ;;  %v4871_v42 = vrot.slane %v4841_v22, %v6892_v53 }
0x1ccb   :  { %v4893_v7 = vmax.f32 %v4885_v11, 0.0  ;;  %v4887_v33 = vadd.f32 %v4859_v9, %v8166_v45  ;;  %v4889_v49 = vadd.f32 %v4867_v6, %v8169_v56  ;;  %v4875_v15 = vrot.slane %v4843_v41, %v6892_v53 }
0x1ccc   :  { %v4907_v18 = vmul.f32 %v8159_v62, %v4892_v43  ;;  %v4894_v44 = vmax.f32 %v4886_v48, 0.0  ;;  %v4896_v25 = vmax.f32 %v4888_v36, 0.0  ;;  %v4890_v55 = vadd.f32 %v4871_v42, %v8187_v3 }
0x1ccd   :  { %v4908_v27 = vmul.f32 %v8159_v62, %v4893_v7  ;;  %v4895_v30 = vmax.f32 %v4887_v33, 0.0  ;;  %v4897_v60 = vmax.f32 %v4889_v49, 0.0  ;;  %v4891_v2 = vadd.f32 %v4875_v15, %v8177_v10 }
0x1cce   :  { %v4915_v35 = vsel %vm195_vm2, %v4907_v18, 0.0  ;;  %v4909_v56 = vmul.f32 %v8159_v62, %v4894_v44  ;;  %v4911_v10 = vmul.f32 %v8159_v62, %v4896_v25  ;;  %v4898_v5 = vmax.f32 %v4890_v55, 0.0  ;;  %v4688_v55 = vld [vmem:[%s8747_s6 + $0x10] sm:$0xff] }
0x1ccf   :  { %4916 = vadd.xlane.f32.xlu1 %v4915_v35  ;;  %v4918_v16 = vsel %vm195_vm2, %v4908_v27, 0.0  ;;  %v4910_v45 = vmul.f32 %v8159_v62, %v4895_v30  ;;  %v4912_v50 = vmul.f32 %v8159_v62, %v4897_v60  ;;  %v4899_v20 = vmax.f32 %v4891_v2, 0.0 }
0x1cd0   :  { %4919 = vadd.xlane.f32.xlu0 %v4918_v16  ;;  %v4921_v34 = vsel %vm195_vm2, %v4909_v56, 0.0  ;;  %v4927_v3 = vsel %vm195_vm2, %v4911_v10, 0.0  ;;  %v4913_v21 = vmul.f32 %v8159_v62, %v4898_v5  ;;  %v4687_v56 = vld [vmem:[%s8747_s6 + $0x8] sm:$0xff] }
0x1cd1   :  { %v4924_v39 = vsel %vm195_vm2, %v4910_v45, 0.0  ;;  %v4930_v1 = vsel %vm195_vm2, %v4912_v50, 0.0  ;;  %v4914_v24 = vmul.f32 %v8159_v62, %v4899_v20  ;;  %v4686_v45 = vld [vmem:[%s8747_s6] sm:$0xff]  ;;  %v4689_v50 = vld [vmem:[%s8747_s6 + $0x18] sm:$0xff]  ;;  %v4691_v10 = vld [vmem:[%s8747_s6 + $0x28] sm:$0xff] }
0x1cd2   :  { %v4933_v32 = vsel %vm195_vm2, %v4913_v21, 0.0  ;;  %v6342_v20 = vpack.c.bf16 %v4689_v50, %v4688_v55  ;;  %v4694_v21 = vld [vmem:[%s8747_s6 + $0x40] sm:$0xff] }
0x1cd3   :  { %4925 = vadd.xlane.f32.xlu1 %v4924_v39  ;;  %v4936_v14 = vsel %vm195_vm2, %v4914_v24, 0.0  ;;  %v6339_v39 = vpack.c.bf16 %v4687_v56, %v4686_v45  ;;  %v4693_v24 = vld [vmem:[%s8747_s6 + $0x38] sm:$0xff] }
0x1cd4   :  { %4922 = vadd.xlane.f32.xlu0 %v4921_v34  ;;  %v4690_v34 = vld [vmem:[%s8747_s6 + $0x20] sm:$0xff] }
0x1cd5   :  { %6340 = vmatpush3.bf16.msra.mxu1 %v6339_v39  ;;  %v6345_v5 = vpack.c.bf16 %v4691_v10, %v4690_v34 }
0x1cd6   :  { %6341 = vmatprep.subr.bf16.mxu1 %v8780_v38 }
0x1cd7   :  { %4931 = vadd.xlane.f32.xlu1 %v4930_v1  ;;  %v4692_v1 = vld [vmem:[%s8747_s6 + $0x30] sm:$0xff] }
0x1cd8   :  { %4928 = vadd.xlane.f32.xlu0 %v4927_v3  ;;  %v6348_v3 = vpack.c.bf16 %v4693_v24, %v4692_v1 }
0x1cd9   :  { %6343 = vmatpush3.bf16.msra.mxu1 %v6342_v20 }
0x1cda   :  { %6344 = vmatprep.subr.bf16.mxu1 %v8780_v38 }
0x1cdb   :  { %4937 = vadd.xlane.f32.xlu1 %v4936_v14  ;;  %v4695_v14 = vld [vmem:[%s8747_s6 + $0x48] sm:$0xff] }
0x1cdc   :  { %4934 = vadd.xlane.f32.xlu0 %v4933_v32  ;;  %v6351_v32 = vpack.c.bf16 %v4695_v14, %v4694_v21 }
0x1cdd   :  { %6346 = vmatpush3.bf16.msra.mxu1 %v6345_v5 }
0x1cde   :  { %6347 = vmatprep.subr.bf16.mxu1 %v8780_v38 }
0x1ce1   :  { %6349 = vmatpush3.bf16.msra.mxu1 %v6348_v3 }
0x1ce2   :  { %6350 = vmatprep.subr.bf16.mxu1 %v8780_v38 }
0x1ce5   :  { %6352 = vmatpush3.bf16.msra.mxu1 %v6351_v32 }
0x1ce6   :  { %6353 = vmatprep.subr.bf16.mxu1 %v8780_v38 }
0x1d48   :  { %v8441_v22 = vpop.xlane.xlu0 %4613 }
0x1d49   :  { %vm4667_vm1 = vcmp.ge.f32.partialorder %v8395_v17, %v8441_v22 }
0x1d4a   :  { %v8446_v12 = vsel %vm4667_vm1, %v6953_v57, 128 }
0x1d4b   :  { %v4670_v23 = vshra.s32 %v8446_v12, 16 }
0x1d4d   :  { %v8449_v47 = vcvt.s32.f32 %v4670_v23  ;;  %v4696_v23 = vld [vmem:[%s8747_s6 + $0x50] sm:$0xff] }
0x1d4f   :  { %4673 = vmin.xlane.f32.xlu0 %v8449_v47 }
0x1d5c   :  { %v8452_v62 = vpop.xlane.xlu1 %4916 }
0x1d5d   :  { %v8454_v37 = vpop.xlane.xlu0 %4919  ;;  %v4950_v9 = vrot.slane %v8452_v62, %v6957_v59 }
0x1d5e   :  { %v4954_v54 = vrot.slane %v8454_v37, %v6957_v59 }
0x1d60   :  { %v8458_v11 = vpop.xlane.xlu1 %4925  ;;  %v4979_v43 = vsel %vm607_vm4, %v4954_v54, %v4950_v9  ;;  %v4697_v54 = vld [vmem:[%s8747_s6 + $0x58] sm:$0xff] }
0x1d61   :  { %v8462_v6 = vpop.xlane.xlu0 %4922  ;;  %v4962_v42 = vrot.slane %v8458_v11, %v6957_v59  ;;  %v6354_v9 = vpack.c.bf16 %v4697_v54, %v4696_v23 }
0x1d62   :  { %v4958_v41 = vrot.slane %v8462_v6, %v6957_v59 }
0x1d63   :  { %6355 = vmatpush3.bf16.msra.mxu1 %v6354_v9 }
0x1d64   :  { %v4980_v48 = vsel %vm609_vm5, %v4958_v41, %v4979_v43  ;;  %v8468_v36 = vpop.xlane.xlu1 %4931  ;;  %v4698_v41 = vld [vmem:[%s8747_s6 + $0x60] sm:$0xff]  ;;  %v4699_v43 = vld [vmem:[%s8747_s6 + $0x68] sm:$0xff]  ;;  %6356 = vmatprep.subr.bf16.mxu1 %v8780_v38 }
0x1d65   :  { %v8472_v7 = vpop.xlane.xlu0 %4928  ;;  %v4981_v49 = vsel %vm611_vm6, %v4962_v42, %v4980_v48  ;;  %v4970_v44 = vrot.slane %v8468_v36, %v6957_v59  ;;  %v6357_v48 = vpack.c.bf16 %v4699_v43, %v4698_v41  ;;  %v4669_v42 = vand.u32 65535, %v8446_v12 }
0x1d66   :  { %v4966_v33 = vrot.slane %v8472_v7, %v6957_v59 }
0x1d67   :  { %6358 = vmatpush3.bf16.msra.mxu1 %v6357_v48 }
0x1d68   :  { %v4982_v15 = vsel %vm613_vm7, %v4966_v33, %v4981_v49  ;;  %v8478_v18 = vpop.xlane.xlu1 %4937  ;;  %6359 = vmatprep.subr.bf16.mxu1 %v8780_v38  ;;  %v4671_v49 = vcvt.s32.f32 %v4669_v42 }
0x1d69   :  { %v8482_v27 = vpop.xlane.xlu0 %4934  ;;  %v4978_v35 = vrot.slane %v8478_v18, %v6957_v59  ;;  %v4983_v60 = vsel %vm615_vm8, %v4970_v44, %v4982_v15  ;;  %v4700_v44 = vld [vmem:[%s8747_s6 + $0x70] sm:$0xff] }
0x1d6a   :  { %v4974_v30 = vrot.slane %v8482_v27, %v6957_v59 }
0x1d6c   :  { %v4984_v25 = vsel %vm617_vm9, %v4974_v30, %v4983_v60  ;;  %v4701_v30 = vld [vmem:[%s8747_s6 + $0x78] sm:$0xff]  ;;  %s6717_s6 = smov [#allocation6]  }
0x1d6d   :  { %v4985_v2 = vsel %vm619_vm10, %v4978_v35, %v4984_v25  ;;  %v6360_v35 = vpack.c.bf16 %v4701_v30, %v4700_v44 }
0x1d6e   :  { %v4987_v16 = vsel %vm622_vm11, %v4985_v2, -inf }
0x1d6f   :  { %4988 = vmax.xlane.f32.xlu1 %v4987_v16  ;;  %6361 = vmatpush3.bf16.msra.mxu1 %v6360_v35 }
0x1ddc   :  { %v4674_v33 = vpop.xlane.xlu0 %4673 }
0x1ddd   :  { %vm4675_vm14 = vcmp.eq.f32.partialorder %v8449_v47, %v4674_v33  ;;  %v4680_v41 = vcvt.f32.s32 %v4674_v33 }
0x1dde   :  { %v4676_v15 = vsel %vm4675_vm14, %v4671_v49, inf }
0x1ddf   :  { %4677 = vmin.xlane.f32.xlu0 %v4676_v15  ;;  %v4681_v48 = vshll.u32 %v4680_v41, 16 }
0x1dfc   :  { %v4989_v60 = vpop.xlane.xlu1 %4988 }
0x1dfd   :  { %v4994_v38 = vrot.slane %v4989_v60, %v6892_v53  ;;  %v4998_v12 = vrot.slane %v4989_v60, %v6976_v28  ;;  %v5002_v25 = vrot.slane %v4989_v60, %v6979_v29  ;;  %v5010_v47 = vrot.slane %v4989_v60, %v6988_v40 }
0x1dfe   :  { %v5006_v2 = vrot.slane %v4989_v60, %v6982_v31  ;;  %v5018_v55 = vrot.slane %v4989_v60, %v6996_v52  ;;  %v5014_v34 = vrot.slane %v4989_v60, %v6992_v46 }
0x1dff   :  { %v5031_v16 = vsub.f32 %v8452_v62, %v4994_v38  ;;  %v5032_v45 = vsub.f32 %v8454_v37, %v4998_v12  ;;  %v5033_v56 = vsub.f32 %v8462_v6, %v5002_v25  ;;  %v5035_v39 = vsub.f32 %v8472_v7, %v5010_v47 }
0x1e00   :  { %v5034_v10 = vsub.f32 %v8458_v11, %v5006_v2  ;;  %v5037_v1 = vsub.f32 %v8482_v27, %v5018_v55  ;;  %v5022_v37 = vrot.slane %v4989_v60, %v7000_v58  ;;  %v5036_v6 = vsub.f32 %v8468_v36, %v5014_v34 }
0x1e01   :  { %v5039_v50 = vmul.f32 1.442695, %v5031_v16  ;;  %v5041_v20 = vmul.f32 1.442695, %v5032_v45  ;;  %v5043_v5 = vmul.f32 1.442695, %v5033_v56 }
0x1e02   :  { %v5047_v62 = vmul.f32 1.442695, %v5035_v39  ;;  %v5045_v24 = vmul.f32 1.442695, %v5034_v10  ;;  %v5051_v7 = vmul.f32 1.442695, %v5037_v1  ;;  %v5038_v3 = vsub.f32 %v8478_v18, %v5022_v37 }
0x1e03   :  { %6576 = vpow2.f32 %v5039_v50  ;;  %v5049_v21 = vmul.f32 1.442695, %v5036_v6 }
0x1e04   :  { %6578 = vpow2.f32 %v5041_v20  ;;  %v5053_v27 = vmul.f32 1.442695, %v5038_v3 }
0x1e05   :  { %6580 = vpow2.f32 %v5043_v5 }
0x1e06   :  { %6582 = vpow2.f32 %v5047_v62 }
0x1e07   :  { %6584 = vpow2.f32 %v5045_v24 }
0x1e08   :  { %6586 = vpow2.f32 %v5051_v7 }
0x1e09   :  { %6588 = vpow2.f32 %v5049_v21 }
0x1e0a   :  { %6590 = vpow2.f32 %v5053_v27 }
0x1e0d   :  { %v8565_v11 = vpop.eup %6576 }
0x1e0e   :  { %v8567_v14 = vpop.eup %6578  ;;  %5064 = vperm.xlu1 %6384, %v8565_v11  }
0x1e0f   :  { %5067 = vperm.xlu0 %6385, %v8567_v14   ;;  %v8571_v36 = vpop.eup %6580 }
0x1e10   :  { %v8573_v32 = vpop.eup %6582 }
0x1e11   :  { %v8577_v18 = vpop.eup %6584 }
0x1e12   :  { %5070 = vperm.xlu1 %6384, %v8571_v36   ;;  %v8579_v23 = vpop.eup %6586 }
0x1e13   :  { %5076 = vperm.xlu0 %6385, %v8573_v32   ;;  %v8583_v54 = vpop.eup %6588 }
0x1e14   :  { %v6591_v9 = vpop.eup %6590 }
0x1e16   :  { %5073 = vperm.xlu1 %6384, %v8577_v18  }
0x1e17   :  { %5082 = vperm.xlu0 %6385, %v8579_v23  }
0x1e1a   :  { %5079 = vperm.xlu1 %6384, %v8583_v54  }
0x1e1e   :  { %5085 = vperm.xlu1 %6384, %v6591_v9  }
0x1e22   :  { %4782 = vrot.lane.b32.xlu1 %v8250_v0, %s6713_s3 }
0x1e6c   :  { %v4678_v43 = vpop.xlane.xlu0 %4677 }
0x1e6d   :  { %v4679_v42 = vcvt.f32.s32 %v4678_v43 }
0x1e6f   :  { %v4682_v49 = vadd.s32 %v4681_v48, %v4679_v42 }
0x1e71   :  { %vm4683_vm15 = vcmp.eq.s32.totalorder %v6953_v57, %v4682_v49 }
0x1e72   :  { %6155 = vmatmul.mubr.msk.f32.vlgmr.msra.gmra.mrb[18].mxu1 %vm4683_vm15, %v8782_v51 }
0x1e8d   :  { %v5065_v15 = vpop.permute.xlu1 %5064 }
0x1e8e   :  { %v5068_v44 = vpop.permute.xlu0 %5067  ;;  %v5090_v60 = vrot.slane %v5065_v15, %v6957_v59  ;;  %v8793_v15 = vld [vmem:[#allocation14_spill] sm:$0xff] }
0x1e8f   :  { %v5094_v35 = vrot.slane %v5068_v44, %v6957_v59 }
0x1e91   :  { %v5071_v30 = vpop.permute.xlu1 %5070  ;;  %v5119_v33 = vsel %vm607_vm4, %v5094_v35, %v5090_v60 }
0x1e92   :  { %v5098_v38 = vrot.slane %v5071_v30, %v6957_v59  ;;  %v5077_v12 = vpop.permute.xlu0 %5076 }
0x1e93   :  { %v5106_v51 = vrot.slane %v5077_v12, %v6957_v59 }
0x1e94   :  { %v5120_v47 = vsel %vm609_vm5, %v5098_v38, %v5119_v33  ;;  %v8795_v38 = vld [vmem:[#allocation15_spill] sm:$0xff] }
0x1e95   :  { %v5074_v0 = vpop.permute.xlu1 %5073  ;;  %v8634_v12 = vsub.f32 %v8795_v38, %v8200_v13 }
0x1e96   :  { %v5102_v25 = vrot.slane %v5074_v0, %v6957_v59  ;;  %v5083_v16 = vpop.permute.xlu0 %5082 }
0x1e97   :  { %v5114_v39 = vrot.slane %v5083_v16, %v6957_v59  ;;  %v3729_v0 = vmul.f32 1.442695, %v8634_v12 }
0x1e98   :  { %v5121_v57 = vsel %vm611_vm6, %v5102_v25, %v5120_v47 }
0x1e99   :  { %v5080_v2 = vpop.permute.xlu1 %5079  ;;  %v5122_v56 = vsel %vm613_vm7, %v5106_v51, %v5121_v57  ;;  %v8797_v51 = vld [vmem:[#allocation16_spill] sm:$0xff] }
0x1e9a   :  { %v5110_v45 = vrot.slane %v5080_v2, %v6957_v59 }
0x1e9c   :  { %v5123_v55 = vsel %vm615_vm8, %v5110_v45, %v5122_v56 }
0x1e9d   :  { %v5086_v50 = vpop.permute.xlu1 %5085  ;;  %v5124_v34 = vsel %vm617_vm9, %v5114_v39, %v5123_v55  ;;  %v8798_v55 = vld [vmem:[#allocation18_spill] sm:$0xff] }
0x1e9e   :  { %v5118_v20 = vrot.slane %v5086_v50, %v6957_v59 }
0x1ea0   :  { %v5125_v10 = vsel %vm619_vm10, %v5118_v20, %v5124_v34 }
0x1ea1   :  { %v5127_v5 = vsel %vm622_vm11, %v5125_v10, 0.0  ;;  %v4783_v33 = vpop.permute.xlu1 %4782 }
0x1ea2   :  { %5128 = vadd.xlane.f32.xlu0 %v5127_v5 }
0x1f2f   :  { %v5129_v1 = vpop.xlane.xlu0 %5128 }
0x1f30   :  { %v5162_v62 = vrot.slane %v5129_v1, %v7000_v58  ;;  %v5134_v37 = vrot.slane %v5129_v1, %v6892_v53  ;;  %v5138_v6 = vrot.slane %v5129_v1, %v6976_v28  ;;  %v5142_v24 = vrot.slane %v5129_v1, %v6979_v29 }
0x1f31   :  { %v5146_v7 = vrot.slane %v5129_v1, %v6982_v31  ;;  %v5150_v41 = vrot.slane %v5129_v1, %v6988_v40  ;;  %v5154_v53 = vrot.slane %v5129_v1, %v6992_v46  ;;  %v5158_v31 = vrot.slane %v5129_v1, %v6996_v52  ;;  %v8794_v46 = vld [vmem:[#allocation13_spill] sm:$0xff] }
0x1f32   :  { %6592 = vrcp.f32 %v5162_v62  ;;  %v8622_v44 = vsub.f32 %v8794_v46, %v8793_v15  ;;  %v8628_v52 = vsub.f32 %v7781_v19, %v7827_v8  ;;  %v4785_v19 = vadd.f32 %v4783_v33, %v8398_v4  ;;  %v8799_v62 = vld [vmem:[#allocation19_spill] sm:$0xff] }
0x1f33   :  { %6594 = vrcp.f32 %v5134_v37 }
0x1f34   :  { %6596 = vrcp.f32 %v5138_v6  ;;  %v1955_v35 = vmul.f32 1.442695, %v8622_v44 }
0x1f35   :  { %6598 = vrcp.f32 %v5142_v24 }
0x1f36   :  { %6600 = vrcp.f32 %v5146_v7 }
0x1f37   :  { %6602 = vrcp.f32 %v5150_v41 }
0x1f38   :  { %6604 = vrcp.f32 %v5154_v53 }
0x1f39   :  { %6606 = vrcp.f32 %v5158_v31 }
0x1f3a   :  { %6608 = vpow2.f32 %v1955_v35  ;;  %v8801_v35 = vld [vmem:[#allocation21_spill] sm:$0xff] }
0x1f3c   :  { %v6593_v3 = vpop.eup %6592 }
0x1f3d   :  { %v6595_v21 = vpop.eup %6594  ;;  %v5186_v27 = vmul.f32 %v6593_v3, %v6591_v9 }
0x1f3e   :  { %v5172_v58 = vmul.f32 %v6595_v21, %v8565_v11  ;;  %v6597_v43 = vpop.eup %6596 }
0x1f3f   :  { %5232 = vperm.xlu0 %6385, %v5186_v27   ;;  %v5174_v28 = vmul.f32 %v6597_v43, %v8567_v14  ;;  %v6599_v29 = vpop.eup %6598 }
0x1f40   :  { %5197 = vperm.xlu1 %6384, %v5172_v58   ;;  %v5176_v9 = vmul.f32 %v6599_v29, %v8571_v36  ;;  %v6601_v42 = vpop.eup %6600  ;;  %v8800_v58 = vld [vmem:[#allocation20_spill] sm:$0xff] }
0x1f41   :  { %v5178_v11 = vmul.f32 %v6601_v42, %v8577_v18  ;;  %v6603_v49 = vpop.eup %6602  ;;  %v2842_v18 = vmul.f32 1.442695, %v8628_v52 }
0x1f42   :  { %v5180_v14 = vmul.f32 %v6603_v49, %v8573_v32  ;;  %v6605_v30 = vpop.eup %6604 }
0x1f43   :  { %v5182_v36 = vmul.f32 %v6605_v30, %v8583_v54  ;;  %v6607_v60 = vpop.eup %6606  ;;  %6610 = vpow2.f32 %v2842_v18 }
0x1f44   :  { %5202 = vperm.xlu1 %6384, %v5174_v28   ;;  %v5184_v32 = vmul.f32 %v6607_v60, %v8579_v23  ;;  %6612 = vpow2.f32 %v3729_v0  ;;  %v6609_v8 = vpop.eup %6608  ;;  %v8796_v23 = vld [vmem:[#allocation17_spill] sm:$0xff] }
0x1f45   :  { %v8615_v48 = vpop.f32.mrb[18].mxu1 }
0x1f46   :  { %v6156_v40 = vpop.f32.mrb[19].mxu1 }
0x1f48   :  { %5207 = vperm.xlu1 %6384, %v5176_v9  }
0x1f4c   :  { %5212 = vperm.xlu1 %6384, %v5178_v11  }
0x1f4d   :  { %v6611_v54 = vpop.eup %6610 }
0x1f4e   :  { %v6613_v13 = vpop.eup %6612 }
0x1f50   :  { %5217 = vperm.xlu1 %6384, %v5180_v14  }
0x1f54   :  { %5222 = vperm.xlu1 %6384, %v5182_v36  }
0x1f58   :  { %5227 = vperm.xlu1 %6384, %v5184_v32  }
0x1f5c   :  { %5386 = vrot.lane.b32.xlu1 %v4785_v19, %s6714_s18 }
0x1f5e   :  { %1957 = vadd.xlane.f32.xlu0 %v6609_v8 }
0x1f60   :  { %5396 = vrot.lane.b32.xlu1 %v4785_v19, %s6713_s3  ;;  %s5573_s3 = sshll.u32 %s6717_s6, 4  ;;  %s5574_s3 = int_to_ptr.vmem [resolvable:$true] %s5573_s3 }
0x1f61   :  { %p6643_p1 = scmp.lt.s32.totalorder %s5574_s3, %s5574_s3 }
0x1f62   :  { %2844 = vadd.xlane.f32.xlu0 %v6611_v54 }
0x1f66   :  { %3731 = vadd.xlane.f32.xlu0 %v6613_v13 }
0x1fbe   :  { %v8643_v16 = vpop.permute.xlu0 %5232 }
0x1fbf   :  { %v5198_v25 = vpop.permute.xlu1 %5197  ;;  %v5242_v50 = vmul.f32 %v8643_v16, %v8340_v61 }
0x1fc0   :  { %v5235_v47 = vmul.f32 %v5198_v25, %v8796_v23  ;;  %v5515_v42 = vrot.slane %v5198_v25, %v6957_v59 }
0x1fc1   :  { %v5292_v6 = vsel %vm311_vm3, %v5242_v50, 0.0 }
0x1fc2   :  { %v5243_v4 = vsel %vm311_vm3, %v5235_v47, 0.0  ;;  %v5293_v61 = vrot.slane %v5292_v6, 4 }
0x1fc3   :  { %v5203_v57 = vpop.permute.xlu1 %5202  ;;  %v5244_v20 = vrot.slane %v5243_v4, 4 }
0x1fc4   :  { %v5236_v2 = vmul.f32 %v5203_v57, %v8797_v51  ;;  %v5519_v53 = vrot.slane %v5203_v57, %v6957_v59  ;;  %v5294_v60 = vadd.f32 %v5293_v61, %v5292_v6 }
0x1fc5   :  { %v5245_v24 = vadd.f32 %v5244_v20, %v5243_v4 }
0x1fc6   :  { %v5250_v45 = vsel %vm311_vm3, %v5236_v2, 0.0  ;;  %v5544_v18 = vsel %vm607_vm4, %v5519_v53, %v5515_v42  ;;  %v8802_v2 = vld [vmem:[#allocation22_spill] sm:$0xff]  ;;  %v5295_v20 = vrot.slane %v5294_v60, 2 }
0x1fc7   :  { %v5208_v56 = vpop.permute.xlu1 %5207  ;;  %v5251_v34 = vrot.slane %v5250_v45, 4  ;;  %v5246_v29 = vrot.slane %v5245_v24, 2 }
0x1fc8   :  { %v5237_v39 = vmul.f32 %v5208_v56, %v8798_v55  ;;  %v5523_v9 = vrot.slane %v5208_v56, %v6957_v59  ;;  %v5543_v56 = vrot.slane %v8643_v16, %v6957_v59 }
0x1fc9   :  { %v5252_v7 = vadd.f32 %v5251_v34, %v5250_v45  ;;  %v5247_v0 = vadd.f32 %v5246_v29, %v5245_v24 }
0x1fca   :  { %v5257_v10 = vsel %vm311_vm3, %v5237_v39, 0.0  ;;  %v5545_v19 = vsel %vm609_vm5, %v5523_v9, %v5544_v18 }
0x1fcb   :  { %v5258_v5 = vrot.slane %v5257_v10, 4  ;;  %v5213_v1 = vpop.permute.xlu1 %5212  ;;  %v5253_v31 = vrot.slane %v5252_v7, 2  ;;  %v5248_v24 = vrot.slane %v5247_v0, 1 }
0x1fcc   :  { %v5238_v37 = vmul.f32 %v5213_v1, %v8799_v62  ;;  %v5527_v49 = vrot.slane %v5213_v1, %v6957_v59 }
0x1fcd   :  { %v5259_v21 = vadd.f32 %v5258_v5, %v5257_v10  ;;  %v5254_v33 = vadd.f32 %v5253_v31, %v5252_v7  ;;  %v5249_v61 = vadd.f32 %v5248_v24, %v5247_v0 }
0x1fce   :  { %v5264_v3 = vsel %vm311_vm3, %v5238_v37, 0.0  ;;  %v5546_v13 = vsel %vm611_vm6, %v5527_v49, %v5545_v19 }
0x1fcf   :  { %v5265_v27 = vrot.slane %v5264_v3, 4  ;;  %v5218_v41 = vpop.permute.xlu1 %5217  ;;  %v5260_v11 = vrot.slane %v5259_v21, 2  ;;  %v5255_v34 = vrot.slane %v5254_v33, 1 }
0x1fd0   :  { %v5239_v43 = vmul.f32 %v5218_v41, %v8800_v58  ;;  %v5531_v30 = vrot.slane %v5218_v41, %v6957_v59 }
0x1fd1   :  { %v5266_v28 = vadd.f32 %v5265_v27, %v5264_v3  ;;  %v5261_v54 = vadd.f32 %v5260_v11, %v5259_v21  ;;  %v5296_v21 = vadd.f32 %v5295_v20, %v5294_v60  ;;  %v5256_v27 = vadd.f32 %v5255_v34, %v5254_v33 }
0x1fd2   :  { %v5271_v40 = vsel %vm311_vm3, %v5239_v43, 0.0  ;;  %v5547_v51 = vsel %vm613_vm7, %v5531_v30, %v5546_v13 }
0x1fd3   :  { %v5272_v15 = vrot.slane %v5271_v40, 4  ;;  %v5223_v46 = vpop.permute.xlu1 %5222  ;;  %v5267_v14 = vrot.slane %v5266_v28, 2  ;;  %v5262_v1 = vrot.slane %v5261_v54, 1  ;;  %v5297_v31 = vrot.slane %v5296_v21, 1 }
0x1fd4   :  { %v5240_v36 = vmul.f32 %v5223_v46, %v8801_v35  ;;  %v5535_v32 = vrot.slane %v5223_v46, %v6957_v59  ;;  %v5307_v9 = vsel %vm607_vm4, %v5256_v27, %v5249_v61 }
0x1fd5   :  { %v5273_v38 = vadd.f32 %v5272_v15, %v5271_v40  ;;  %v5268_v57 = vadd.f32 %v5267_v14, %v5266_v28  ;;  %v5263_v41 = vadd.f32 %v5262_v1, %v5261_v54  ;;  %v5298_v14 = vadd.f32 %v5297_v31, %v5296_v21  ;;  %v8804_v1 = vld [vmem:[#allocation11_spill] sm:$0xff] }
0x1fd6   :  { %v5278_v8 = vsel %vm311_vm3, %v5240_v36, 0.0  ;;  %v5548_v50 = vsel %vm615_vm8, %v5535_v32, %v5547_v51 }
0x1fd7   :  { %v5274_v25 = vrot.slane %v5273_v38, 2  ;;  %v5279_v23 = vrot.slane %v5278_v8, 4  ;;  %v5228_v47 = vpop.permute.xlu1 %5227  ;;  %v5269_v7 = vrot.slane %v5268_v57, 1  ;;  %v5308_v42 = vsel %vm609_vm5, %v5263_v41, %v5307_v9 }
0x1fd8   :  { %v5241_v4 = vmul.f32 %v5228_v47, %v8802_v2  ;;  %v5539_v45 = vrot.slane %v5228_v47, %v6957_v59 }
0x1fd9   :  { %v5275_v55 = vadd.f32 %v5274_v25, %v5273_v38  ;;  %v5280_v39 = vadd.f32 %v5279_v23, %v5278_v8  ;;  %v5270_v53 = vadd.f32 %v5269_v7, %v5268_v57 }
0x1fda   :  { %v5285_v10 = vsel %vm311_vm3, %v5241_v4, 0.0  ;;  %v5549_v5 = vsel %vm617_vm9, %v5539_v45, %v5548_v50 }
0x1fdb   :  { %v5281_v62 = vrot.slane %v5280_v39, 2  ;;  %v5286_v37 = vrot.slane %v5285_v10, 4  ;;  %v5550_v6 = vsel %vm619_vm10, %v5543_v56, %v5549_v5  ;;  %v5276_v59 = vrot.slane %v5275_v55, 1  ;;  %v5387_v18 = vpop.permute.xlu1 %5386 }
0x1fdc   :  { %5553 = vst.msk [vmem:[#allocation6 + $0x28] sm:$0xff] %vm622_vm11, %v5550_v6  ;;  %v5309_v49 = vsel %vm611_vm6, %v5270_v53, %v5308_v42  ;;  %v4615_v6 = vsub.f32 %v8395_v17, %v8441_v22 }
0x1fdd   :  { %v5282_v16 = vadd.f32 %v5281_v62, %v5280_v39  ;;  %v5287_v3 = vadd.f32 %v5286_v37, %v5285_v10  ;;  %v5277_v28 = vadd.f32 %v5276_v59, %v5275_v55 }
0x1fde   :  { %v4616_v24 = vmul.f32 1.442695, %v4615_v6 }
0x1fdf   :  { %v5283_v58 = vrot.slane %v5282_v16, 1  ;;  %v5288_v43 = vrot.slane %v5287_v3, 2  ;;  %v5310_v46 = vsel %vm613_vm7, %v5277_v28, %v5309_v49  ;;  %v5397_v56 = vpop.permute.xlu1 %5396 }
0x1fe1   :  { %v5289_v29 = vadd.f32 %v5288_v43, %v5287_v3  ;;  %v5284_v40 = vadd.f32 %v5283_v58, %v5282_v16 }
0x1fe3   :  { %v5290_v11 = vrot.slane %v5289_v29, 1  ;;  %v5311_v30 = vsel %vm615_vm8, %v5284_v40, %v5310_v46 }
0x1fe5   :  { %v5291_v15 = vadd.f32 %v5290_v11, %v5289_v29 }
0x1fe7   :  { %v5312_v35 = vsel %vm617_vm9, %v5291_v15, %v5311_v30 }
0x1fe8   :  { %v5313_v36 = vsel %vm619_vm10, %v5298_v14, %v5312_v35 }
0x1fe9   :  { %v5382_v60 = vadd.f32 %v8615_v48, %v5313_v36 }
0x1feb   :  { %v5389_v38 = vadd.f32 %v5387_v18, %v5382_v60  ;;  %v1958_v32 = vpop.xlane.xlu0 %1957 }
0x1fec   :  { %6614 = vlog2.f32 %v1958_v32 }
0x1fed   :  { %v5661_v0 = vmul.f32 -1.442695, %v5389_v38 }
0x1fef   :  { %6616 = vpow2.f32 %v5661_v0  ;;  %v2845_v33 = vpop.xlane.xlu0 %2844 }
0x1ff0   :  { %6618 = vlog2.f32 %v2845_v33 }
0x1ff3   :  { %v3732_v19 = vpop.xlane.xlu0 %3731 }
0x1ff4   :  { %6620 = vlog2.f32 %v3732_v19 }
0x1ff6   :  { %v6615_v8 = vpop.eup %6614 }
0x1ff7   :  { %v1960_v54 = vmul.f32 0.6931472, %v6615_v8 }
0x1ff9   :  { %v6617_v13 = vpop.eup %6616  ;;  %v1961_v25 = vsub.f32 %v8622_v44, %v1960_v54 }
0x1ffa   :  { %v6619_v23 = vpop.eup %6618  ;;  %v5393_v47 = vadd.f32 1.0, %v6617_v13 }
0x1ffb   :  { %1963 = vst [vmem:[#allocation4 + $0x8] sm:$0xff] %v1961_v25  ;;  %v2847_v57 = vmul.f32 0.6931472, %v6619_v23 }
0x1ffc   :  { %6622 = vrcp.f32 %v5393_v47 }
0x1ffd   :  { %v2848_v48 = vsub.f32 %v8628_v52, %v2847_v57 }
0x1ffe   :  { %v6621_v51 = vpop.eup %6620 }
0x1fff   :  { %2850 = vst [vmem:[#allocation4 + $0x10] sm:$0xff] %v2848_v48  ;;  %v3734_v2 = vmul.f32 0.6931472, %v6621_v51 }
0x2001   :  { %v3735_v4 = vsub.f32 %v8634_v12, %v3734_v2  ;;  %v8803_v12 = vld [vmem:[#allocation12_spill] sm:$0xff] }
0x2002   :  { %v1069_v62 = vsub.f32 %v8804_v1, %v8803_v12 }
0x2003   :  { %3737 = vst [vmem:[#allocation4 + $0x18] sm:$0xff] %v3735_v4 }
0x2004   :  { %v1070_v37 = vmul.f32 1.442695, %v1069_v62 }
0x2006   :  { %v6623_v45 = vpop.eup %6622 }
0x2007   :  { %v5399_v55 = vmul.f32 %v6623_v45, %v5397_v56  ;;  %v5406_v20 = vsub.f32 1.0, %v6623_v45  ;;  %v5412_v52 = vmul.f32 %v6623_v45, %v8375_v63 }
0x2009   :  { %5401 = vrot.lane.b32.xlu1 %v5399_v55, %s6715_s21 }
0x207b   :  { %v5402_v39 = vpop.permute.xlu1 %5401 }
0x207c   :  { %v5404_v44 = vadd.f32 %v5402_v39, %v5382_v60 }
0x207e   :  { %6624 = vtanh.f32 %v5404_v44 }
0x207f   :  { %6626 = vpow2.f32 %v1070_v37 }
0x2080   :  { %6628 = vpow2.f32 %v4616_v24 }
0x2088   :  { %v6625_v50 = vpop.eup %6624 }
0x2089   :  { %5408 = vrot.lane.b32.xlu1 %v6625_v50, %s6714_s18  ;;  %v6627_v7 = vpop.eup %6626 }
0x208a   :  { %v6629_v59 = vpop.eup %6628 }
0x20fb   :  { %v5409_v34 = vpop.permute.xlu1 %5408 }
0x20fc   :  { %v5411_v10 = vmul.f32 %v5409_v34, %v5406_v20 }
0x20fe   :  { %v5413_v5 = vadd.f32 %v5412_v52, %v5411_v10 }
0x2100   :  { %5426 = vrot.lane.b32.xlu1 %v5413_v5, %s6714_s18  ;;  %s6638_s18 = scalar_lea.vmem %s5574_s3, 768 }
0x2101   :  { %p6639_p0 = scmp.ne.s32.totalorder %s5574_s3, %s6638_s18  ;;  %p6644_p2 = scmp.lt.s32.totalorder %s6638_s18, %s6638_s18 }
0x2103   :  { %p6645_p3 = por %p6644_p2, %p6643_p1 }
0x2105   :  { %p6646_p4 = pnand %p6645_p3, %p6639_p0 }
0x2124   :  { %1072 = vadd.xlane.f32.xlu1 %v6627_v7 }
0x2128   :  { %4618 = vadd.xlane.f32.xlu1 %v6629_v59 }
0x2172   :  { %v5427_v16 = vpop.permute.xlu1 %5426 }
0x2173   :  { %5555 = vst.msk [vmem:[#allocation8] sm:$0xff] %vm195_vm2, %v5427_v16  ;;  %6166 = vmatmul.mubr.msk.f32.vlgmr.msra.gmra.mrb[28].mxu0 %vm195_vm2, %v5427_v16 }
0x21b1   :  { %v1073_v63 = vpop.xlane.xlu1 %1072 }
0x21b2   :  { %6630 = vlog2.f32 %v1073_v63 }
0x21b5   :  { %v4619_v3 = vpop.xlane.xlu1 %4618 }
0x21b6   :  { %6632 = vlog2.f32 %v4619_v3 }
0x21bc   :  { %v6631_v21 = vpop.eup %6630 }
0x21bd   :  { %v1075_v27 = vmul.f32 0.6931472, %v6631_v21 }
0x21bf   :  { %v1076_v41 = vsub.f32 %v1069_v62, %v1075_v27 }
0x21c0   :  { %v6633_v17 = vpop.eup %6632 }
0x21c1   :  { %1077 = vst [vmem:[#allocation4] sm:$0xff] %v1076_v41  ;;  %v4621_v22 = vmul.f32 0.6931472, %v6633_v17 }
0x21c3   :  { %v4622_v58 = vsub.f32 %v4615_v6, %v4621_v22 }
0x21c5   :  { %4624 = vst [vmem:[#allocation4 + $0x20] sm:$0xff] %v4622_v58 }
0x2246   :  { %v5496_v43 = vpop.f32.mrb[28].mxu0 }
0x2247   :  { %v5497_v61 = vadd.f32 %v8392_v26, %v5496_v43  ;;  %v6167_v53 = vpop.f32.mrb[29].mxu0 }
0x2249   :  { %5500 = vmax.xlane.f32.xlu0 %v5497_v61 }
0x22d6   :  { %v5501_v28 = vpop.xlane.xlu0 %5500 }
0x22d7   :  { %v5502_v29 = vsub.f32 %v5497_v61, %v5501_v28 }
0x22d9   :  { %v5503_v31 = vmul.f32 1.442695, %v5502_v29 }
0x22db   :  { %6634 = vpow2.f32 %v5503_v31 }
0x22e5   :  { %v6635_v9 = vpop.eup %6634 }
0x22e6   :  { %5505 = vadd.xlane.f32.xlu1 %v6635_v9 }
0x22e7   :  { %6649 = shalt.err (!%p6646_p4)
}
0x22e8   :  { %s6650_s29 = scalar_lea.hbm %s8752_s11, 768 }
0x22e9   :  { %p6651_p5 = scmp.ne.s32.totalorder %s8752_s11, %s6650_s29  ;;  %p6654_p6 = scmp.lt.u32.totalorder %s6650_s29, %s8752_s11 }
0x22eb   :  { %p6656_p7 = pnand %p6654_p6, %p6651_p5 }
0x22ed   :  { %6659 = shalt.err (!%p6656_p7)
}
0x22ee   :  { %s6718_s5 = smov 128   ;;  %s6719_s14 = smov 8  }
0x22ef   :  { %5579 = dma.vmem_to_hbm [thread:$0]  %s5574_s3, 768, %s8752_s11, [#allocation7], %s6718_s5, %s6718_s5, %s6719_s14  }
0x22f0   :  { %s6720_s15 = smov [#allocation8]  }
0x22f1   :  { %s5586_s16 = sshll.u32 %s6720_s15, 4  ;;  %s5587_s16 = int_to_ptr.vmem [resolvable:$true] %s5586_s16 }
0x22f2   :  { %s6660_s17 = scalar_lea.vmem %s5587_s16, 128  ;;  %p6665_p9 = scmp.lt.s32.totalorder %s5587_s16, %s5587_s16 }
0x22f3   :  { %p6661_p8 = scmp.ne.s32.totalorder %s5587_s16, %s6660_s17  ;;  %p6666_p10 = scmp.lt.s32.totalorder %s6660_s17, %s6660_s17 }
0x22f5   :  { %p6667_p11 = por %p6666_p10, %p6665_p9 }
0x22f7   :  { %p6668_p12 = pnand %p6667_p11, %p6661_p8 }
0x22f9   :  { %6671 = shalt.err (!%p6668_p12)
}
0x22fa   :  { %s6672_s20 = scalar_lea.hbm %s8753_s12, 128 }
0x22fb   :  { %p6673_p13 = scmp.ne.s32.totalorder %s8753_s12, %s6672_s20  ;;  %p6676_p0 = scmp.lt.u32.totalorder %s6672_s20, %s8753_s12 }
0x22fd   :  { %p6678_p1 = pnand %p6676_p0, %p6673_p13 }
0x22ff   :  { %6681 = shalt.err (!%p6678_p1)
}
0x2300   :  { %5589 = dma.vmem_to_hbm [thread:$0]  %s5587_s16, 128, %s8753_s12, [#allocation7]  }
0x2301   :  { %s6721_s26 = smov [#allocation4]  }
0x2302   :  { %s5561_s27 = sshll.u32 %s6721_s26, 4  ;;  %s5562_s27 = int_to_ptr.vmem [resolvable:$true] %s5561_s27 }
0x2303   :  { %s6682_s28 = scalar_lea.vmem %s5562_s27, 768  ;;  %p6687_p3 = scmp.lt.s32.totalorder %s5562_s27, %s5562_s27 }
0x2304   :  { %p6683_p2 = scmp.ne.s32.totalorder %s5562_s27, %s6682_s28  ;;  %p6688_p4 = scmp.lt.s32.totalorder %s6682_s28, %s6682_s28 }
0x2306   :  { %p6689_p5 = por %p6688_p4, %p6687_p3 }
0x2308   :  { %p6690_p6 = pnand %p6689_p5, %p6683_p2 }
0x2373   :  { %v5506_v26 = vpop.xlane.xlu1 %5505 }
0x2374   :  { %6636 = vlog2.f32 %v5506_v26 }
0x237e   :  { %v6637_v40 = vpop.eup %6636 }
0x237f   :  { %v5508_v42 = vmul.f32 0.6931472, %v6637_v40 }
0x2381   :  { %v5509_v11 = vsub.f32 %v5502_v29, %v5508_v42 }
0x2383   :  { %5511 = vst [vmem:[#allocation4 + $0x28] sm:$0xff] %v5509_v11 }
0x2384   :  { %6693 = shalt.err (!%p6690_p6)
}
0x2385   :  { %s6694_s12 = scalar_lea.hbm %s8751_s10, 768 }
0x2386   :  { %p6695_p7 = scmp.ne.s32.totalorder %s8751_s10, %s6694_s12  ;;  %p6698_p8 = scmp.lt.u32.totalorder %s6694_s12, %s8751_s10 }
0x2388   :  { %p6700_p9 = pnand %p6698_p8, %p6695_p7 }
0x238a   :  { %6703 = shalt.err (!%p6700_p9)
}
0x238b   :  { %5567 = dma.vmem_to_hbm [thread:$0]  %s5562_s27, 768, %s8751_s10, [#allocation5], %s6718_s5, %s6718_s5, %s6719_s14  }
0x238c   :  { %6704 = dma.done.wait [#allocation5], 768  }
0x238d   :  { %6705 = vsyncadd [#allocation5], 4294966528 }
0x238e   :  { %6706 = dma.done.wait [#allocation7], 896  }
0x238f   :  { %6707 = vsyncadd [#allocation7], 4294966400 }
0x2390   :  { %5599 = vsyncpa [#allocation5], 1 }
0x2391   :  { %5600 = vsyncpa [#allocation7], 1 }

</bundles_post_ra>
